<compile_context>
chip_gen: v7x
topology: tpu7x:2x2x1
jax: 0.10.0
libtpu: 0.0.40
codegen_flags: <defaults>
</compile_context>

<pallas_src>
import math
import functools

import jax
import jax.numpy as jnp
from jax.experimental import pallas as pl
from jax.experimental.pallas import tpu as pltpu


# ---------------------------------------------------------------------------
# Fused kernel: RevIN norm -> patch embed -> T5 encoder (streamed layers) ->
#               final RMSNorm -> PretrainHead -> RevIN denorm
# ---------------------------------------------------------------------------

def _encoder_kernel(xp_ref, mp_ref, side_ref, wv_ref, me_ref, pos_ref,
                    ln1_ref, wqkv_ref, wo_ref, ln2_ref, wi_ref, woff_ref,
                    lnf_ref, wh_ref, bh_ref,
                    rec_ref, emb_ref,
                    h_sc, mu_sc, sd_sc,
                    *, n_heads, d_kv):
    """Grid = (row_block, layer).  Processes TB rows (= batch*channel series) per block."""
    l = pl.program_id(1)
    n_layers = pl.num_programs(1)
    TB, S, P = xp_ref.shape
    D = pos_ref.shape[-1]
    M = TB * S                       # matmul M-dim (feedback #1)
    inner = n_heads * d_kv
    d_ff = wi_ref.shape[-1] // 2
    bf16 = jnp.bfloat16

    def rms(x, w):  # T5 RMSNorm (eps = 1e-6); x [M, D] f32, w [1, D] f32
        var = jnp.mean(x * x, axis=-1, keepdims=True)
        return x * jax.lax.rsqrt(var + 1e-6) * w

    pm = side_ref[0]                 # [TB, S] pretrain patch mask (mask-token mix)
    am = side_ref[1]                 # [TB, S] input patch mask (attention / embeddings)

    # ---------------- Prologue (layer 0 only): RevIN norm + patch embedding ----------------
    @pl.when(l == 0)
    def _prologue():
        xp = xp_ref[...]                                             # [TB, S, P] raw series
        mp = mp_ref[...]                                             # [TB, S, P] RevIN mask
        n = jnp.sum(mp, axis=2, keepdims=True)
        n = jnp.maximum(jnp.sum(n, axis=1, keepdims=True), 1.0)      # [TB, 1, 1]
        mu = jnp.sum(jnp.sum(xp * mp, axis=2, keepdims=True), axis=1, keepdims=True) / n
        dc = (xp - mu) * mp
        var = jnp.sum(jnp.sum(dc * dc, axis=2, keepdims=True), axis=1, keepdims=True) / n
        sd = jnp.sqrt(var + 1e-5)
        xn = (xp - mu) / sd
        xn = jnp.where(jnp.isfinite(xn), xn, 0.0)                    # fused nan_to_num
        mu_sc[...] = mu.reshape(TB, 1)
        sd_sc[...] = sd.reshape(TB, 1)

        # PatchEmbedding: value linear + mask-token mix + positional embedding.
        ve = jnp.dot(xn.reshape(M, P).astype(bf16), wv_ref[...],
                     preferred_element_type=jnp.float32)             # [M, D]
        pm3 = pm[:, :, None]                                         # [TB, S, 1]
        h3 = pm3 * ve.reshape(TB, S, D) + (1.0 - pm3) * me_ref[...] + pos_ref[...][None]
        h_sc[...] = h3.reshape(M, D)

    # ---------------- Encoder layer l (weights streamed via the layer grid axis) -----------
    # TODO(synk): T5 relative-position attention bias omitted (synthetic encoder weights).
    h = h_sc[...]                                                    # [M, D] f32

    # Self-attention sublayer (pre-RMSNorm, residual); fused QKV projection.
    ln = rms(h, ln1_ref[...])
    qkv = jnp.dot(ln.astype(bf16), wqkv_ref[...],
                  preferred_element_type=jnp.float32)                # [M, 3*inner]
    qkvb = qkv.astype(bf16)                                          # single cast (feedback #3)
    bias3 = jnp.where(am > 0.5, 0.0, -1e9)[:, None, :]               # [TB, 1, S] additive mask
    w_o = wo_ref[...]                                                # [inner, D] bf16
    attn = jnp.zeros((M, D), jnp.float32)
    for hh in range(n_heads):
        q_h = qkvb[:, hh * d_kv:(hh + 1) * d_kv].reshape(TB, S, d_kv)
        k_h = qkvb[:, inner + hh * d_kv: inner + (hh + 1) * d_kv].reshape(TB, S, d_kv)
        v_h = qkvb[:, 2 * inner + hh * d_kv: 2 * inner + (hh + 1) * d_kv].reshape(TB, S, d_kv)
        # T5 attention: no 1/sqrt(d) scaling; batched over the TB row-block.
        s = jnp.einsum('bqd,bkd->bqk', q_h, k_h,
                       preferred_element_type=jnp.float32)           # [TB, S, S]
        s = s + bias3
        s = s - jnp.max(s, axis=-1, keepdims=True)
        p = jnp.exp(s)
        p = p * pl.reciprocal(jnp.sum(p, axis=-1, keepdims=True), approx=True)
        o_h = jnp.einsum('bqk,bkd->bqd', p.astype(bf16), v_h,
                         preferred_element_type=jnp.float32)         # [TB, S, d_kv]
        # No lane-axis concat: fold each head straight through its slice of the output proj.
        attn = attn + jnp.dot(o_h.reshape(M, d_kv).astype(bf16),
                              w_o[hh * d_kv:(hh + 1) * d_kv, :],
                              preferred_element_type=jnp.float32)
    h = h + attn

    # Gated-GELU FFN sublayer (flan-T5 style); fused wi0|wi1 projection.
    ln = rms(h, ln2_ref[...])
    ffi = jnp.dot(ln.astype(bf16), wi_ref[...],
                  preferred_element_type=jnp.float32)                # [M, 2*d_ff]
    ffb = ffi.astype(bf16)                                           # cast once, slice after (#9)
    ff = jax.nn.gelu(ffb[:, :d_ff], approximate=True) * ffb[:, d_ff:]
    h = h + jnp.dot(ff, woff_ref[...], preferred_element_type=jnp.float32)
    h_sc[...] = h

    # ---------------- Epilogue (last layer): final RMSNorm -> head -> denorm ----------------
    @pl.when(l == n_layers - 1)
    def _epilogue():
        hn = rms(h, lnf_ref[...])                                    # [M, D]
        # Masked patch-sum per row -> lane-dense (TB, D) embeddings output.
        emb_ref[...] = jnp.sum(hn.reshape(TB, S, D) * am[:, :, None], axis=1)
        # PretrainHead (dropout identity in eval): linear + bias, fused RevIN denorm,
        # flatten [S, P] -> [S*P] in-kernel for a lane-dense store (feedback #4).
        hd = jnp.dot(hn.astype(bf16), wh_ref[...],
                     preferred_element_type=jnp.float32) + bh_ref[...]   # [M, P]
        rec3 = hd.reshape(TB, S, P) * sd_sc[...][:, :, None] + mu_sc[...][:, :, None]
        rec_ref[...] = rec3.reshape(TB, S * P)


def _round_up(x, m):
    return ((x + m - 1) // m) * m


def _choose_tb(bn, s):
    # Target M = tb*S >= 256 rows (fills the 256x256 MXU on v6e/v7x; 128 already saturates
    # v5e). Keep tb a multiple of 8 so all trailing block dims respect (8,128) tiling.
    target = _round_up(max(1, -(-256 // s)), 8)
    return max(8, min(_round_up(bn, 8), target))


def _vmem_limit_bytes(tb, s, p, d, inner, d_ff):
    f32, b16 = 4, 2
    blk = (2 * tb * s * p * f32 + 2 * tb * s * f32                       # xp, mp, side
           + p * d * b16 + d * f32 + s * d * f32                         # value emb, mask tok, pos
           + 2 * d * f32 + d * 3 * inner * b16 + inner * d * b16         # ln1/ln2, wqkv, wo
           + d * 2 * d_ff * b16 + d_ff * d * b16                         # wi, wo_ff
           + d * f32 + d * p * b16 + p * f32                             # ln_f, head
           + tb * s * p * f32 + tb * d * f32)                            # outputs (rec, emb)
    scratch = tb * s * d * f32 + 2 * tb * f32
    est = 2 * blk + scratch                                              # double-buffered pipeline
    # Clamp to a value valid on v5e (16 MiB default scoped), v6e (32 MiB) and v7x (64 MiB/TC).
    return int(min(max(2 * est, 32 * 2 ** 20), 64 * 2 ** 20))


def pallas_moment_encoder(xp, mp, side, params, *, n_heads, d_kv, tb):
    """xp, mp: [BNp, S, P]; side: [2, BNp, S] (pretrain / input patch masks)."""
    BNp, S, P = xp.shape
    D = params["pos_emb"].shape[-1]
    L = params["ln1"].shape[0]
    inner = n_heads * d_kv
    d_ff = params["wi"].shape[-1] // 2
    assert BNp % tb == 0
    nb = BNp // tb
    f32 = jnp.float32
    bf = lambda w: w.astype(jnp.bfloat16)

    row3 = lambda a, b: pl.BlockSpec((tb, a, b), lambda i, l: (i, 0, 0))
    perlayer = lambda a, b: pl.BlockSpec((None, a, b), lambda i, l: (l, 0, 0))
    const2 = lambda a, b: pl.BlockSpec((a, b), lambda i, l: (0, 0))

    kernel = functools.partial(_encoder_kernel, n_heads=n_heads, d_kv=d_kv)

    rec, emb = pl.pallas_call(
        kernel,
        out_shape=(jax.ShapeDtypeStruct((BNp, S * P), f32),     # reconstruction (flattened)
                   jax.ShapeDtypeStruct((BNp, D), f32)),        # masked patch-sum embeddings
        grid=(nb, L),
        in_specs=[row3(S, P),                    # xp  (raw series, patched)
                  row3(S, P),                    # mp  (RevIN mask, patched)
                  pl.BlockSpec((2, tb, S), lambda i, l: (0, i, 0)),   # packed sidebands
                  const2(P, D),                  # W_value
                  const2(1, D),                  # mask_emb
                  const2(S, D),                  # pos_emb
                  perlayer(1, D),                # ln1[l]
                  perlayer(D, 3 * inner),        # wqkv[l]   (streamed per layer)
                  perlayer(inner, D),            # wo[l]
                  perlayer(1, D),                # ln2[l]
                  perlayer(D, 2 * d_ff),         # wi[l]
                  perlayer(d_ff, D),             # wo_ff[l]
                  const2(1, D),                  # ln_f
                  const2(D, P),                  # W_head
                  const2(1, P)],                 # b_head
        out_specs=(pl.BlockSpec((tb, S * P), lambda i, l: (i, 0)),
                   pl.BlockSpec((tb, D), lambda i, l: (i, 0))),
        scratch_shapes=[pltpu.VMEM((tb * S, D), f32),   # hidden state carried across layers
                        pltpu.VMEM((tb, 1), f32),       # RevIN mu
                        pltpu.VMEM((tb, 1), f32)],      # RevIN sd
        compiler_params=pltpu.CompilerParams(
            dimension_semantics=("parallel", "arbitrary"),   # rows shard over v7x TCs; layers serial
            vmem_limit_bytes=_vmem_limit_bytes(tb, S, P, D, inner, d_ff)),
    )(xp.astype(f32), mp.astype(f32), side.astype(f32),
      bf(params["W_value"]), params["mask_emb"].astype(f32), params["pos_emb"].astype(f32),
      params["ln1"].astype(f32), bf(params["wqkv"]), bf(params["wo"]),
      params["ln2"].astype(f32), bf(params["wi"]), bf(params["wo_ff"]),
      params["ln_f"].astype(f32), bf(params["W_head"]), params["b_head"].astype(f32))
    return rec, emb


# ---------------------------------------------------------------------------
# Parameters (deterministic synthetic init)
# ---------------------------------------------------------------------------

def sinusoidal_pos_emb(n, d):
    pos = jnp.arange(n, dtype=jnp.float32)[:, None]
    div = jnp.exp(jnp.arange(0, d, 2, dtype=jnp.float32) * (-math.log(10000.0) / d))
    pe = jnp.zeros((n, d), jnp.float32)
    pe = pe.at[:, 0::2].set(jnp.sin(pos * div))
    pe = pe.at[:, 1::2].set(jnp.cos(pos * div))
    return pe


def init_params(key, *, patch_len, d_model, n_heads, d_kv, d_ff, n_layers, n_patches):
    orth = jax.nn.initializers.orthogonal(scale=1.41)

    def nrm(i, shape, scale=0.02):
        return scale * jax.random.normal(jax.random.fold_in(key, i), shape, jnp.float32)

    inner = n_heads * d_kv
    ln1, wqkv, wo, ln2, wi, wo_ff = [], [], [], [], [], []
    for l in range(n_layers):
        b = 100 * (l + 1)
        ln1.append(jnp.ones((1, d_model), jnp.float32))
        wqkv.append(jnp.concatenate([nrm(b + 0, (d_model, inner)),
                                     nrm(b + 1, (d_model, inner)),
                                     nrm(b + 2, (d_model, inner))], axis=1))
        wo.append(nrm(b + 3, (inner, d_model)))
        ln2.append(jnp.ones((1, d_model), jnp.float32))
        wi.append(jnp.concatenate([nrm(b + 4, (d_model, d_ff)),
                                   nrm(b + 5, (d_model, d_ff))], axis=1))
        wo_ff.append(nrm(b + 6, (d_ff, d_model)))

    return {
        # PatchEmbedding: value_embedding (no bias, orth_gain=1.41), mask token, pos emb.
        "W_value": orth(jax.random.fold_in(key, 1), (patch_len, d_model)).astype(jnp.float32),
        "mask_emb": jnp.zeros((1, d_model), jnp.float32),
        "pos_emb": sinusoidal_pos_emb(n_patches, d_model),
        # Encoder layers stacked along a leading layer axis; QKV and FFN-gate fused.
        "ln1": jnp.stack(ln1), "wqkv": jnp.stack(wqkv), "wo": jnp.stack(wo),
        "ln2": jnp.stack(ln2), "wi": jnp.stack(wi), "wo_ff": jnp.stack(wo_ff),
        "ln_f": jnp.ones((1, d_model), jnp.float32),
        # PretrainHead: Linear(d_model, patch_len), orthogonal weight (gain 1.41), zero bias.
        "W_head": orth(jax.random.fold_in(key, 2), (d_model, patch_len)).astype(jnp.float32),
        "b_head": jnp.zeros((1, patch_len), jnp.float32),
    }


# ---------------------------------------------------------------------------
# Model forward (thin JAX glue around the single fused Pallas kernel)
# ---------------------------------------------------------------------------

def convert_seq_to_patch_view(mask, patch_len):
    B, T = mask.shape
    S = T // patch_len
    m = mask.reshape(B, S, patch_len).sum(axis=-1)
    return (m == patch_len).astype(jnp.float32)


def moment_reconstruction_forward(params, x_enc, input_mask, *,
                                  patch_len, d_model, n_heads, d_kv):
    B, C, T = x_enc.shape
    assert T % patch_len == 0
    S = T // patch_len
    BN = B * C

    # Masking.generate_mask with mask_ratio=0.0 -> all-ones pretrain mask.
    pretrain_mask = jnp.ones((B, T), jnp.float32)

    # Sequence-level RevIN mask (pretrain * input, shared across channels).
    m_seq = (pretrain_mask * input_mask).astype(jnp.float32)
    x2 = x_enc.reshape(BN, T).astype(jnp.float32)
    m2 = jnp.broadcast_to(m_seq[:, None, :], (B, C, T)).reshape(BN, T)

    # Packed per-row patch-view sidebands: [0]=pretrain (mask-token), [1]=input (attention).
    pm_patch = convert_seq_to_patch_view(pretrain_mask, patch_len)        # [B, S]
    am_patch = convert_seq_to_patch_view(input_mask, patch_len)           # [B, S]
    side = jnp.stack([jnp.repeat(pm_patch, C, axis=0),
                      jnp.repeat(am_patch, C, axis=0)], axis=0)           # [2, BN, S]

    # Row-block size: fill the MXU M-dim; pad BN to a multiple of it.
    tb = _choose_tb(BN, S)
    BNp = _round_up(BN, tb)
    if BNp != BN:
        pad = BNp - BN
        x2 = jnp.pad(x2, ((0, pad), (0, 0)))
        m2 = jnp.pad(m2, ((0, pad), (0, 0)))
        side = jnp.pad(side, ((0, 0), (0, pad), (0, 0)))

    # Patching (stride == patch_len): pure row-major HBM reshape, no data movement.
    xp = x2.reshape(BNp, S, patch_len)
    mp = m2.reshape(BNp, S, patch_len)

    rec_bn, emb_bn = pallas_moment_encoder(xp, mp, side, params,
                                           n_heads=n_heads, d_kv=d_kv, tb=tb)

    # PretrainHead flatten(start_dim=2, end_dim=3) already done in-kernel: rows are [S*P] = [T].
    dec = rec_bn[:BN].reshape(B, C, T)

    # Embeddings: mean over channels, then masked mean over patches.
    emb_rows = emb_bn[:BN].reshape(B, C, d_model)                         # per-row masked patch sums
    denom = jnp.maximum(am_patch.sum(axis=1, keepdims=True), 1.0)         # [B, 1]
    embeddings = emb_rows.mean(axis=1) / denom

    return {"reconstruction": dec, "embeddings": embeddings,
            "pretrain_mask": pretrain_mask, "input_mask": input_mask}


# ---------------------------------------------------------------------------

if __name__ == "__main__":
    B, C, T = 2, 4, 64
    patch_len, d_model, n_heads, d_kv, d_ff, n_layers = 8, 128, 4, 32, 256, 2
    n_patches = T // patch_len

    key = jax.random.PRNGKey(0)
    kx, kp = jax.random.split(key)
    x_enc = jax.random.normal(kx, (B, C, T), jnp.float32)
    # input_mask: all ones, except last patch of batch element 1 is padding.
    input_mask = jnp.ones((B, T), jnp.float32).at[1, -patch_len:].set(0.0)

    params = init_params(kp, patch_len=patch_len, d_model=d_model, n_heads=n_heads,
                         d_kv=d_kv, d_ff=d_ff, n_layers=n_layers, n_patches=n_patches)

    fwd = jax.jit(functools.partial(moment_reconstruction_forward,
                                    patch_len=patch_len, d_model=d_model,
                                    n_heads=n_heads, d_kv=d_kv))
    out = fwd(params, x_enc, input_mask)
    jax.block_until_ready(out)

    assert out["reconstruction"].shape == (B, C, T)
    assert out["embeddings"].shape == (B, d_model)
    assert bool(jnp.all(jnp.isfinite(out["reconstruction"])))
    assert bool(jnp.all(jnp.isfinite(out["embeddings"])))
    print("KERNEL_OK")
</pallas_src>

<mosaic_0001>
module attributes {stable_mosaic.version = 11 : i64} {
  func.func @_encoder_kernel(%arg0: i32, %arg1: i32, %arg2: memref<8x8x8xf32, #tpu.memory_space<vmem>>, %arg3: memref<8x8x8xf32, #tpu.memory_space<vmem>>, %arg4: memref<2x8x8xf32, #tpu.memory_space<vmem>>, %arg5: memref<8x128xbf16, #tpu.memory_space<vmem>>, %arg6: memref<1x128xf32, #tpu.memory_space<vmem>>, %arg7: memref<8x128xf32, #tpu.memory_space<vmem>>, %arg8: memref<1x1x128xf32, #tpu.memory_space<vmem>>, %arg9: memref<1x128x384xbf16, #tpu.memory_space<vmem>>, %arg10: memref<1x128x128xbf16, #tpu.memory_space<vmem>>, %arg11: memref<1x1x128xf32, #tpu.memory_space<vmem>>, %arg12: memref<1x128x512xbf16, #tpu.memory_space<vmem>>, %arg13: memref<1x256x128xbf16, #tpu.memory_space<vmem>>, %arg14: memref<1x128xf32, #tpu.memory_space<vmem>>, %arg15: memref<128x8xbf16, #tpu.memory_space<vmem>>, %arg16: memref<1x8xf32, #tpu.memory_space<vmem>>, %arg17: memref<8x64xf32, #tpu.memory_space<vmem>>, %arg18: memref<8x128xf32, #tpu.memory_space<vmem>>, %arg19: memref<64x128xf32, #tpu.memory_space<vmem>>, %arg20: memref<8x1xf32, #tpu.memory_space<vmem>>, %arg21: memref<8x1xf32, #tpu.memory_space<vmem>>) attributes {dimension_semantics = [#tpu.dimension_semantics<parallel>, #tpu.dimension_semantics<arbitrary>], iteration_bounds = array<i64: 1, 2>, scalar_prefetch = 0 : i64, scratch_operands = 3 : i64, tpu.core_type = #tpu.core_type<tc>, window_params = [{transform_indices = @transform_0, window_bounds = array<i64: 8, 8, 8>}, {transform_indices = @transform_1, window_bounds = array<i64: 8, 8, 8>}, {transform_indices = @transform_2, window_bounds = array<i64: 2, 8, 8>}, {pipeline_mode = #tpu.pipeline_mode<synchronous>, transform_indices = @transform_3, window_bounds = array<i64: 8, 128>}, {pipeline_mode = #tpu.pipeline_mode<synchronous>, transform_indices = @transform_4, window_bounds = array<i64: 1, 128>}, {pipeline_mode = #tpu.pipeline_mode<synchronous>, transform_indices = @transform_5, window_bounds = array<i64: 8, 128>}, {transform_indices = @transform_6, window_bounds = array<i64: 1, 1, 128>}, {transform_indices = @transform_7, window_bounds = array<i64: 1, 128, 384>}, {transform_indices = @transform_8, window_bounds = array<i64: 1, 128, 128>}, {transform_indices = @transform_9, window_bounds = array<i64: 1, 1, 128>}, {transform_indices = @transform_10, window_bounds = array<i64: 1, 128, 512>}, {transform_indices = @transform_11, window_bounds = array<i64: 1, 256, 128>}, {pipeline_mode = #tpu.pipeline_mode<synchronous>, transform_indices = @transform_12, window_bounds = array<i64: 1, 128>}, {pipeline_mode = #tpu.pipeline_mode<synchronous>, transform_indices = @transform_13, window_bounds = array<i64: 128, 8>}, {pipeline_mode = #tpu.pipeline_mode<synchronous>, transform_indices = @transform_14, window_bounds = array<i64: 1, 8>}, {transform_indices = @transform_15, window_bounds = array<i64: 8, 64>}, {transform_indices = @transform_16, window_bounds = array<i64: 8, 128>}]} {
    %c0 = arith.constant 0 : index
    %c0_0 = arith.constant 0 : index
    %c0_1 = arith.constant 0 : index
    %0 = vector.load %arg4[%c0, %c0_0, %c0_1] : memref<2x8x8xf32, #tpu.memory_space<vmem>>, vector<1x8x8xf32>
    %1 = vector.shape_cast %0 : vector<1x8x8xf32> to vector<8x8xf32>
    %c1 = arith.constant 1 : index
    %c0_2 = arith.constant 0 : index
    %c0_3 = arith.constant 0 : index
    %2 = vector.load %arg4[%c1, %c0_2, %c0_3] : memref<2x8x8xf32, #tpu.memory_space<vmem>>, vector<1x8x8xf32>
    %3 = vector.shape_cast %2 : vector<1x8x8xf32> to vector<8x8xf32>
    %c0_i32 = arith.constant 0 : i32
    %4 = arith.cmpi eq, %arg1, %c0_i32 : i32
    %5 = arith.extui %4 : i1 to i32
    %c0_i32_4 = arith.constant 0 : i32
    %6 = arith.cmpi ne, %5, %c0_i32_4 : i32
    scf.if %6 {
      %c0_64 = arith.constant 0 : index
      %c0_65 = arith.constant 0 : index
      %c0_66 = arith.constant 0 : index
      %184 = vector.load %arg2[%c0_64, %c0_65, %c0_66] : memref<8x8x8xf32, #tpu.memory_space<vmem>>, vector<8x8x8xf32>
      %c0_67 = arith.constant 0 : index
      %c0_68 = arith.constant 0 : index
      %c0_69 = arith.constant 0 : index
      %185 = vector.load %arg3[%c0_67, %c0_68, %c0_69] : memref<8x8x8xf32, #tpu.memory_space<vmem>>, vector<8x8x8xf32>
      %cst_70 = arith.constant dense<0.000000e+00> : vector<8x8xf32>
      %186 = vector.multi_reduction <add>, %185, %cst_70 [2] : vector<8x8x8xf32> to vector<8x8xf32>
      %187 = vector.shape_cast %186 : vector<8x8xf32> to vector<8x8x1xf32>
      %cst_71 = arith.constant dense<0.000000e+00> : vector<8x1xf32>
      %188 = vector.multi_reduction <add>, %187, %cst_71 [1] : vector<8x8x1xf32> to vector<8x1xf32>
      %189 = vector.shape_cast %188 : vector<8x1xf32> to vector<8x1x1xf32>
      %cst_72 = arith.constant 1.000000e+00 : f32
      %190 = vector.broadcast %cst_72 : f32 to vector<8x1x1xf32>
      %191 = arith.maximumf %189, %190 : vector<8x1x1xf32>
      %192 = arith.mulf %184, %185 : vector<8x8x8xf32>
      %cst_73 = arith.constant dense<0.000000e+00> : vector<8x8xf32>
      %193 = vector.multi_reduction <add>, %192, %cst_73 [2] : vector<8x8x8xf32> to vector<8x8xf32>
      %194 = vector.shape_cast %193 : vector<8x8xf32> to vector<8x8x1xf32>
      %cst_74 = arith.constant dense<0.000000e+00> : vector<8x1xf32>
      %195 = vector.multi_reduction <add>, %194, %cst_74 [1] : vector<8x8x1xf32> to vector<8x1xf32>
      %196 = vector.shape_cast %195 : vector<8x1xf32> to vector<8x1x1xf32>
      %197 = arith.divf %196, %191 : vector<8x1x1xf32>
      %198 = vector.broadcast %197 : vector<8x1x1xf32> to vector<8x8x8xf32>
      %199 = arith.subf %184, %198 : vector<8x8x8xf32>
      %200 = arith.mulf %199, %185 : vector<8x8x8xf32>
      %201 = arith.mulf %200, %200 : vector<8x8x8xf32>
      %cst_75 = arith.constant dense<0.000000e+00> : vector<8x8xf32>
      %202 = vector.multi_reduction <add>, %201, %cst_75 [2] : vector<8x8x8xf32> to vector<8x8xf32>
      %203 = vector.shape_cast %202 : vector<8x8xf32> to vector<8x8x1xf32>
      %cst_76 = arith.constant dense<0.000000e+00> : vector<8x1xf32>
      %204 = vector.multi_reduction <add>, %203, %cst_76 [1] : vector<8x8x1xf32> to vector<8x1xf32>
      %205 = vector.shape_cast %204 : vector<8x1xf32> to vector<8x1x1xf32>
      %206 = arith.divf %205, %191 : vector<8x1x1xf32>
      %cst_77 = arith.constant 9.99999974E-6 : f32
      %207 = vector.broadcast %cst_77 : f32 to vector<8x1x1xf32>
      %208 = arith.addf %206, %207 : vector<8x1x1xf32>
      %209 = math.sqrt %208 : vector<8x1x1xf32>
      %210 = vector.broadcast %197 : vector<8x1x1xf32> to vector<8x8x8xf32>
      %211 = arith.subf %184, %210 : vector<8x8x8xf32>
      %212 = vector.broadcast %209 : vector<8x1x1xf32> to vector<8x8x8xf32>
      %213 = arith.divf %211, %212 : vector<8x8x8xf32>
      %214 = tpu.weird %213 : vector<8x8x8xf32> -> vector<8x8x8xi1>
      %cst_78 = arith.constant dense<true> : vector<8x8x8xi1>
      %215 = arith.xori %214, %cst_78 : vector<8x8x8xi1>
      %cst_79 = arith.constant 0.000000e+00 : f32
      %216 = vector.broadcast %cst_79 : f32 to vector<8x8x8xf32>
      %217 = arith.select %215, %213, %216 : vector<8x8x8xi1>, vector<8x8x8xf32>
      %218 = vector.shape_cast %197 : vector<8x1x1xf32> to vector<8x1xf32>
      %c0_80 = arith.constant 0 : index
      %c0_81 = arith.constant 0 : index
      %219 = vector.load %arg20[%c0_80, %c0_81] : memref<8x1xf32, #tpu.memory_space<vmem>>, vector<8x1xf32>
      tpu.vector_store %arg20[%c0_80, %c0_81], %218 {strides = array<i32>} : memref<8x1xf32, #tpu.memory_space<vmem>>, vector<8x1xf32>,
      %220 = vector.shape_cast %209 : vector<8x1x1xf32> to vector<8x1xf32>
      %c0_82 = arith.constant 0 : index
      %c0_83 = arith.constant 0 : index
      %221 = vector.load %arg21[%c0_82, %c0_83] : memref<8x1xf32, #tpu.memory_space<vmem>>, vector<8x1xf32>
      tpu.vector_store %arg21[%c0_82, %c0_83], %220 {strides = array<i32>} : memref<8x1xf32, #tpu.memory_space<vmem>>, vector<8x1xf32>,
      %222 = vector.shape_cast %217 : vector<8x8x8xf32> to vector<64x8xf32>
      %223 = arith.truncf %222 : vector<64x8xf32> to vector<64x8xbf16>
      %c0_84 = arith.constant 0 : index
      %c0_85 = arith.constant 0 : index
      %224 = vector.load %arg5[%c0_84, %c0_85] : memref<8x128xbf16, #tpu.memory_space<vmem>>, vector<8x128xbf16>
      %cst_86 = arith.constant dense<0.000000e+00> : vector<64x128xf32>
      %225 = tpu.matmul %223, %224, %cst_86 {dimension_numbers = #tpu.dot_dimension_numbers<[1], [0], [0], [1], [0, 0, 1, 1], [], []>} : vector<64x8xbf16>, vector<8x128xbf16>, vector<64x128xf32> -> vector<64x128xf32>
      %226 = vector.shape_cast %1 : vector<8x8xf32> to vector<8x8x1xf32>
      %227 = vector.shape_cast %225 : vector<64x128xf32> to vector<8x8x128xf32>
      %228 = vector.broadcast %226 : vector<8x8x1xf32> to vector<8x8x128xf32>
      %229 = arith.mulf %228, %227 : vector<8x8x128xf32>
      %cst_87 = arith.constant 1.000000e+00 : f32
      %230 = vector.broadcast %cst_87 : f32 to vector<8x8x1xf32>
      %231 = arith.subf %230, %226 : vector<8x8x1xf32>
      %c0_88 = arith.constant 0 : index
      %c0_89 = arith.constant 0 : index
      %232 = vector.load %arg6[%c0_88, %c0_89] : memref<1x128xf32, #tpu.memory_space<vmem>>, vector<1x128xf32>
      %233 = vector.shape_cast %232 : vector<1x128xf32> to vector<1x1x128xf32>
      %234 = vector.broadcast %231 : vector<8x8x1xf32> to vector<8x8x128xf32>
      %235 = vector.broadcast %233 : vector<1x1x128xf32> to vector<8x8x128xf32>
      %236 = arith.mulf %234, %235 : vector<8x8x128xf32>
      %237 = arith.addf %229, %236 : vector<8x8x128xf32>
      %c0_90 = arith.constant 0 : index
      %c0_91 = arith.constant 0 : index
      %238 = vector.load %arg7[%c0_90, %c0_91] : memref<8x128xf32, #tpu.memory_space<vmem>>, vector<8x128xf32>
      %239 = vector.shape_cast %238 : vector<8x128xf32> to vector<1x8x128xf32>
      %240 = vector.broadcast %239 : vector<1x8x128xf32> to vector<8x8x128xf32>
      %241 = arith.addf %237, %240 : vector<8x8x128xf32>
      %242 = vector.shape_cast %241 : vector<8x8x128xf32> to vector<64x128xf32>
      %c0_92 = arith.constant 0 : index
      %c0_93 = arith.constant 0 : index
      %243 = vector.load %arg19[%c0_92, %c0_93] : memref<64x128xf32, #tpu.memory_space<vmem>>, vector<64x128xf32>
      tpu.vector_store %arg19[%c0_92, %c0_93], %242 {strides = array<i32>} : memref<64x128xf32, #tpu.memory_space<vmem>>, vector<64x128xf32>,
    } else {
    }
    %c0_5 = arith.constant 0 : index
    %c0_6 = arith.constant 0 : index
    %7 = vector.load %arg19[%c0_5, %c0_6] : memref<64x128xf32, #tpu.memory_space<vmem>>, vector<64x128xf32>
    %c0_7 = arith.constant 0 : index
    %c0_8 = arith.constant 0 : index
    %c0_9 = arith.constant 0 : index
    %8 = vector.load %arg8[%c0_7, %c0_8, %c0_9] : memref<1x1x128xf32, #tpu.memory_space<vmem>>, vector<1x1x128xf32>
    %9 = vector.shape_cast %8 : vector<1x1x128xf32> to vector<1x128xf32>
    %10 = arith.mulf %7, %7 : vector<64x128xf32>
    %cst = arith.constant dense<0.000000e+00> : vector<64xf32>
    %11 = vector.multi_reduction <add>, %10, %cst [1] : vector<64x128xf32> to vector<64xf32>
    %12 = vector.shape_cast %11 : vector<64xf32> to vector<64x1xf32>
    %cst_10 = arith.constant 1.280000e+02 : f32
    %13 = vector.broadcast %cst_10 : f32 to vector<64x1xf32>
    %14 = arith.divf %12, %13 : vector<64x1xf32>
    %cst_11 = arith.constant 9.99999997E-7 : f32
    %15 = vector.broadcast %cst_11 : f32 to vector<64x1xf32>
    %16 = arith.addf %14, %15 : vector<64x1xf32>
    %17 = math.rsqrt %16 : vector<64x1xf32>
    %18 = vector.broadcast %17 : vector<64x1xf32> to vector<64x128xf32>
    %19 = arith.mulf %7, %18 : vector<64x128xf32>
    %20 = vector.broadcast %9 : vector<1x128xf32> to vector<64x128xf32>
    %21 = arith.mulf %19, %20 : vector<64x128xf32>
    %22 = arith.truncf %21 : vector<64x128xf32> to vector<64x128xbf16>
    %c0_12 = arith.constant 0 : index
    %c0_13 = arith.constant 0 : index
    %c0_14 = arith.constant 0 : index
    %23 = vector.load %arg9[%c0_12, %c0_13, %c0_14] : memref<1x128x384xbf16, #tpu.memory_space<vmem>>, vector<1x128x384xbf16>
    %24 = vector.shape_cast %23 : vector<1x128x384xbf16> to vector<128x384xbf16>
    %cst_15 = arith.constant dense<0.000000e+00> : vector<64x384xf32>
    %25 = tpu.matmul %22, %24, %cst_15 {dimension_numbers = #tpu.dot_dimension_numbers<[1], [0], [0], [1], [0, 0, 1, 1], [], []>} : vector<64x128xbf16>, vector<128x384xbf16>, vector<64x384xf32> -> vector<64x384xf32>
    %26 = arith.truncf %25 : vector<64x384xf32> to vector<64x384xbf16>
    %cst_16 = arith.constant 5.000000e-01 : f32
    %27 = vector.broadcast %cst_16 : f32 to vector<8x8xf32>
    %28 = arith.cmpf ogt, %3, %27 : vector<8x8xf32>
    %cst_17 = arith.constant 0.000000e+00 : f32
    %cst_18 = arith.constant -1.000000e+09 : f32
    %29 = vector.broadcast %cst_17 : f32 to vector<8x8xf32>
    %30 = vector.broadcast %cst_18 : f32 to vector<8x8xf32>
    %31 = arith.select %28, %29, %30 : vector<8x8xi1>, vector<8x8xf32>
    %32 = vector.shape_cast %31 : vector<8x8xf32> to vector<8x1x8xf32>
    %c0_19 = arith.constant 0 : index
    %c0_20 = arith.constant 0 : index
    %c0_21 = arith.constant 0 : index
    %33 = vector.load %arg10[%c0_19, %c0_20, %c0_21] : memref<1x128x128xbf16, #tpu.memory_space<vmem>>, vector<1x128x128xbf16>
    %34 = vector.shape_cast %33 : vector<1x128x128xbf16> to vector<128x128xbf16>
    %cst_22 = arith.constant 0.000000e+00 : f32
    %35 = vector.broadcast %cst_22 : f32 to vector<64x128xf32>
    %36 = vector.extract_strided_slice %26 {offsets = [0, 0], sizes = [64, 32], strides = [1, 1]} : vector<64x384xbf16> to vector<64x32xbf16>
    %37 = vector.shape_cast %36 : vector<64x32xbf16> to vector<8x8x32xbf16>
    %38 = vector.extract_strided_slice %26 {offsets = [0, 128], sizes = [64, 32], strides = [1, 1]} : vector<64x384xbf16> to vector<64x32xbf16>
    %39 = vector.shape_cast %38 : vector<64x32xbf16> to vector<8x8x32xbf16>
    %40 = vector.extract_strided_slice %26 {offsets = [0, 256], sizes = [64, 32], strides = [1, 1]} : vector<64x384xbf16> to vector<64x32xbf16>
    %41 = vector.shape_cast %40 : vector<64x32xbf16> to vector<8x8x32xbf16>
    "tpu.trace_start"() <{level = 10 : i32, message = "bqd,bkd->bqk"}> : () -> ()
    %cst_23 = arith.constant dense<0.000000e+00> : vector<8x8x8xf32>
    %42 = tpu.matmul %37, %39, %cst_23 {dimension_numbers = #tpu.dot_dimension_numbers<[2], [2], [1], [1], [0, 0, 0, 1, 1, 1], [0], [0]>} : vector<8x8x32xbf16>, vector<8x8x32xbf16>, vector<8x8x8xf32> -> vector<8x8x8xf32>
    "tpu.trace_stop"() : () -> ()
    %43 = vector.broadcast %32 : vector<8x1x8xf32> to vector<8x8x8xf32>
    %44 = arith.addf %42, %43 : vector<8x8x8xf32>
    %cst_24 = arith.constant dense<0xFF800000> : vector<8x8xf32>
    %45 = vector.multi_reduction <maximumf>, %44, %cst_24 [2] : vector<8x8x8xf32> to vector<8x8xf32>
    %46 = vector.shape_cast %45 : vector<8x8xf32> to vector<8x8x1xf32>
    %47 = vector.broadcast %46 : vector<8x8x1xf32> to vector<8x8x8xf32>
    %48 = arith.subf %44, %47 : vector<8x8x8xf32>
    %49 = math.exp %48 : vector<8x8x8xf32>
    %cst_25 = arith.constant dense<0.000000e+00> : vector<8x8xf32>
    %50 = vector.multi_reduction <add>, %49, %cst_25 [2] : vector<8x8x8xf32> to vector<8x8xf32>
    %51 = vector.shape_cast %50 : vector<8x8xf32> to vector<8x8x1xf32>
    %52 = tpu.reciprocal %51 {approx = true} : vector<8x8x1xf32> -> vector<8x8x1xf32>
    %53 = vector.broadcast %52 : vector<8x8x1xf32> to vector<8x8x8xf32>
    %54 = arith.mulf %49, %53 : vector<8x8x8xf32>
    %55 = arith.truncf %54 : vector<8x8x8xf32> to vector<8x8x8xbf16>
    "tpu.trace_start"() <{level = 10 : i32, message = "bqk,bkd->bqd"}> : () -> ()
    %cst_26 = arith.constant dense<0.000000e+00> : vector<8x8x32xf32>
    %56 = tpu.matmul %55, %41, %cst_26 {dimension_numbers = #tpu.dot_dimension_numbers<[2], [1], [1], [2], [0, 0, 0, 1, 1, 2], [0], [0]>} : vector<8x8x8xbf16>, vector<8x8x32xbf16>, vector<8x8x32xf32> -> vector<8x8x32xf32>
    "tpu.trace_stop"() : () -> ()
    %57 = vector.shape_cast %56 : vector<8x8x32xf32> to vector<64x32xf32>
    %58 = arith.truncf %57 : vector<64x32xf32> to vector<64x32xbf16>
    %59 = vector.extract_strided_slice %34 {offsets = [0, 0], sizes = [32, 128], strides = [1, 1]} : vector<128x128xbf16> to vector<32x128xbf16>
    %cst_27 = arith.constant dense<0.000000e+00> : vector<64x128xf32>
    %60 = tpu.matmul %58, %59, %cst_27 {dimension_numbers = #tpu.dot_dimension_numbers<[1], [0], [0], [1], [0, 0, 1, 1], [], []>} : vector<64x32xbf16>, vector<32x128xbf16>, vector<64x128xf32> -> vector<64x128xf32>
    %61 = arith.addf %35, %60 : vector<64x128xf32>
    %62 = vector.extract_strided_slice %26 {offsets = [0, 32], sizes = [64, 32], strides = [1, 1]} : vector<64x384xbf16> to vector<64x32xbf16>
    %63 = vector.shape_cast %62 : vector<64x32xbf16> to vector<8x8x32xbf16>
    %64 = vector.extract_strided_slice %26 {offsets = [0, 160], sizes = [64, 32], strides = [1, 1]} : vector<64x384xbf16> to vector<64x32xbf16>
    %65 = vector.shape_cast %64 : vector<64x32xbf16> to vector<8x8x32xbf16>
    %66 = vector.extract_strided_slice %26 {offsets = [0, 288], sizes = [64, 32], strides = [1, 1]} : vector<64x384xbf16> to vector<64x32xbf16>
    %67 = vector.shape_cast %66 : vector<64x32xbf16> to vector<8x8x32xbf16>
    "tpu.trace_start"() <{level = 10 : i32, message = "bqd,bkd->bqk"}> : () -> ()
    %cst_28 = arith.constant dense<0.000000e+00> : vector<8x8x8xf32>
    %68 = tpu.matmul %63, %65, %cst_28 {dimension_numbers = #tpu.dot_dimension_numbers<[2], [2], [1], [1], [0, 0, 0, 1, 1, 1], [0], [0]>} : vector<8x8x32xbf16>, vector<8x8x32xbf16>, vector<8x8x8xf32> -> vector<8x8x8xf32>
    "tpu.trace_stop"() : () -> ()
    %69 = vector.broadcast %32 : vector<8x1x8xf32> to vector<8x8x8xf32>
    %70 = arith.addf %68, %69 : vector<8x8x8xf32>
    %cst_29 = arith.constant dense<0xFF800000> : vector<8x8xf32>
    %71 = vector.multi_reduction <maximumf>, %70, %cst_29 [2] : vector<8x8x8xf32> to vector<8x8xf32>
    %72 = vector.shape_cast %71 : vector<8x8xf32> to vector<8x8x1xf32>
    %73 = vector.broadcast %72 : vector<8x8x1xf32> to vector<8x8x8xf32>
    %74 = arith.subf %70, %73 : vector<8x8x8xf32>
    %75 = math.exp %74 : vector<8x8x8xf32>
    %cst_30 = arith.constant dense<0.000000e+00> : vector<8x8xf32>
    %76 = vector.multi_reduction <add>, %75, %cst_30 [2] : vector<8x8x8xf32> to vector<8x8xf32>
    %77 = vector.shape_cast %76 : vector<8x8xf32> to vector<8x8x1xf32>
    %78 = tpu.reciprocal %77 {approx = true} : vector<8x8x1xf32> -> vector<8x8x1xf32>
    %79 = vector.broadcast %78 : vector<8x8x1xf32> to vector<8x8x8xf32>
    %80 = arith.mulf %75, %79 : vector<8x8x8xf32>
    %81 = arith.truncf %80 : vector<8x8x8xf32> to vector<8x8x8xbf16>
    "tpu.trace_start"() <{level = 10 : i32, message = "bqk,bkd->bqd"}> : () -> ()
    %cst_31 = arith.constant dense<0.000000e+00> : vector<8x8x32xf32>
    %82 = tpu.matmul %81, %67, %cst_31 {dimension_numbers = #tpu.dot_dimension_numbers<[2], [1], [1], [2], [0, 0, 0, 1, 1, 2], [0], [0]>} : vector<8x8x8xbf16>, vector<8x8x32xbf16>, vector<8x8x32xf32> -> vector<8x8x32xf32>
    "tpu.trace_stop"() : () -> ()
    %83 = vector.shape_cast %82 : vector<8x8x32xf32> to vector<64x32xf32>
    %84 = arith.truncf %83 : vector<64x32xf32> to vector<64x32xbf16>
    %85 = vector.extract_strided_slice %34 {offsets = [32, 0], sizes = [32, 128], strides = [1, 1]} : vector<128x128xbf16> to vector<32x128xbf16>
    %cst_32 = arith.constant dense<0.000000e+00> : vector<64x128xf32>
    %86 = tpu.matmul %84, %85, %cst_32 {dimension_numbers = #tpu.dot_dimension_numbers<[1], [0], [0], [1], [0, 0, 1, 1], [], []>} : vector<64x32xbf16>, vector<32x128xbf16>, vector<64x128xf32> -> vector<64x128xf32>
    %87 = arith.addf %61, %86 : vector<64x128xf32>
    %88 = vector.extract_strided_slice %26 {offsets = [0, 64], sizes = [64, 32], strides = [1, 1]} : vector<64x384xbf16> to vector<64x32xbf16>
    %89 = vector.shape_cast %88 : vector<64x32xbf16> to vector<8x8x32xbf16>
    %90 = vector.extract_strided_slice %26 {offsets = [0, 192], sizes = [64, 32], strides = [1, 1]} : vector<64x384xbf16> to vector<64x32xbf16>
    %91 = vector.shape_cast %90 : vector<64x32xbf16> to vector<8x8x32xbf16>
    %92 = vector.extract_strided_slice %26 {offsets = [0, 320], sizes = [64, 32], strides = [1, 1]} : vector<64x384xbf16> to vector<64x32xbf16>
    %93 = vector.shape_cast %92 : vector<64x32xbf16> to vector<8x8x32xbf16>
    "tpu.trace_start"() <{level = 10 : i32, message = "bqd,bkd->bqk"}> : () -> ()
    %cst_33 = arith.constant dense<0.000000e+00> : vector<8x8x8xf32>
    %94 = tpu.matmul %89, %91, %cst_33 {dimension_numbers = #tpu.dot_dimension_numbers<[2], [2], [1], [1], [0, 0, 0, 1, 1, 1], [0], [0]>} : vector<8x8x32xbf16>, vector<8x8x32xbf16>, vector<8x8x8xf32> -> vector<8x8x8xf32>
    "tpu.trace_stop"() : () -> ()
    %95 = vector.broadcast %32 : vector<8x1x8xf32> to vector<8x8x8xf32>
    %96 = arith.addf %94, %95 : vector<8x8x8xf32>
    %cst_34 = arith.constant dense<0xFF800000> : vector<8x8xf32>
    %97 = vector.multi_reduction <maximumf>, %96, %cst_34 [2] : vector<8x8x8xf32> to vector<8x8xf32>
    %98 = vector.shape_cast %97 : vector<8x8xf32> to vector<8x8x1xf32>
    %99 = vector.broadcast %98 : vector<8x8x1xf32> to vector<8x8x8xf32>
    %100 = arith.subf %96, %99 : vector<8x8x8xf32>
    %101 = math.exp %100 : vector<8x8x8xf32>
    %cst_35 = arith.constant dense<0.000000e+00> : vector<8x8xf32>
    %102 = vector.multi_reduction <add>, %101, %cst_35 [2] : vector<8x8x8xf32> to vector<8x8xf32>
    %103 = vector.shape_cast %102 : vector<8x8xf32> to vector<8x8x1xf32>
    %104 = tpu.reciprocal %103 {approx = true} : vector<8x8x1xf32> -> vector<8x8x1xf32>
    %105 = vector.broadcast %104 : vector<8x8x1xf32> to vector<8x8x8xf32>
    %106 = arith.mulf %101, %105 : vector<8x8x8xf32>
    %107 = arith.truncf %106 : vector<8x8x8xf32> to vector<8x8x8xbf16>
    "tpu.trace_start"() <{level = 10 : i32, message = "bqk,bkd->bqd"}> : () -> ()
    %cst_36 = arith.constant dense<0.000000e+00> : vector<8x8x32xf32>
    %108 = tpu.matmul %107, %93, %cst_36 {dimension_numbers = #tpu.dot_dimension_numbers<[2], [1], [1], [2], [0, 0, 0, 1, 1, 2], [0], [0]>} : vector<8x8x8xbf16>, vector<8x8x32xbf16>, vector<8x8x32xf32> -> vector<8x8x32xf32>
    "tpu.trace_stop"() : () -> ()
    %109 = vector.shape_cast %108 : vector<8x8x32xf32> to vector<64x32xf32>
    %110 = arith.truncf %109 : vector<64x32xf32> to vector<64x32xbf16>
    %111 = vector.extract_strided_slice %34 {offsets = [64, 0], sizes = [32, 128], strides = [1, 1]} : vector<128x128xbf16> to vector<32x128xbf16>
    %cst_37 = arith.constant dense<0.000000e+00> : vector<64x128xf32>
    %112 = tpu.matmul %110, %111, %cst_37 {dimension_numbers = #tpu.dot_dimension_numbers<[1], [0], [0], [1], [0, 0, 1, 1], [], []>} : vector<64x32xbf16>, vector<32x128xbf16>, vector<64x128xf32> -> vector<64x128xf32>
    %113 = arith.addf %87, %112 : vector<64x128xf32>
    %114 = vector.extract_strided_slice %26 {offsets = [0, 96], sizes = [64, 32], strides = [1, 1]} : vector<64x384xbf16> to vector<64x32xbf16>
    %115 = vector.shape_cast %114 : vector<64x32xbf16> to vector<8x8x32xbf16>
    %116 = vector.extract_strided_slice %26 {offsets = [0, 224], sizes = [64, 32], strides = [1, 1]} : vector<64x384xbf16> to vector<64x32xbf16>
    %117 = vector.shape_cast %116 : vector<64x32xbf16> to vector<8x8x32xbf16>
    %118 = vector.extract_strided_slice %26 {offsets = [0, 352], sizes = [64, 32], strides = [1, 1]} : vector<64x384xbf16> to vector<64x32xbf16>
    %119 = vector.shape_cast %118 : vector<64x32xbf16> to vector<8x8x32xbf16>
    "tpu.trace_start"() <{level = 10 : i32, message = "bqd,bkd->bqk"}> : () -> ()
    %cst_38 = arith.constant dense<0.000000e+00> : vector<8x8x8xf32>
    %120 = tpu.matmul %115, %117, %cst_38 {dimension_numbers = #tpu.dot_dimension_numbers<[2], [2], [1], [1], [0, 0, 0, 1, 1, 1], [0], [0]>} : vector<8x8x32xbf16>, vector<8x8x32xbf16>, vector<8x8x8xf32> -> vector<8x8x8xf32>
    "tpu.trace_stop"() : () -> ()
    %121 = vector.broadcast %32 : vector<8x1x8xf32> to vector<8x8x8xf32>
    %122 = arith.addf %120, %121 : vector<8x8x8xf32>
    %cst_39 = arith.constant dense<0xFF800000> : vector<8x8xf32>
    %123 = vector.multi_reduction <maximumf>, %122, %cst_39 [2] : vector<8x8x8xf32> to vector<8x8xf32>
    %124 = vector.shape_cast %123 : vector<8x8xf32> to vector<8x8x1xf32>
    %125 = vector.broadcast %124 : vector<8x8x1xf32> to vector<8x8x8xf32>
    %126 = arith.subf %122, %125 : vector<8x8x8xf32>
    %127 = math.exp %126 : vector<8x8x8xf32>
    %cst_40 = arith.constant dense<0.000000e+00> : vector<8x8xf32>
    %128 = vector.multi_reduction <add>, %127, %cst_40 [2] : vector<8x8x8xf32> to vector<8x8xf32>
    %129 = vector.shape_cast %128 : vector<8x8xf32> to vector<8x8x1xf32>
    %130 = tpu.reciprocal %129 {approx = true} : vector<8x8x1xf32> -> vector<8x8x1xf32>
    %131 = vector.broadcast %130 : vector<8x8x1xf32> to vector<8x8x8xf32>
    %132 = arith.mulf %127, %131 : vector<8x8x8xf32>
    %133 = arith.truncf %132 : vector<8x8x8xf32> to vector<8x8x8xbf16>
    "tpu.trace_start"() <{level = 10 : i32, message = "bqk,bkd->bqd"}> : () -> ()
    %cst_41 = arith.constant dense<0.000000e+00> : vector<8x8x32xf32>
    %134 = tpu.matmul %133, %119, %cst_41 {dimension_numbers = #tpu.dot_dimension_numbers<[2], [1], [1], [2], [0, 0, 0, 1, 1, 2], [0], [0]>} : vector<8x8x8xbf16>, vector<8x8x32xbf16>, vector<8x8x32xf32> -> vector<8x8x32xf32>
    "tpu.trace_stop"() : () -> ()
    %135 = vector.shape_cast %134 : vector<8x8x32xf32> to vector<64x32xf32>
    %136 = arith.truncf %135 : vector<64x32xf32> to vector<64x32xbf16>
    %137 = vector.extract_strided_slice %34 {offsets = [96, 0], sizes = [32, 128], strides = [1, 1]} : vector<128x128xbf16> to vector<32x128xbf16>
    %cst_42 = arith.constant dense<0.000000e+00> : vector<64x128xf32>
    %138 = tpu.matmul %136, %137, %cst_42 {dimension_numbers = #tpu.dot_dimension_numbers<[1], [0], [0], [1], [0, 0, 1, 1], [], []>} : vector<64x32xbf16>, vector<32x128xbf16>, vector<64x128xf32> -> vector<64x128xf32>
    %139 = arith.addf %113, %138 : vector<64x128xf32>
    %140 = arith.addf %7, %139 : vector<64x128xf32>
    %c0_43 = arith.constant 0 : index
    %c0_44 = arith.constant 0 : index
    %c0_45 = arith.constant 0 : index
    %141 = vector.load %arg11[%c0_43, %c0_44, %c0_45] : memref<1x1x128xf32, #tpu.memory_space<vmem>>, vector<1x1x128xf32>
    %142 = vector.shape_cast %141 : vector<1x1x128xf32> to vector<1x128xf32>
    %143 = arith.mulf %140, %140 : vector<64x128xf32>
    %cst_46 = arith.constant dense<0.000000e+00> : vector<64xf32>
    %144 = vector.multi_reduction <add>, %143, %cst_46 [1] : vector<64x128xf32> to vector<64xf32>
    %145 = vector.shape_cast %144 : vector<64xf32> to vector<64x1xf32>
    %cst_47 = arith.constant 1.280000e+02 : f32
    %146 = vector.broadcast %cst_47 : f32 to vector<64x1xf32>
    %147 = arith.divf %145, %146 : vector<64x1xf32>
    %cst_48 = arith.constant 9.99999997E-7 : f32
    %148 = vector.broadcast %cst_48 : f32 to vector<64x1xf32>
    %149 = arith.addf %147, %148 : vector<64x1xf32>
    %150 = math.rsqrt %149 : vector<64x1xf32>
    %151 = vector.broadcast %150 : vector<64x1xf32> to vector<64x128xf32>
    %152 = arith.mulf %140, %151 : vector<64x128xf32>
    %153 = vector.broadcast %142 : vector<1x128xf32> to vector<64x128xf32>
    %154 = arith.mulf %152, %153 : vector<64x128xf32>
    %155 = arith.truncf %154 : vector<64x128xf32> to vector<64x128xbf16>
    %c0_49 = arith.constant 0 : index
    %c0_50 = arith.constant 0 : index
    %c0_51 = arith.constant 0 : index
    %156 = vector.load %arg12[%c0_49, %c0_50, %c0_51] : memref<1x128x512xbf16, #tpu.memory_space<vmem>>, vector<1x128x512xbf16>
    %157 = vector.shape_cast %156 : vector<1x128x512xbf16> to vector<128x512xbf16>
    %cst_52 = arith.constant dense<0.000000e+00> : vector<64x512xf32>
    %158 = tpu.matmul %155, %157, %cst_52 {dimension_numbers = #tpu.dot_dimension_numbers<[1], [0], [0], [1], [0, 0, 1, 1], [], []>} : vector<64x128xbf16>, vector<128x512xbf16>, vector<64x512xf32> -> vector<64x512xf32>
    %159 = arith.truncf %158 : vector<64x512xf32> to vector<64x512xbf16>
    %160 = vector.extract_strided_slice %159 {offsets = [0, 0], sizes = [64, 256], strides = [1, 1]} : vector<64x512xbf16> to vector<64x256xbf16>
    %161 = arith.mulf %160, %160 : vector<64x256xbf16>
    %162 = arith.mulf %160, %161 : vector<64x256xbf16>
    %cst_53 = arith.constant 4.467770e-02 : bf16
    %163 = vector.broadcast %cst_53 : bf16 to vector<64x256xbf16>
    %164 = arith.mulf %163, %162 : vector<64x256xbf16>
    %165 = arith.addf %160, %164 : vector<64x256xbf16>
    %cst_54 = arith.constant 7.968750e-01 : bf16
    %166 = vector.broadcast %cst_54 : bf16 to vector<64x256xbf16>
    %167 = arith.mulf %166, %165 : vector<64x256xbf16>
    %168 = math.tanh %167 : vector<64x256xbf16>
    %cst_55 = arith.constant 1.000000e+00 : bf16
    %169 = vector.broadcast %cst_55 : bf16 to vector<64x256xbf16>
    %170 = arith.addf %169, %168 : vector<64x256xbf16>
    %cst_56 = arith.constant 5.000000e-01 : bf16
    %171 = vector.broadcast %cst_56 : bf16 to vector<64x256xbf16>
    %172 = arith.mulf %171, %170 : vector<64x256xbf16>
    %173 = arith.mulf %160, %172 : vector<64x256xbf16>
    %174 = vector.extract_strided_slice %159 {offsets = [0, 256], sizes = [64, 256], strides = [1, 1]} : vector<64x512xbf16> to vector<64x256xbf16>
    %175 = arith.mulf %173, %174 : vector<64x256xbf16>
    %c0_57 = arith.constant 0 : index
    %c0_58 = arith.constant 0 : index
    %c0_59 = arith.constant 0 : index
    %176 = vector.load %arg13[%c0_57, %c0_58, %c0_59] : memref<1x256x128xbf16, #tpu.memory_space<vmem>>, vector<1x256x128xbf16>
    %177 = vector.shape_cast %176 : vector<1x256x128xbf16> to vector<256x128xbf16>
    %cst_60 = arith.constant dense<0.000000e+00> : vector<64x128xf32>
    %178 = tpu.matmul %175, %177, %cst_60 {dimension_numbers = #tpu.dot_dimension_numbers<[1], [0], [0], [1], [0, 0, 1, 1], [], []>} : vector<64x256xbf16>, vector<256x128xbf16>, vector<64x128xf32> -> vector<64x128xf32>
    %179 = arith.addf %140, %178 : vector<64x128xf32>
    %c0_61 = arith.constant 0 : index
    %c0_62 = arith.constant 0 : index
    %180 = vector.load %arg19[%c0_61, %c0_62] : memref<64x128xf32, #tpu.memory_space<vmem>>, vector<64x128xf32>
    tpu.vector_store %arg19[%c0_61, %c0_62], %179 {strides = array<i32>} : memref<64x128xf32, #tpu.memory_space<vmem>>, vector<64x128xf32>,
    %c1_i32 = arith.constant 1 : i32
    %181 = arith.cmpi eq, %arg1, %c1_i32 : i32
    %182 = arith.extui %181 : i1 to i32
    %c0_i32_63 = arith.constant 0 : i32
    %183 = arith.cmpi ne, %182, %c0_i32_63 : i32
    scf.if %183 {
      %c0_64 = arith.constant 0 : index
      %c0_65 = arith.constant 0 : index
      %184 = vector.load %arg14[%c0_64, %c0_65] : memref<1x128xf32, #tpu.memory_space<vmem>>, vector<1x128xf32>
      %185 = arith.mulf %179, %179 : vector<64x128xf32>
      %cst_66 = arith.constant dense<0.000000e+00> : vector<64xf32>
      %186 = vector.multi_reduction <add>, %185, %cst_66 [1] : vector<64x128xf32> to vector<64xf32>
      %187 = vector.shape_cast %186 : vector<64xf32> to vector<64x1xf32>
      %cst_67 = arith.constant 1.280000e+02 : f32
      %188 = vector.broadcast %cst_67 : f32 to vector<64x1xf32>
      %189 = arith.divf %187, %188 : vector<64x1xf32>
      %cst_68 = arith.constant 9.99999997E-7 : f32
      %190 = vector.broadcast %cst_68 : f32 to vector<64x1xf32>
      %191 = arith.addf %189, %190 : vector<64x1xf32>
      %192 = math.rsqrt %191 : vector<64x1xf32>
      %193 = vector.broadcast %192 : vector<64x1xf32> to vector<64x128xf32>
      %194 = arith.mulf %179, %193 : vector<64x128xf32>
      %195 = vector.broadcast %184 : vector<1x128xf32> to vector<64x128xf32>
      %196 = arith.mulf %194, %195 : vector<64x128xf32>
      %197 = vector.shape_cast %196 : vector<64x128xf32> to vector<8x8x128xf32>
      %198 = vector.shape_cast %3 : vector<8x8xf32> to vector<8x8x1xf32>
      %199 = vector.broadcast %198 : vector<8x8x1xf32> to vector<8x8x128xf32>
      %200 = arith.mulf %197, %199 : vector<8x8x128xf32>
      %cst_69 = arith.constant dense<0.000000e+00> : vector<8x128xf32>
      %201 = vector.multi_reduction <add>, %200, %cst_69 [1] : vector<8x8x128xf32> to vector<8x128xf32>
      %c0_70 = arith.constant 0 : index
      %c0_71 = arith.constant 0 : index
      %202 = vector.load %arg18[%c0_70, %c0_71] : memref<8x128xf32, #tpu.memory_space<vmem>>, vector<8x128xf32>
      tpu.vector_store %arg18[%c0_70, %c0_71], %201 {strides = array<i32>} : memref<8x128xf32, #tpu.memory_space<vmem>>, vector<8x128xf32>,
      %203 = arith.truncf %196 : vector<64x128xf32> to vector<64x128xbf16>
      %c0_72 = arith.constant 0 : index
      %c0_73 = arith.constant 0 : index
      %204 = vector.load %arg15[%c0_72, %c0_73] : memref<128x8xbf16, #tpu.memory_space<vmem>>, vector<128x8xbf16>
      %cst_74 = arith.constant dense<0.000000e+00> : vector<64x8xf32>
      %205 = tpu.matmul %203, %204, %cst_74 {dimension_numbers = #tpu.dot_dimension_numbers<[1], [0], [0], [1], [0, 0, 1, 1], [], []>} : vector<64x128xbf16>, vector<128x8xbf16>, vector<64x8xf32> -> vector<64x8xf32>
      %c0_75 = arith.constant 0 : index
      %c0_76 = arith.constant 0 : index
      %206 = vector.load %arg16[%c0_75, %c0_76] : memref<1x8xf32, #tpu.memory_space<vmem>>, vector<1x8xf32>
      %207 = vector.broadcast %206 : vector<1x8xf32> to vector<64x8xf32>
      %208 = arith.addf %205, %207 : vector<64x8xf32>
      %209 = vector.shape_cast %208 : vector<64x8xf32> to vector<8x8x8xf32>
      %c0_77 = arith.constant 0 : index
      %c0_78 = arith.constant 0 : index
      %210 = vector.load %arg21[%c0_77, %c0_78] : memref<8x1xf32, #tpu.memory_space<vmem>>, vector<8x1xf32>
      %211 = vector.shape_cast %210 : vector<8x1xf32> to vector<8x1x1xf32>
      %212 = vector.broadcast %211 : vector<8x1x1xf32> to vector<8x8x8xf32>
      %213 = arith.mulf %209, %212 : vector<8x8x8xf32>
      %c0_79 = arith.constant 0 : index
      %c0_80 = arith.constant 0 : index
      %214 = vector.load %arg20[%c0_79, %c0_80] : memref<8x1xf32, #tpu.memory_space<vmem>>, vector<8x1xf32>
      %215 = vector.shape_cast %214 : vector<8x1xf32> to vector<8x1x1xf32>
      %216 = vector.broadcast %215 : vector<8x1x1xf32> to vector<8x8x8xf32>
      %217 = arith.addf %213, %216 : vector<8x8x8xf32>
      %218 = vector.shape_cast %217 : vector<8x8x8xf32> to vector<8x64xf32>
      %c0_81 = arith.constant 0 : index
      %c0_82 = arith.constant 0 : index
      %219 = vector.load %arg17[%c0_81, %c0_82] : memref<8x64xf32, #tpu.memory_space<vmem>>, vector<8x64xf32>
      tpu.vector_store %arg17[%c0_81, %c0_82], %218 {strides = array<i32>} : memref<8x64xf32, #tpu.memory_space<vmem>>, vector<8x64xf32>,
    } else {
    }
    return
  }
  func.func @transform_0(%arg0: i32, %arg1: i32) -> (i32, i32, i32) {
    %c0_i32 = arith.constant 0 : i32
    %c0_i32_0 = arith.constant 0 : i32
    %c0_i32_1 = arith.constant 0 : i32
    return %arg0, %c0_i32, %c0_i32_0 : i32, i32, i32
  }
  func.func @transform_1(%arg0: i32, %arg1: i32) -> (i32, i32, i32) {
    %c0_i32 = arith.constant 0 : i32
    %c0_i32_0 = arith.constant 0 : i32
    %c0_i32_1 = arith.constant 0 : i32
    return %arg0, %c0_i32, %c0_i32_0 : i32, i32, i32
  }
  func.func @transform_2(%arg0: i32, %arg1: i32) -> (i32, i32, i32) {
    %c0_i32 = arith.constant 0 : i32
    %c0_i32_0 = arith.constant 0 : i32
    %c0_i32_1 = arith.constant 0 : i32
    return %c0_i32, %arg0, %c0_i32_0 : i32, i32, i32
  }
  func.func @transform_3(%arg0: i32, %arg1: i32) -> (i32, i32) {
    %c0_i32 = arith.constant 0 : i32
    %c0_i32_0 = arith.constant 0 : i32
    %c0_i32_1 = arith.constant 0 : i32
    return %c0_i32, %c0_i32_0 : i32, i32
  }
  func.func @transform_4(%arg0: i32, %arg1: i32) -> (i32, i32) {
    %c0_i32 = arith.constant 0 : i32
    %c0_i32_0 = arith.constant 0 : i32
    %c0_i32_1 = arith.constant 0 : i32
    return %c0_i32, %c0_i32_0 : i32, i32
  }
  func.func @transform_5(%arg0: i32, %arg1: i32) -> (i32, i32) {
    %c0_i32 = arith.constant 0 : i32
    %c0_i32_0 = arith.constant 0 : i32
    %c0_i32_1 = arith.constant 0 : i32
    return %c0_i32, %c0_i32_0 : i32, i32
  }
  func.func @transform_6(%arg0: i32, %arg1: i32) -> (i32, i32, i32) {
    %c0_i32 = arith.constant 0 : i32
    %c0_i32_0 = arith.constant 0 : i32
    %c0_i32_1 = arith.constant 0 : i32
    return %arg1, %c0_i32, %c0_i32_0 : i32, i32, i32
  }
  func.func @transform_7(%arg0: i32, %arg1: i32) -> (i32, i32, i32) {
    %c0_i32 = arith.constant 0 : i32
    %c0_i32_0 = arith.constant 0 : i32
    %c0_i32_1 = arith.constant 0 : i32
    return %arg1, %c0_i32, %c0_i32_0 : i32, i32, i32
  }
  func.func @transform_8(%arg0: i32, %arg1: i32) -> (i32, i32, i32) {
    %c0_i32 = arith.constant 0 : i32
    %c0_i32_0 = arith.constant 0 : i32
    %c0_i32_1 = arith.constant 0 : i32
    return %arg1, %c0_i32, %c0_i32_0 : i32, i32, i32
  }
  func.func @transform_9(%arg0: i32, %arg1: i32) -> (i32, i32, i32) {
    %c0_i32 = arith.constant 0 : i32
    %c0_i32_0 = arith.constant 0 : i32
    %c0_i32_1 = arith.constant 0 : i32
    return %arg1, %c0_i32, %c0_i32_0 : i32, i32, i32
  }
  func.func @transform_10(%arg0: i32, %arg1: i32) -> (i32, i32, i32) {
    %c0_i32 = arith.constant 0 : i32
    %c0_i32_0 = arith.constant 0 : i32
    %c0_i32_1 = arith.constant 0 : i32
    return %arg1, %c0_i32, %c0_i32_0 : i32, i32, i32
  }
  func.func @transform_11(%arg0: i32, %arg1: i32) -> (i32, i32, i32) {
    %c0_i32 = arith.constant 0 : i32
    %c0_i32_0 = arith.constant 0 : i32
    %c0_i32_1 = arith.constant 0 : i32
    return %arg1, %c0_i32, %c0_i32_0 : i32, i32, i32
  }
  func.func @transform_12(%arg0: i32, %arg1: i32) -> (i32, i32) {
    %c0_i32 = arith.constant 0 : i32
    %c0_i32_0 = arith.constant 0 : i32
    %c0_i32_1 = arith.constant 0 : i32
    return %c0_i32, %c0_i32_0 : i32, i32
  }
  func.func @transform_13(%arg0: i32, %arg1: i32) -> (i32, i32) {
    %c0_i32 = arith.constant 0 : i32
    %c0_i32_0 = arith.constant 0 : i32
    %c0_i32_1 = arith.constant 0 : i32
    return %c0_i32, %c0_i32_0 : i32, i32
  }
  func.func @transform_14(%arg0: i32, %arg1: i32) -> (i32, i32) {
    %c0_i32 = arith.constant 0 : i32
    %c0_i32_0 = arith.constant 0 : i32
    %c0_i32_1 = arith.constant 0 : i32
    return %c0_i32, %c0_i32_0 : i32, i32
  }
  func.func @transform_15(%arg0: i32, %arg1: i32) -> (i32, i32) {
    %c0_i32 = arith.constant 0 : i32
    %c0_i32_0 = arith.constant 0 : i32
    return %arg0, %c0_i32 : i32, i32
  }
  func.func @transform_16(%arg0: i32, %arg1: i32) -> (i32, i32) {
    %c0_i32 = arith.constant 0 : i32
    %c0_i32_0 = arith.constant 0 : i32
    return %arg0, %c0_i32 : i32, i32
  }
}

</mosaic_0001>

<bundles_post_ra>
// kernel: moment_reconstruction_forward.1
= control target key start
LH: loop header
LB: loop body
LE: loop exit
PB: predicated region body
PF: predicated region fallthrough
CT: control target
= control target key end

     0   :  { %s10733_s0 = inlined_call_operand.vmem [shape: f32[8,8,8], index: 0, kind: input, shape index: {}]   ;;  %s10734_s1 = inlined_call_operand.vmem [shape: f32[8,8,8], index: 1, kind: input, shape index: {}]   ;;  %s10735_s2 = inlined_call_operand.vmem [shape: f32[2,8,8], index: 2, kind: input, shape index: {}]   ;;  %s10736_s3 = inlined_call_operand.vmem [shape: bf16[8,128], index: 3, kind: input, shape index: {}]   ;;  %s10737_s4 = inlined_call_operand.vmem [shape: f32[1,128], index: 4, kind: input, shape index: {}]   ;;  %s10738_s5 = inlined_call_operand.vmem [shape: f32[8,128], index: 5, kind: input, shape index: {}]   ;;  %s10739_s6 = inlined_call_operand.vmem [shape: f32[2,1,128], index: 6, kind: input, shape index: {}]   ;;  %s10740_s7 = inlined_call_operand.vmem [shape: bf16[2,128,384], index: 7, kind: input, shape index: {}]   ;;  %s10741_s8 = inlined_call_operand.vmem [shape: bf16[2,128,128], index: 8, kind: input, shape index: {}]   ;;  %s10742_s9 = inlined_call_operand.vmem [shape: f32[2,1,128], index: 9, kind: input, shape index: {}]   ;;  %s10743_s10 = inlined_call_operand.vmem [shape: bf16[2,128,512], index: 10, kind: input, shape index: {}]   ;;  %s10744_s11 = inlined_call_operand.vmem [shape: bf16[2,256,128], index: 11, kind: input, shape index: {}]   ;;  %s10745_s12 = inlined_call_operand.vmem [shape: f32[1,128], index: 12, kind: input, shape index: {}]   ;;  %s10746_s13 = inlined_call_operand.vmem [shape: bf16[128,8], index: 13, kind: input, shape index: {}]   ;;  %s10747_s14 = inlined_call_operand.vmem [shape: f32[1,8], index: 14, kind: input, shape index: {}]   ;;  %s10748_s15 = inlined_call_operand.hbm [shape: f32[8,64], index: 15, kind: output, shape index: {0}]   ;;  %s10749_s16 = inlined_call_operand.vmem [shape: f32[8,128], index: 16, kind: output, shape index: {1}]  }
   0x1   :  { %10766 = sst [smem:[#allocation15_spill]] %s10733_s0 }
   0x2   :  { %10767 = sst [smem:[#allocation16_spill]] %s10735_s2 }
   0x3   :  { %10768 = sst [smem:[#allocation17_spill]] %s10747_s14 }
   0x4   :  { %10769 = sst [smem:[#allocation18_spill]] %s10748_s15 }
   0x5   :  { %10770 = sst [smem:[#allocation19_spill]] %s10749_s16 }
   0x6   :  { %22 = vsyncpa [#allocation6], 0  ;;  %s9029_s21 = smov 0   ;;  %s9031_s22 = smov 0  }
   0x7   :  { %s9033_s23 = smov 0  }
   0x8 LB: > { %10771 = sst [smem:[#allocation8_spill]] %s8918_s22  ;;  %s37_s25 = sadd.s32 1, %s8918_s22  ;;  %s8922_s23 = sphi %s9033_s23, %s28_s23   ;;  %s8918_s22 = sphi %s9031_s22, %s10799_s22   ;;  %s8914_s21 = sphi %s9029_s21, %s10798_s21  }
   0x9   : > { %10772 = sst [smem:[#allocation9_spill]] %s8922_s23  ;;  %p38_p0 = scmp.ge.s32.totalorder %s37_s25, 2 }
   0xa   : > { %p7456_p1 = scmp.ge.s32.totalorder %s8922_s23, 1  ;;  %p555_p2 = scmp.lt.s32.totalorder %s8922_s23, 3 }
   0xb   : > { %s10801_s25 = smov (%p38_p0, %s37_s25), 0 }
   0xc   : > { %10773 = sst [smem:[#allocation10_spill]] %s10801_s25  ;;  %p556_p3 = pnand %p7456_p1, %p555_p2 }
   0xe   : > { %559 = sbr.rel (%p556_p3) target bundleno = 5542 (0x15a6), region = 80 }
  0x15   : > { %p655_p4 = scmp.lt.s32.totalorder %s8914_s21, 1  ;;  %s10774_s2 = sld [smem:[#allocation16_spill]] }
  0x16   : > { %p7465_p5 = scmp.ne.s32.totalorder %s8914_s21, 0 }
  0x17   : > { %s9062_s30 = scalar_select %p655_p4, %s8914_s21, 1 }
  0x18   : > { %696 = sbr.rel (%p7465_p5) target bundleno = 632 (0x278), region = 84  ;;  %v9100_v2 = vld [vmem:[%s10734_s1 + $0x20] sm:$0xff] (!%p7465_p5)  ;;  %vm713_vm0 = vcmask (!%p7465_p5), 64512   ;;  %v9110_v4 = vld [vmem:[%s10734_s1 + $0x28] sm:$0xff] (!%p7465_p5)  ;;  %v9128_v10 = vld [vmem:[%s10734_s1 + $0x18] sm:$0xff] (!%p7465_p5)  ;;  %vm1106_vm1 = vcmask (!%p7465_p5), 1041409  }
  0x19   : > { %s8455_s19 = smul.u32 192, %s9062_s30  ;;  %s7673_s20 = sshll.u32 %s9062_s30, 6  ;;  %v9105_v3 = vld [vmem:[%s10734_s1] sm:$0xff] (!%p7465_p5)  ;;  %v726_v5 = vsel (!%p7465_p5), %vm713_vm0, %v9100_v2, 0.0  ;;  %v9119_v7 = vld [vmem:[%s10734_s1 + $0x8] sm:$0xff] (!%p7465_p5)  ;;  %v729_v8 = vsel (!%p7465_p5), %vm713_vm0, %v9110_v4, 0.0 }
  0x1a   : > { %s670_s28 = scalar_lea.vmem %s10742_s9, %s9062_s30  ;;  %s9082_s0 = scalar_lea.vmem %s10741_s8, %s7673_s20  ;;  %v714_v6 = vsel (!%p7465_p5), %vm713_vm0, %v9105_v3, 0.0  ;;  %727 = vadd.xlane.f32.xlu1 (!%p7465_p5), %v726_v5  ;;  %v717_v9 = vsel (!%p7465_p5), %vm713_vm0, %v9119_v7, 0.0  ;;  %v9133_v11 = vld [vmem:[%s10734_s1 + $0x10] sm:$0xff] (!%p7465_p5)  ;;  %v723_v12 = vsel (!%p7465_p5), %vm713_vm0, %v9128_v10, 0.0  ;;  %v9142_v14 = vld [vmem:[%s10734_s1 + $0x38] sm:$0xff] (!%p7465_p5)  ;;  %vm1108_vm2 = vcmask (!%p7465_p5), 1042434  }
  0x1b   : > { %v9054_v0 = vld [vmem:[%s10774_s2] sm:$0xff]  ;;  %v9059_v1 = vld [vmem:[%s10774_s2 + $0x8] sm:$0xff]  ;;  %s9077_s2 = scalar_lea.vmem %s10740_s7, %s8455_s19  ;;  %s7674_s17 = sshll.u32 %s9062_s30, 8  ;;  %715 = vadd.xlane.f32.xlu0 (!%p7465_p5), %v714_v6  ;;  %v720_v13 = vsel (!%p7465_p5), %vm713_vm0, %v9133_v11, 0.0  ;;  %v9147_v15 = vld [vmem:[%s10734_s1 + $0x30] sm:$0xff] (!%p7465_p5)  ;;  %v735_v18 = vsel (!%p7465_p5), %vm713_vm0, %v9142_v14, 0.0 }
  0x1c   : > { %10775 = vst [vmem:[#allocation11_spill] sm:$0xff] %v9059_v1  ;;  %s7675_s15 = sshll.u32 %s9062_s30, 7  ;;  %s9089_s14 = scalar_lea.vmem %s10743_s10, %s7674_s17  ;;  %v732_v19 = vsel (!%p7465_p5), %vm713_vm0, %v9147_v15, 0.0  ;;  %vm1110_vm3 = vcmask (!%p7465_p5), 1043459   ;;  %vm1112_vm4 = vcmask (!%p7465_p5), 1044484   ;;  %vm1114_vm5 = vcmask (!%p7465_p5), 1045509  }
  0x1d   : > { %s9094_s27 = scalar_lea.vmem %s10744_s11, %s7675_s15  ;;  %s10776_s15 = sld [smem:[#allocation15_spill]] (!%p7465_p5)  ;;  %vm1116_vm6 = vcmask (!%p7465_p5), 1046534   ;;  %vm1118_vm7 = vcmask (!%p7465_p5), 1047559   ;;  %vm1121_vm8 = vcmask (!%p7465_p5), 7168   ;;  %vm1157_vm9 = vcmask (!%p7465_p5), 1043456  }
  0x1e   : > { %730 = vadd.xlane.f32.xlu1 (!%p7465_p5), %v729_v8 }
  0x1f   : > { %718 = vadd.xlane.f32.xlu0 %v717_v9 }
  0x22   : > { %724 = vadd.xlane.f32.xlu1 %v723_v12 }
  0x23   : > { %v9152_v16 = vld [vmem:[%s10776_s15 + $0x8] sm:$0xff]  ;;  %v9157_v17 = vld [vmem:[%s10776_s15] sm:$0xff]  ;;  %721 = vadd.xlane.f32.xlu0 %v720_v13  ;;  %v9186_v28 = vld [vmem:[%s10776_s15 + $0x18] sm:$0xff] }
  0x24   : > { %v795_v20 = vmul.f32 %v9119_v7, %v9152_v16  ;;  %v794_v21 = vmul.f32 %v9105_v3, %v9157_v17  ;;  %v9170_v22 = vld [vmem:[%s10776_s15 + $0x28] sm:$0xff]  ;;  %v9175_v23 = vld [vmem:[%s10776_s15 + $0x20] sm:$0xff]  ;;  %v9191_v29 = vld [vmem:[%s10776_s15 + $0x10] sm:$0xff]  ;;  %v797_v32 = vmul.f32 %v9128_v10, %v9186_v28 }
  0x25   : > { %v799_v26 = vmul.f32 %v9110_v4, %v9170_v22  ;;  %v798_v27 = vmul.f32 %v9100_v2, %v9175_v23  ;;  %v796_v33 = vmul.f32 %v9133_v11, %v9191_v29  ;;  %v9202_v34 = vld [vmem:[%s10776_s15 + $0x38] sm:$0xff]  ;;  %v9207_v35 = vld [vmem:[%s10776_s15 + $0x30] sm:$0xff] }
  0x26   : > { %736 = vadd.xlane.f32.xlu1 %v735_v18  ;;  %v805_v24 = vsel %vm713_vm0, %v795_v20, 0.0  ;;  %v802_v25 = vsel %vm713_vm0, %v794_v21, 0.0  ;;  %v811_v36 = vsel %vm713_vm0, %v797_v32, 0.0  ;;  %v801_v38 = vmul.f32 %v9142_v14, %v9202_v34 }
  0x27   : > { %733 = vadd.xlane.f32.xlu0 %v732_v19  ;;  %v817_v30 = vsel %vm713_vm0, %v799_v26, 0.0  ;;  %v814_v31 = vsel %vm713_vm0, %v798_v27, 0.0  ;;  %v808_v37 = vsel %vm713_vm0, %v796_v33, 0.0  ;;  %v800_v39 = vmul.f32 %v9147_v15, %v9207_v35 }
  0x28   : > { %v823_v40 = vsel %vm713_vm0, %v801_v38, 0.0 }
  0x29   : > { %v820_v41 = vsel %vm713_vm0, %v800_v39, 0.0 }
  0x2a   : > { %806 = vadd.xlane.f32.xlu1 %v805_v24 }
  0x2b   : > { %803 = vadd.xlane.f32.xlu0 %v802_v25 }
  0x2e   : > { %818 = vadd.xlane.f32.xlu1 %v817_v30 }
  0x2f   : > { %815 = vadd.xlane.f32.xlu0 %v814_v31 }
  0x32   : > { %812 = vadd.xlane.f32.xlu1 %v811_v36 }
  0x33   : > { %809 = vadd.xlane.f32.xlu0 %v808_v37 }
  0x36   : > { %824 = vadd.xlane.f32.xlu1 %v823_v40 }
  0x37   : > { %821 = vadd.xlane.f32.xlu0 %v820_v41 }
  0xa7   : > { %v728_v42 = vpop.xlane.xlu1 %727 }
  0xa8   : > { %v716_v43 = vpop.xlane.xlu0 %715  ;;  %v762_v44 = vrot.slane %v728_v42, 4 }
  0xa9   : > { %v738_v45 = vrot.slane %v716_v43, 4 }
  0xaa   : > { %v763_v46 = vadd.f32 %v762_v44, %v728_v42 }
  0xab   : > { %v739_v47 = vadd.f32 %v738_v45, %v716_v43  ;;  %v731_v48 = vpop.xlane.xlu1 %730 }
  0xac   : > { %v719_v49 = vpop.xlane.xlu0 %718  ;;  %v764_v50 = vrot.slane %v763_v46, 2  ;;  %v768_v52 = vrot.slane %v731_v48, 4 }
  0xad   : > { %v740_v51 = vrot.slane %v739_v47, 2  ;;  %v744_v53 = vrot.slane %v719_v49, 4 }
  0xae   : > { %v765_v54 = vadd.f32 %v764_v50, %v763_v46  ;;  %v769_v56 = vadd.f32 %v768_v52, %v731_v48 }
  0xaf   : > { %v741_v55 = vadd.f32 %v740_v51, %v739_v47  ;;  %v745_v57 = vadd.f32 %v744_v53, %v719_v49  ;;  %v725_v58 = vpop.xlane.xlu1 %724 }
  0xb0   : > { %v722_v59 = vpop.xlane.xlu0 %721  ;;  %v766_v60 = vrot.slane %v765_v54, 1  ;;  %v770_v62 = vrot.slane %v769_v56, 2  ;;  %v756_v5 = vrot.slane %v725_v58, 4 }
  0xb1   : > { %v742_v61 = vrot.slane %v741_v55, 1  ;;  %v746_v63 = vrot.slane %v745_v57, 2  ;;  %v750_v6 = vrot.slane %v722_v59, 4 }
  0xb2   : > { %v767_v8 = vadd.f32 %v766_v60, %v765_v54  ;;  %v771_v12 = vadd.f32 %v770_v62, %v769_v56  ;;  %v757_v18 = vadd.f32 %v756_v5, %v725_v58 }
  0xb3   : > { %v743_v9 = vadd.f32 %v742_v61, %v741_v55  ;;  %v747_v13 = vadd.f32 %v746_v63, %v745_v57  ;;  %v751_v19 = vadd.f32 %v750_v6, %v722_v59  ;;  %v737_v20 = vpop.xlane.xlu1 %736 }
  0xb4   : > { %v734_v21 = vpop.xlane.xlu0 %733  ;;  %v790_v24 = vmax.f32 %v767_v8, 1.0  ;;  %v772_v26 = vrot.slane %v771_v12, 1  ;;  %v758_v30 = vrot.slane %v757_v18, 2  ;;  %v780_v32 = vrot.slane %v737_v20, 4 }
  0xb5   : > { %v786_v25 = vmax.f32 %v743_v9, 1.0  ;;  %v748_v27 = vrot.slane %v747_v13, 1  ;;  %v752_v31 = vrot.slane %v751_v19, 2  ;;  %v774_v33 = vrot.slane %v734_v21, 4 }
  0xb6   : > { %8506 = vrcp.f32 %v790_v24  ;;  %v773_v36 = vadd.f32 %v772_v26, %v771_v12  ;;  %v759_v38 = vadd.f32 %v758_v30, %v757_v18  ;;  %v781_v40 = vadd.f32 %v780_v32, %v737_v20 }
  0xb7   : > { %v749_v37 = vadd.f32 %v748_v27, %v747_v13  ;;  %8508 = vrcp.f32 %v786_v25  ;;  %v753_v39 = vadd.f32 %v752_v31, %v751_v19  ;;  %v807_v41 = vpop.xlane.xlu1 %806  ;;  %v775_v45 = vadd.f32 %v774_v33, %v734_v21 }
  0xb8   : > { %v804_v42 = vpop.xlane.xlu0 %803  ;;  %v791_v43 = vmax.f32 %v773_v36, 1.0  ;;  %v832_v46 = vrot.slane %v807_v41, 4  ;;  %v760_v47 = vrot.slane %v759_v38, 1  ;;  %v782_v49 = vrot.slane %v781_v40, 2 }
  0xb9   : > { %v787_v44 = vmax.f32 %v749_v37, 1.0  ;;  %v754_v48 = vrot.slane %v753_v39, 1  ;;  %v826_v50 = vrot.slane %v804_v42, 4  ;;  %v776_v51 = vrot.slane %v775_v45, 2 }
  0xba   : > { %8510 = vrcp.f32 %v791_v43  ;;  %v833_v52 = vadd.f32 %v832_v46, %v807_v41  ;;  %v761_v53 = vadd.f32 %v760_v47, %v759_v38  ;;  %v783_v55 = vadd.f32 %v782_v49, %v781_v40 }
  0xbb   : > { %8512 = vrcp.f32 %v787_v44  ;;  %v755_v54 = vadd.f32 %v754_v48, %v753_v39  ;;  %v819_v56 = vpop.xlane.xlu1 %818  ;;  %v777_v58 = vadd.f32 %v776_v51, %v775_v45  ;;  %v827_v60 = vadd.f32 %v826_v50, %v804_v42 }
  0xbc   : > { %v816_v57 = vpop.xlane.xlu0 %815  ;;  %v834_v59 = vrot.slane %v833_v52, 2  ;;  %v856_v61 = vrot.slane %v819_v56, 4  ;;  %v789_v62 = vmax.f32 %v761_v53, 1.0  ;;  %v784_v5 = vrot.slane %v783_v55, 1 }
  0xbd   : > { %v788_v63 = vmax.f32 %v755_v54, 1.0  ;;  %v850_v6 = vrot.slane %v816_v57, 4  ;;  %v778_v8 = vrot.slane %v777_v58, 1  ;;  %v828_v12 = vrot.slane %v827_v60, 2 }
  0xbe   : > { %v835_v9 = vadd.f32 %v834_v59, %v833_v52  ;;  %v857_v13 = vadd.f32 %v856_v61, %v819_v56  ;;  %8514 = vrcp.f32 %v789_v62  ;;  %v785_v18 = vadd.f32 %v784_v5, %v783_v55 }
  0xbf   : > { %v851_v19 = vadd.f32 %v850_v6, %v816_v57  ;;  %v813_v20 = vpop.xlane.xlu1 %812  ;;  %8516 = vrcp.f32 %v788_v63  ;;  %v779_v25 = vadd.f32 %v778_v8, %v777_v58  ;;  %v829_v27 = vadd.f32 %v828_v12, %v827_v60 }
  0xc0   : > { %v810_v21 = vpop.xlane.xlu0 %809  ;;  %v9217_v24 = vpop.eup %8506  ;;  %v836_v26 = vrot.slane %v835_v9, 1  ;;  %v793_v31 = vmax.f32 %v785_v18, 1.0  ;;  %v858_v32 = vrot.slane %v857_v13, 2  ;;  %v844_v36 = vrot.slane %v813_v20, 4 }
  0xc1   : > { %v9219_v30 = vpop.eup %8508  ;;  %v852_v33 = vrot.slane %v851_v19, 2  ;;  %v792_v37 = vmax.f32 %v779_v25, 1.0  ;;  %v830_v39 = vrot.slane %v829_v27, 1  ;;  %v838_v40 = vrot.slane %v810_v21, 4 }
  0xc2   : > { %v837_v38 = vadd.f32 %v836_v26, %v835_v9  ;;  %8518 = vrcp.f32 %v793_v31  ;;  %v859_v41 = vadd.f32 %v858_v32, %v857_v13  ;;  %v845_v43 = vadd.f32 %v844_v36, %v813_v20 }
  0xc3   : > { %v853_v42 = vadd.f32 %v852_v33, %v851_v19  ;;  %v825_v44 = vpop.xlane.xlu1 %824  ;;  %8520 = vrcp.f32 %v792_v37  ;;  %v831_v47 = vadd.f32 %v830_v39, %v829_v27  ;;  %v839_v48 = vadd.f32 %v838_v40, %v810_v21 }
  0xc4   : > { %v822_v45 = vpop.xlane.xlu0 %821  ;;  %v9221_v46 = vpop.eup %8510  ;;  %v868_v49 = vrot.slane %v825_v44, 4  ;;  %v860_v51 = vrot.slane %v859_v41, 1  ;;  %v846_v53 = vrot.slane %v845_v43, 2 }
  0xc5   : > { %v9223_v50 = vpop.eup %8512  ;;  %v854_v52 = vrot.slane %v853_v42, 1  ;;  %v862_v54 = vrot.slane %v822_v45, 4  ;;  %v840_v55 = vrot.slane %v839_v48, 2  ;;  %v875_v57 = vmul.f32 %v9219_v30, %v831_v47 }
  0xc6   : > { %v869_v56 = vadd.f32 %v868_v49, %v825_v44  ;;  %v877_v58 = vmul.f32 %v9223_v50, %v837_v38  ;;  %v861_v59 = vadd.f32 %v860_v51, %v859_v41  ;;  %v847_v61 = vadd.f32 %v846_v53, %v845_v43 }
  0xc7   : > { %v855_v60 = vadd.f32 %v854_v52, %v853_v42  ;;  %v863_v62 = vadd.f32 %v862_v54, %v822_v45  ;;  %v841_v63 = vadd.f32 %v840_v55, %v839_v48  ;;  %v9228_v6 = vsub.f32 %v9157_v17, %v875_v57 }
  0xc8   : > { %v870_v5 = vrot.slane %v869_v56, 2  ;;  %v9231_v8 = vsub.f32 %v9152_v16, %v877_v58  ;;  %v9233_v9 = vpop.eup %8514  ;;  %v848_v12 = vrot.slane %v847_v61, 1  ;;  %v1107_v18 = vsel %vm1106_vm1, %v877_v58, %v875_v57 }
  0xc9   : > { %v864_v13 = vrot.slane %v863_v62, 2  ;;  %v883_v19 = vmul.f32 %v9217_v24, %v855_v60  ;;  %v9237_v20 = vpop.eup %8516  ;;  %v842_v21 = vrot.slane %v841_v63, 1  ;;  %v898_v17 = vmul.f32 %v9228_v6, %v9105_v3 }
  0xca   : > { %v871_v25 = vadd.f32 %v870_v5, %v869_v56  ;;  %v899_v16 = vmul.f32 %v9231_v8, %v9119_v7  ;;  %v849_v26 = vadd.f32 %v848_v12, %v847_v61  ;;  %v885_v32 = vmul.f32 %v9221_v46, %v861_v59 }
  0xcb   : > { %v865_v27 = vadd.f32 %v864_v13, %v863_v62  ;;  %v9244_v31 = vsub.f32 %v9175_v23, %v883_v19  ;;  %v843_v33 = vadd.f32 %v842_v21, %v841_v63  ;;  %v906_v37 = vmul.f32 %v898_v17, %v898_v17 }
  0xcc   : > { %v872_v36 = vrot.slane %v871_v25, 1  ;;  %v907_v38 = vmul.f32 %v899_v16, %v899_v16  ;;  %v9247_v39 = vpop.eup %8518  ;;  %v9252_v41 = vsub.f32 %v9170_v22, %v885_v32  ;;  %v881_v7 = vmul.f32 %v9233_v9, %v849_v26 }
  0xcd   : > { %v866_v40 = vrot.slane %v865_v27, 1  ;;  %v902_v3 = vmul.f32 %v9244_v31, %v9100_v2  ;;  %v9255_v42 = vpop.eup %8520  ;;  %v914_v43 = vsel %vm713_vm0, %v906_v37, 0.0  ;;  %v879_v45 = vmul.f32 %v9237_v20, %v843_v33 }
  0xce   : > { %v873_v23 = vadd.f32 %v872_v36, %v871_v25  ;;  %v917_v44 = vsel %vm713_vm0, %v907_v38, 0.0  ;;  %915 = vadd.xlane.f32.xlu0 %v914_v43  ;;  %v903_v2 = vmul.f32 %v9252_v41, %v9110_v4  ;;  %v9267_v51 = vsub.f32 %v9186_v28, %v881_v7 }
  0xcf   : > { %v867_v47 = vadd.f32 %v866_v40, %v865_v27  ;;  %918 = vadd.xlane.f32.xlu1 %v917_v44  ;;  %v910_v48 = vmul.f32 %v902_v3, %v902_v3  ;;  %v9263_v22 = vsub.f32 %v9191_v29, %v879_v45  ;;  %v1109_v49 = vsel %vm1108_vm2, %v879_v45, %v1107_v18 }
  0xd0   : > { %v889_v52 = vmul.f32 %v9247_v39, %v873_v23  ;;  %v911_v54 = vmul.f32 %v903_v2, %v903_v2  ;;  %v1111_v55 = vsel %vm1110_vm3, %v881_v7, %v1109_v49  ;;  %v901_v29 = vmul.f32 %v9267_v51, %v9128_v10 }
  0xd1   : > { %v926_v53 = vsel %vm713_vm0, %v910_v48, 0.0  ;;  %v887_v56 = vmul.f32 %v9255_v42, %v867_v47  ;;  %v900_v4 = vmul.f32 %v9263_v22, %v9133_v11  ;;  %v1113_v57 = vsel %vm1112_vm4, %v883_v19, %v1111_v55 }
  0xd2   : > { %v9279_v28 = vsub.f32 %v9202_v34, %v889_v52  ;;  %927 = vadd.xlane.f32.xlu0 %v926_v53  ;;  %v929_v58 = vsel %vm713_vm0, %v911_v54, 0.0  ;;  %v1115_v60 = vsel %vm1114_vm5, %v885_v32, %v1113_v57  ;;  %v909_v11 = vmul.f32 %v901_v29, %v901_v29 }
  0xd3   : > { %v9283_v59 = vsub.f32 %v9207_v35, %v887_v56  ;;  %930 = vadd.xlane.f32.xlu1 %v929_v58  ;;  %v908_v61 = vmul.f32 %v900_v4, %v900_v4  ;;  %v1117_v62 = vsel %vm1116_vm6, %v887_v56, %v1115_v60  ;;  %v1226_v21 = vlaneseq }
  0xd4   : > { %v905_v10 = vmul.f32 %v9279_v28, %v9142_v14  ;;  %v1119_v63 = vsel %vm1118_vm7, %v889_v52, %v1117_v62  ;;  %v923_v35 = vsel %vm713_vm0, %v909_v11, 0.0  ;;  %v1144_v14 = vld [vmem:[%s10736_s3] sm:$0xf] }
  0xd5   : > { %v904_v34 = vmul.f32 %v9283_v59, %v9147_v15  ;;  %v920_v5 = vsel %vm713_vm0, %v908_v61, 0.0  ;;  %1122 = vst.msk [vmem:[#allocation3] sm:$0xff] %vm1121_vm8, %v1119_v63  ;;  %8453 = vmatprep.subr.msk.bf16.mxu0 %vm1157_vm9, %v1144_v14  ;;  %8454 = vmatprep.subr.msk.bf16.mxu1 %vm1157_vm9, %v1144_v14  ;;  %v1159_v15 = vsel %vm1157_vm9, %v1144_v14, 0  ;;  %v1227_v25 = vshrl.u32 %v1226_v21, 7 }
  0xd6   : > { %v913_v12 = vmul.f32 %v905_v10, %v905_v10  ;;  %921 = vadd.xlane.f32.xlu0 %v920_v5  ;;  %7922 = vmatpush3.bf16.msra.mxu0 %v1159_v15 }
  0xd7   : > { %v912_v13 = vmul.f32 %v904_v34, %v904_v34  ;;  %924 = vadd.xlane.f32.xlu1 %v923_v35  ;;  %8412 = vmatpush3.bf16.msra.mxu1 %v1159_v15  ;;  %v1235_v17 = vsub.s32 1, %v1227_v25  ;;  %v1242_v16 = vsub.s32 2, %v1227_v25  ;;  %v1228_v26 = vsub.s32 0, %v1227_v25 }
  0xd8   : > { %v935_v19 = vsel %vm713_vm0, %v913_v12, 0.0  ;;  %v1256_v27 = vsub.s32 4, %v1227_v25  ;;  %v1249_v37 = vsub.s32 3, %v1227_v25  ;;  %v1270_v40 = vsub.s32 6, %v1227_v25 }
  0xd9   : > { %v932_v18 = vsel %vm713_vm0, %v912_v13, 0.0  ;;  %v1236_v32 = vrot.slane %v9054_v0, %v1235_v17  ;;  %v1229_v33 = vrot.slane %v9054_v0, %v1228_v26  ;;  %v1243_v36 = vrot.slane %v9054_v0, %v1242_v16 }
  0xda   : > { %933 = vadd.xlane.f32.xlu0 %v932_v18  ;;  %v1257_v38 = vrot.slane %v9054_v0, %v1256_v27  ;;  %v1250_v3 = vrot.slane %v9054_v0, %v1249_v37  ;;  %v1263_v7 = vsub.s32 5, %v1227_v25  ;;  %v1271_v23 = vrot.slane %v9054_v0, %v1270_v40 }
  0xdb   : > { %936 = vadd.xlane.f32.xlu1 %v935_v19  ;;  %v1277_v44 = vsub.s32 7, %v1227_v25 }
  0xdc   : > { %v1264_v43 = vrot.slane %v9054_v0, %v1263_v7 }
  0xdd   : > { %v1278_v45 = vrot.slane %v9054_v0, %v1277_v44 }
  0xec   : > { %1238 = vbcast.lane.b32.xlu1 %v1236_v32, 256 }
  0xf0   : > { %1231 = vbcast.lane.b32.xlu0 %v1229_v33, 256  ;;  %1245 = vbcast.lane.b32.xlu1 %v1243_v36, 256 }
  0xf4   : > { %1259 = vbcast.lane.b32.xlu0 %v1257_v38, 256  ;;  %1252 = vbcast.lane.b32.xlu1 %v1250_v3, 256 }
  0xf8   : > { %1273 = vbcast.lane.b32.xlu0 %v1271_v23, 256  ;;  %1266 = vbcast.lane.b32.xlu1 %v1264_v43, 256 }
  0xfc   : > { %1280 = vbcast.lane.b32.xlu1 %v1278_v45, 256 }
 0x15b   : > { %v916_v47 = vpop.xlane.xlu0 %915 }
 0x15c   : > { %v919_v48 = vpop.xlane.xlu1 %918  ;;  %v938_v2 = vrot.slane %v916_v47, 4 }
 0x15d   : > { %v944_v49 = vrot.slane %v919_v48, 4 }
 0x15e   : > { %v939_v52 = vadd.f32 %v938_v2, %v916_v47 }
 0x15f   : > { %v945_v53 = vadd.f32 %v944_v49, %v919_v48  ;;  %v928_v54 = vpop.xlane.xlu0 %927 }
 0x160   : > { %v940_v55 = vrot.slane %v939_v52, 2  ;;  %v962_v4 = vrot.slane %v928_v54, 4  ;;  %v931_v29 = vpop.xlane.xlu1 %930 }
 0x161   : > { %v946_v56 = vrot.slane %v945_v53, 2  ;;  %v968_v57 = vrot.slane %v931_v29, 4 }
 0x162   : > { %v941_v58 = vadd.f32 %v940_v55, %v939_v52  ;;  %v963_v61 = vadd.f32 %v962_v4, %v928_v54 }
 0x163   : > { %v947_v60 = vadd.f32 %v946_v56, %v945_v53  ;;  %v969_v11 = vadd.f32 %v968_v57, %v931_v29  ;;  %v922_v62 = vpop.xlane.xlu0 %921 }
 0x164   : > { %v942_v10 = vrot.slane %v941_v58, 1  ;;  %v964_v34 = vrot.slane %v963_v61, 2  ;;  %v950_v63 = vrot.slane %v922_v62, 4  ;;  %v925_v5 = vpop.xlane.xlu1 %924 }
 0x165   : > { %v948_v0 = vrot.slane %v947_v60, 1  ;;  %v970_v35 = vrot.slane %v969_v11, 2  ;;  %v956_v12 = vrot.slane %v925_v5, 4 }
 0x166   : > { %v943_v13 = vadd.f32 %v942_v10, %v941_v58  ;;  %v965_v19 = vadd.f32 %v964_v34, %v963_v61  ;;  %v951_v14 = vadd.f32 %v950_v63, %v922_v62 }
 0x167   : > { %v949_v18 = vadd.f32 %v948_v0, %v947_v60  ;;  %v971_v15 = vadd.f32 %v970_v35, %v969_v11  ;;  %v957_v21 = vadd.f32 %v956_v12, %v925_v5  ;;  %v934_v25 = vpop.xlane.xlu0 %933 }
 0x168   : > { %v986_v17 = vmul.f32 %v9219_v30, %v943_v13  ;;  %v966_v26 = vrot.slane %v965_v19, 1  ;;  %v952_v27 = vrot.slane %v951_v14, 2  ;;  %v937_v32 = vpop.xlane.xlu1 %936  ;;  %v974_v37 = vrot.slane %v934_v25, 4 }
 0x169   : > { %v987_v16 = vmul.f32 %v9223_v50, %v949_v18  ;;  %v972_v33 = vrot.slane %v971_v15, 1  ;;  %v958_v36 = vrot.slane %v957_v21, 2  ;;  %v980_v38 = vrot.slane %v937_v32, 4 }
 0x16a   : > { %v994_v40 = vadd.f32 1e-05, %v986_v17  ;;  %v967_v7 = vadd.f32 %v966_v26, %v965_v19  ;;  %v953_v23 = vadd.f32 %v952_v27, %v951_v14  ;;  %v975_v45 = vadd.f32 %v974_v37, %v934_v25 }
 0x16b   : > { %v995_v3 = vadd.f32 1e-05, %v987_v16  ;;  %v973_v43 = vadd.f32 %v972_v33, %v971_v15  ;;  %v959_v44 = vadd.f32 %v958_v36, %v957_v21  ;;  %v981_v47 = vadd.f32 %v980_v38, %v937_v32 }
 0x16c   : > { %8522 = vrsqrt.f32 %v994_v40  ;;  %v990_v30 = vmul.f32 %v9217_v24, %v967_v7  ;;  %v954_v48 = vrot.slane %v953_v23, 1  ;;  %v976_v49 = vrot.slane %v975_v45, 2 }
 0x16d   : > { %8524 = vrsqrt.f32 %v995_v3  ;;  %v991_v50 = vmul.f32 %v9221_v46, %v973_v43  ;;  %v960_v2 = vrot.slane %v959_v44, 1  ;;  %v982_v54 = vrot.slane %v981_v47, 2 }
 0x16e   : > { %v998_v52 = vadd.f32 1e-05, %v990_v30  ;;  %v955_v53 = vadd.f32 %v954_v48, %v953_v23  ;;  %v977_v4 = vadd.f32 %v976_v49, %v975_v45  ;;  %vm1004_vm10 = vcmp.eq.f32.partialorder %v994_v40, inf }
 0x16f   : > { %v999_v55 = vadd.f32 1e-05, %v991_v50  ;;  %v961_v56 = vadd.f32 %v960_v2, %v959_v44  ;;  %v983_v57 = vadd.f32 %v982_v54, %v981_v47  ;;  %vm1006_vm11 = vcmp.eq.f32.partialorder %v994_v40, 0.0 }
 0x170   : > { %8526 = vrsqrt.f32 %v998_v52  ;;  %v988_v29 = vmul.f32 %v9237_v20, %v955_v53  ;;  %v978_v24 = vrot.slane %v977_v4, 1  ;;  %vm1011_vm12 = vcmp.eq.f32.partialorder %v995_v3, inf }
 0x171   : > { %8528 = vrsqrt.f32 %v999_v55  ;;  %v989_v58 = vmul.f32 %v9233_v9, %v961_v56  ;;  %v984_v61 = vrot.slane %v983_v57, 1  ;;  %v1007_v9 = vand.u32 2147483648, %v994_v40 }
 0x172   : > { %v996_v60 = vadd.f32 1e-05, %v988_v29  ;;  %v979_v46 = vadd.f32 %v978_v24, %v977_v4  ;;  %vm1013_vm13 = vcmp.eq.f32.partialorder %v995_v3, 0.0  ;;  %vm1032_vm14 = vcmp.eq.f32.partialorder %v998_v52, inf }
 0x173   : > { %v997_v11 = vadd.f32 1e-05, %v989_v58  ;;  %v985_v62 = vadd.f32 %v984_v61, %v983_v57  ;;  %vm1034_vm15 = vcmp.eq.f32.partialorder %v998_v52, 0.0  ;;  %v1035_v25 = vand.u32 2147483648, %v998_v52 }
 0x174   : > { %8530 = vrsqrt.f32 %v996_v60  ;;  %v992_v10 = vmul.f32 %v9255_v42, %v979_v46  ;;  %vm1039_vm9 = vcmp.eq.f32.partialorder %v999_v55, inf  ;;  %v1042_v26 = vand.u32 2147483648, %v999_v55 }
 0x175   : > { %8532 = vrsqrt.f32 %v997_v11  ;;  %v993_v34 = vmul.f32 %v9247_v39, %v985_v62  ;;  %v1014_v39 = vand.u32 2147483648, %v995_v3  ;;  %v1028_v7 = vand.u32 2147483648, %v997_v11 }
 0x176   : > { %v8523_v0 = vpop.eup %8522  ;;  %v9316_v5 = vadd.f32 1e-05, %v992_v10 }
 0x177   : > { %v8525_v63 = vpop.eup %8524  ;;  %v1003_v20 = vmul.f32 %v8523_v0, %v994_v40  ;;  %v9318_v35 = vadd.f32 1e-05, %v993_v34 }
 0x178   : > { %v1010_v12 = vmul.f32 %v8525_v63, %v995_v3  ;;  %8534 = vrsqrt.f32 %v9316_v5  ;;  %v1049_v49 = vand.u32 2147483648, %v9316_v5 }
 0x179   : > { %v1005_v13 = vsel %vm1004_vm10, %v994_v40, %v1003_v20  ;;  %8536 = vrsqrt.f32 %v9318_v35  ;;  %vm1041_vm10 = vcmp.eq.f32.partialorder %v999_v55, 0.0  ;;  %v1021_v40 = vand.u32 2147483648, %v996_v60 }
 0x17a   : > { %v8527_v18 = vpop.eup %8526  ;;  %v1008_v42 = vsel %vm1006_vm11, %v1007_v9, %v1005_v13  ;;  %v1012_v14 = vsel %vm1011_vm12, %v995_v3, %v1010_v12  ;;  %vm1018_vm11 = vcmp.eq.f32.partialorder %v996_v60, inf  ;;  %vm1025_vm12 = vcmp.eq.f32.partialorder %v997_v11, inf }
 0x17b   : > { %v8529_v19 = vpop.eup %8528  ;;  %8538 = vrcp.f32 %v1008_v42  ;;  %v1031_v15 = vmul.f32 %v8527_v18, %v998_v52  ;;  %v1015_v21 = vsel %vm1013_vm13, %v1014_v39, %v1012_v14  ;;  %vm1020_vm13 = vcmp.eq.f32.partialorder %v996_v60, 0.0 }
 0x17c   : > { %v1038_v17 = vmul.f32 %v8529_v19, %v999_v55  ;;  %8540 = vrcp.f32 %v1015_v21  ;;  %v1131_v44 = vsel %vm1106_vm1, %v1015_v21, %v1008_v42  ;;  %vm1053_vm1 = vcmp.eq.f32.partialorder %v9318_v35, inf }
 0x17d   : > { %v1033_v16 = vsel %vm1032_vm14, %v998_v52, %v1031_v15  ;;  %vm1027_vm14 = vcmp.eq.f32.partialorder %v997_v11, 0.0 }
 0x17e   : > { %v8531_v27 = vpop.eup %8530  ;;  %v1036_v32 = vsel %vm1034_vm15, %v1035_v25, %v1033_v16  ;;  %v1040_v33 = vsel %vm1039_vm9, %v999_v55, %v1038_v17  ;;  %vm1046_vm15 = vcmp.eq.f32.partialorder %v9316_v5, inf  ;;  %v1056_v55 = vand.u32 2147483648, %v9318_v35  ;;  %v1239_v17 = vpop.permute.xlu1 %1238 }
 0x17f   : > { %v8533_v36 = vpop.eup %8532  ;;  %v1017_v37 = vmul.f32 %v8531_v27, %v996_v60  ;;  %v1043_v38 = vsel %vm1041_vm10, %v1042_v26, %v1040_v33  ;;  %8542 = vrcp.f32 %v1036_v32  ;;  %v1232_v26 = vpop.permute.xlu0 %1231 }
 0x180   : > { %v1024_v3 = vmul.f32 %v8533_v36, %v997_v11  ;;  %8544 = vrcp.f32 %v1043_v38  ;;  %v1290_v33 = vsub.f32 1.0, %v1232_v26 }
 0x181   : > { %v1019_v23 = vsel %vm1018_vm11, %v996_v60, %v1017_v37 }
 0x182   : > { %v1022_v43 = vsel %vm1020_vm13, %v1021_v40, %v1019_v23  ;;  %v1026_v45 = vsel %vm1025_vm12, %v997_v11, %v1024_v3  ;;  %v8535_v47 = vpop.eup %8534  ;;  %v1246_v16 = vpop.permute.xlu1 %1245  ;;  %v1291_v40 = vsub.f32 1.0, %v1239_v17 }
 0x183   : > { %v1132_v30 = vsel %vm1108_vm2, %v1022_v43, %v1131_v44  ;;  %v1029_v48 = vsel %vm1027_vm14, %v1028_v7, %v1026_v45  ;;  %8546 = vrcp.f32 %v1022_v43  ;;  %v8537_v50 = vpop.eup %8536  ;;  %v1045_v2 = vmul.f32 %v8535_v47, %v9316_v5 }
 0x184   : > { %v1133_v52 = vsel %vm1110_vm3, %v1029_v48, %v1132_v30  ;;  %8548 = vrcp.f32 %v1029_v48  ;;  %v1052_v54 = vmul.f32 %v8537_v50, %v9318_v35  ;;  %vm1048_vm2 = vcmp.eq.f32.partialorder %v9316_v5, 0.0  ;;  %v1321_v30 = vld [vmem:[%s10738_s5] sm:$0xff] }
 0x185   : > { %v8539_v53 = vpop.eup %8538  ;;  %v1134_v56 = vsel %vm1112_vm4, %v1036_v32, %v1133_v52  ;;  %v1047_v29 = vsel %vm1046_vm15, %v9316_v5, %v1045_v2  ;;  %vm1055_vm3 = vcmp.eq.f32.partialorder %v9318_v35, 0.0  ;;  %vm8924_vm4 = vmmov 1  }
 0x186   : > { %v1059_v4 = vmul.f32 %v8539_v53, %v9228_v6  ;;  %v1135_v57 = vsel %vm1114_vm5, %v1043_v38, %v1134_v56  ;;  %v8541_v58 = vpop.eup %8540  ;;  %v1050_v24 = vsel %vm1048_vm2, %v1049_v49, %v1047_v29  ;;  %v1054_v60 = vsel %vm1053_vm1, %v9318_v35, %v1052_v54  ;;  %v1253_v27 = vpop.permute.xlu1 %1252  ;;  %v7470_v38 = vld [vmem:[%s10737_s4] ss:$0 sm:$0xff] }
 0x187   : > { %v1061_v61 = vmul.f32 %v8541_v58, %v9231_v8  ;;  %v1136_v11 = vsel %vm1116_vm6, %v1050_v24, %v1135_v57  ;;  %v1057_v46 = vsel %vm1055_vm3, %v1056_v55, %v1054_v60  ;;  %8550 = vrcp.f32 %v1050_v24 }
 0x188   : > { %vm1074_vm9 = vweird.f32 %v1059_v4  ;;  %v1137_v6 = vsel %vm1118_vm7, %v1057_v46, %v1136_v11  ;;  %8552 = vrcp.f32 %v1057_v46  ;;  %v1293_v37 = vsub.f32 1.0, %v1253_v27 }
 0x189   : > { %v8543_v62 = vpop.eup %8542  ;;  %vm1082_vm10 = vmxor %vm1074_vm9, %vm8924_vm4  ;;  %vm1075_vm5 = vweird.f32 %v1061_v61  ;;  %1139 = vst.msk [vmem:[#allocation4] sm:$0xff] %vm1121_vm8, %v1137_v6  ;;  %v1305_v47 = vmul.f32 %v7470_v38, %v1290_v33  ;;  %v1306_v55 = vmul.f32 %v7470_v38, %v1291_v40 }
 0x18a   : > { %v8545_v10 = vpop.eup %8544  ;;  %v1090_v0 = vsel %vm1082_vm10, %v1059_v4, 0.0  ;;  %v1067_v34 = vmul.f32 %v8543_v62, %v9244_v31  ;;  %vm1083_vm11 = vmxor %vm1075_vm5, %vm8924_vm4  ;;  %v1267_v32 = vpop.permute.xlu1 %1266  ;;  %v1308_v2 = vmul.f32 %v7470_v38, %v1293_v37 }
 0x18b   : > { %v1069_v8 = vmul.f32 %v8545_v10, %v9252_v41  ;;  %v1091_v63 = vsel %vm1083_vm11, %v1061_v61, 0.0  ;;  %v1295_v60 = vsub.f32 1.0, %v1267_v32 }
 0x18c   : > { %vm1078_vm6 = vweird.f32 %v1067_v34  ;;  %v1140_v20 = vpack.c.bf16 %v1091_v63, %v1090_v0 }
 0x18d   : > { %v8547_v5 = vpop.eup %8546  ;;  %vm1079_vm12 = vweird.f32 %v1069_v8  ;;  %vm1086_vm13 = vmxor %vm1078_vm6, %vm8924_vm4 }
 0x18e   : > { %v8549_v35 = vpop.eup %8548  ;;  %vm1087_vm7 = vmxor %vm1079_vm12, %vm8924_vm4  ;;  %v1094_v9 = vsel %vm1086_vm13, %v1067_v34, 0.0  ;;  %v1063_v31 = vmul.f32 %v8547_v5, %v9263_v22  ;;  %7923 = vmatprep.mubr.msk.bf16.mxu0 %vm713_vm0, %v1140_v20  ;;  %v1281_v7 = vpop.permute.xlu1 %1280 }
 0x18f   : > { %v1095_v12 = vsel %vm1087_vm7, %v1069_v8, 0.0  ;;  %v1065_v13 = vmul.f32 %v8549_v35, %v9267_v51  ;;  %v1297_v54 = vsub.f32 1.0, %v1281_v7 }
 0x190   : > { %v1142_v18 = vpack.c.bf16 %v1095_v12, %v1094_v9  ;;  %vm1076_vm8 = vweird.f32 %v1063_v31 }
 0x191   : > { %vm1077_vm14 = vweird.f32 %v1065_v13  ;;  %vm1084_vm15 = vmxor %vm1076_vm8, %vm8924_vm4  ;;  %v8551_v42 = vpop.eup %8550  ;;  %v1312_v6 = vmul.f32 %v7470_v38, %v1297_v54 }
 0x192   : > { %7927 = vmatprep.mubr.msk.bf16.mxu1 %vm713_vm0, %v1142_v18  ;;  %vm1085_vm1 = vmxor %vm1077_vm14, %vm8924_vm4  ;;  %v1092_v41 = vsel %vm1084_vm15, %v1063_v31, 0.0  ;;  %v8553_v19 = vpop.eup %8552  ;;  %v1071_v22 = vmul.f32 %v8551_v42, %v9283_v59  ;;  %v1260_v59 = vpop.permute.xlu0 %1259  ;;  %v1310_v31 = vmul.f32 %v7470_v38, %v1295_v60 }
 0x193   : > { %v1093_v39 = vsel %vm1085_vm1, %v1065_v13, 0.0  ;;  %v1073_v15 = vmul.f32 %v8553_v19, %v9279_v28  ;;  %v1292_v28 = vsub.f32 1.0, %v1246_v16  ;;  %v1294_v56 = vsub.f32 1.0, %v1260_v59 }
 0x194   : > { %v1141_v14 = vpack.c.bf16 %v1093_v39, %v1092_v41  ;;  %vm1080_vm2 = vweird.f32 %v1071_v22 }
 0x195   : > { %vm1081_vm3 = vweird.f32 %v1073_v15  ;;  %vm1088_vm9 = vmxor %vm1080_vm2, %vm8924_vm4  ;;  %v1307_v23 = vmul.f32 %v7470_v38, %v1292_v28  ;;  %v1309_v34 = vmul.f32 %v7470_v38, %v1294_v56 }
 0x196   : > { %7924 = vmatmul.mubr.msk.bf16.vlgmr.msra.gmra.mrb[0].mxu0 %vm713_vm0, %v1141_v14  ;;  %vm1089_vm10 = vmxor %vm1081_vm3, %vm8924_vm4  ;;  %v1096_v51 = vsel %vm1088_vm9, %v1071_v22, 0.0  ;;  %v1274_v36 = vpop.permute.xlu0 %1273 }
 0x197   : > { %v1097_v21 = vsel %vm1089_vm10, %v1073_v15, 0.0  ;;  %v1296_v45 = vsub.f32 1.0, %v1274_v36 }
 0x198   : > { %v1143_v25 = vpack.c.bf16 %v1097_v21, %v1096_v51 }
 0x199   : > { %v1311_v24 = vmul.f32 %v7470_v38, %v1296_v45 }
 0x19a   : > { %7928 = vmatmul.mubr.msk.bf16.vlgmr.msra.gmra.mrb[0].mxu1 %vm713_vm0, %v1143_v25 }
 0x269   : > { %v7925_v3 = vpop.f32.mrb[0].mxu0 }
 0x26a   : > { %v1284_v43 = vmul.f32 %v7925_v3, %v1246_v16  ;;  %v1195_v44 = vpop.f32.mrb[1].mxu0 }
 0x26b   : > { %v1282_v48 = vmul.f32 %v1232_v26, %v1195_v44  ;;  %v7926_v50 = vpop.f32.mrb[2].mxu0 }
 0x26c   : > { %v1315_v49 = vadd.f32 %v1307_v23, %v1284_v43  ;;  %v1285_v52 = vmul.f32 %v7926_v50, %v1253_v27  ;;  %v1198_v53 = vpop.f32.mrb[3].mxu0 }
 0x26d   : > { %v1313_v4 = vadd.f32 %v1305_v47, %v1282_v48  ;;  %v1283_v29 = vmul.f32 %v1239_v17, %v1198_v53  ;;  %v7929_v46 = vpop.f32.mrb[0].mxu1 }
 0x26e   : > { %v1324_v57 = vadd.f32 %v1321_v30, %v1315_v49  ;;  %v1316_v58 = vadd.f32 %v1308_v2, %v1285_v52  ;;  %v1288_v10 = vmul.f32 %v7929_v46, %v1274_v36  ;;  %v1211_v0 = vpop.f32.mrb[1].mxu1 }
 0x26f   : > { %v1322_v61 = vadd.f32 %v1321_v30, %v1313_v4  ;;  %v1314_v11 = vadd.f32 %v1306_v55, %v1283_v29  ;;  %v1286_v63 = vmul.f32 %v1260_v59, %v1211_v0  ;;  %v7930_v5 = vpop.f32.mrb[2].mxu1 }
 0x270   : > { %1332 = vst [vmem:[#allocation2 + $0x10] sm:$0xff] %v1324_v57  ;;  %v1325_v62 = vadd.f32 %v1321_v30, %v1316_v58  ;;  %v1319_v20 = vadd.f32 %v1311_v24, %v1288_v10  ;;  %v1289_v35 = vmul.f32 %v7930_v5, %v1281_v7  ;;  %v1214_v9 = vpop.f32.mrb[3].mxu1 }
 0x271   : > { %1330 = vst [vmem:[#allocation2] sm:$0xff] %v1322_v61  ;;  %v1323_v8 = vadd.f32 %v1321_v30, %v1314_v11  ;;  %v1317_v12 = vadd.f32 %v1309_v34, %v1286_v63  ;;  %v1287_v13 = vmul.f32 %v1267_v32, %v1214_v9 }
 0x272   : > { %1333 = vst [vmem:[#allocation2 + $0x18] sm:$0xff] %v1325_v62  ;;  %v1328_v18 = vadd.f32 %v1321_v30, %v1319_v20  ;;  %v1320_v41 = vadd.f32 %v1312_v6, %v1289_v35 }
 0x273   : > { %1331 = vst [vmem:[#allocation2 + $0x8] sm:$0xff] %v1323_v8  ;;  %v1326_v42 = vadd.f32 %v1321_v30, %v1317_v12  ;;  %v1318_v39 = vadd.f32 %v1310_v31, %v1287_v13 }
 0x274   : > { %1336 = vst [vmem:[#allocation2 + $0x30] sm:$0xff] %v1328_v18  ;;  %v1329_v19 = vadd.f32 %v1321_v30, %v1320_v41 }
 0x275   : > { %1334 = vst [vmem:[#allocation2 + $0x20] sm:$0xff] %v1326_v42  ;;  %v1327_v14 = vadd.f32 %v1321_v30, %v1318_v39 }
 0x276   : > { %1337 = vst [vmem:[#allocation2 + $0x38] sm:$0xff] %v1329_v19 }
 0x277   : > { %1335 = vst [vmem:[#allocation2 + $0x28] sm:$0xff] %v1327_v14 }
 0x278 PF: > { %v9366_v22 = vld [vmem:[#allocation2] sm:$0xff]  ;;  %v9370_v51 = vld [vmem:[#allocation2 + $0x10] sm:$0xff]  ;;  %v8557_v33 = vld [vmem:[%s9077_s2 + $0x1c] ss:$12 sps:$4 sm:$0xff]   ;;  %v10754_v54 = vmov 0   ;;  %s10777_s16 = scalar_lea.vmem %s10739_s6, %s9062_s30  ;;  %vm8927_vm0 = vmmov 0  }
 0x279   : > { %v1347_v21 = vmul.f32 %v9366_v22, %v9366_v22  ;;  %v1349_v25 = vmul.f32 %v9370_v51, %v9370_v51  ;;  %v9376_v17 = vld [vmem:[#allocation2 + $0x18] sm:$0xff]  ;;  %v8554_v32 = vld [vmem:[%s9077_s2 + $0x4] ss:$12 sps:$4 sm:$0xff]   ;;  %v8556_v28 = vld [vmem:[%s9077_s2] ss:$12 sps:$4 sm:$0xff]   ;;  %1614 = vmatprep.mubr.bf16.mxu0 %v10754_v54  ;;  %vm1900_vm4 = vcmask 261120  }
 0x27a   : > { %v9368_v15 = vld [vmem:[#allocation2 + $0x8] sm:$0xff]  ;;  %v1350_v59 = vmul.f32 %v9376_v17, %v9376_v17  ;;  %1582 = vmatprep.subr.bf16.mxu0 %v8554_v32  ;;  %v8559_v36 = vld [vmem:[%s9077_s2 + $0x18] ss:$12 sps:$4 sm:$0xff]   ;;  %v8560_v43 = vld [vmem:[%s9077_s2 + $0x34] ss:$12 sps:$4 sm:$0xff]   ;;  %vm2369_vm5 = vcmask 1043456  }
 0x27b   : > { %1355 = vadd.xlane.f32.xlu0 %v1347_v21  ;;  %v1348_v27 = vmul.f32 %v9368_v15, %v9368_v15  ;;  %1359 = vadd.xlane.f32.xlu1 %v1349_v25  ;;  %v9392_v38 = vld [vmem:[#allocation2 + $0x30] sm:$0xff]  ;;  %v8563_v45 = vld [vmem:[%s9077_s2 + $0x4c] ss:$12 sps:$4 sm:$0xff]   ;;  %v8569_v50 = vld [vmem:[%s9077_s2 + $0x7c] ss:$12 sps:$4 sm:$0xff]   ;;  %vm1732_vm11 = vcmp.gt.f32.partialorder %v9059_v1, 0.5 }
 0x27c   : > { %v9380_v26 = vld [vmem:[#allocation2 + $0x20] sm:$0xff]  ;;  %1583 = vmatpush1.bf16.msra.mxu0 %v8556_v28  ;;  %v1353_v23 = vmul.f32 %v9392_v38, %v9392_v38  ;;  %v8562_v44 = vld [vmem:[%s9077_s2 + $0x30] ss:$12 sps:$4 sm:$0xff]   ;;  %v8565_v47 = vld [vmem:[%s9077_s2 + $0x48] ss:$12 sps:$4 sm:$0xff]   ;;  %vm2269_vm6 = vcmask 64512  }
 0x27d   : > { %v9390_v37 = vld [vmem:[#allocation2 + $0x38] sm:$0xff]  ;;  %v1351_v3 = vmul.f32 %v9380_v26, %v9380_v26  ;;  %1584 = vmatprep.subr.bf16.mxu0 %v8557_v33  ;;  %v8566_v30 = vld [vmem:[%s9077_s2 + $0x64] ss:$12 sps:$4 sm:$0xff]   ;;  %v8568_v48 = vld [vmem:[%s9077_s2 + $0x60] ss:$12 sps:$4 sm:$0xff]   ;;  %s8931_s20 = smov 64  }
 0x27e   : > { %v9378_v16 = vld [vmem:[#allocation2 + $0x28] sm:$0xff]  ;;  %v1354_v7 = vmul.f32 %v9390_v37, %v9390_v37  ;;  %v8571_v2 = vld [vmem:[%s9077_s2 + $0x78] ss:$12 sps:$4 sm:$0xff]   ;;  %v8572_v49 = vld [vmem:[%s9077_s2 + $0x94] ss:$12 sps:$4 sm:$0xff]   ;;  %s8932_s29 = smov 32  }
 0x27f   : > { %1357 = vadd.xlane.f32.xlu0 %v1348_v27  ;;  %1361 = vadd.xlane.f32.xlu1 %v1350_v59  ;;  %v1352_v40 = vmul.f32 %v9378_v16, %v9378_v16  ;;  %v8574_v52 = vld [vmem:[%s9077_s2 + $0x90] ss:$12 sps:$4 sm:$0xff]   ;;  %v8575_v53 = vld [vmem:[%s9077_s2 + $0xac] ss:$12 sps:$4 sm:$0xff]   ;;  %v8577_v55 = vld [vmem:[%s9077_s2 + $0xa8] ss:$12 sps:$4 sm:$0xff]  }
 0x280   : > { %1585 = vmatpush1.bf16.msra.mxu0 %v8559_v36  ;;  %v8578_v56 = vld [vmem:[%s9077_s2 + $0x8] ss:$12 sps:$4 sm:$0xff]   ;;  %v7471_v39 = vld [vmem:[%s10777_s16] ss:$0 sm:$0xff]  ;;  %p7657_p6 = scmp.ne.s32.totalorder %s8914_s21, 1 }
 0x281   : > { %1586 = vmatprep.subr.bf16.mxu0 %v8560_v43  ;;  %v8581_v43 = vld [vmem:[%s9077_s2 + $0x50] ss:$12 sps:$4 sm:$0xff]   ;;  %vm6684_vm12 = vcmask (!%p7657_p6), 1041409   ;;  %vm6686_vm13 = vcmask (!%p7657_p6), 1042434   ;;  %vm6688_vm7 = vcmask (!%p7657_p6), 1043459   ;;  %vm6690_vm8 = vcmask (!%p7657_p6), 1044484  }
 0x282   : > { %vm6692_vm14 = vcmask (!%p7657_p6), 1045509   ;;  %vm6694_vm15 = vcmask (!%p7657_p6), 1046534   ;;  %vm6696_vm1 = vcmask (!%p7657_p6), 1047559   ;;  %s10791_s21 = sld [smem:[#allocation19_spill]] (!%p7657_p6)  ;;  %s10792_s26 = sld [smem:[#allocation17_spill]] (!%p7657_p6)  ;;  %vm7251_vm2 = vcmask (!%p7657_p6), 130048  }
 0x283   : > { %1365 = vadd.xlane.f32.xlu1 %v1352_v40  ;;  %1363 = vadd.xlane.f32.xlu0 %v1351_v3  ;;  %s8936_s24 = smov (!%p7657_p6), 16   ;;  %s8937_s19 = smov (!%p7657_p6), 8   ;;  %vm7253_vm3 = vcmask (!%p7657_p6), 195584   ;;  %vm7256_vm9 = vcmask (!%p7657_p6), 326656   ;;  %vm7258_vm10 = vcmask (!%p7657_p6), 392192  }
 0x284   : > { %1587 = vmatpush1.bf16.msra.mxu0 %v8562_v44  ;;  %s8938_s22 = smov (!%p7657_p6), 32   ;;  %s8939_s25 = smov (!%p7657_p6), 24  }
 0x285   : > { %1588 = vmatprep.subr.bf16.mxu0 %v8563_v45  ;;  %s8940_s23 = smov (!%p7657_p6), 48   ;;  %s8941_s18 = smov (!%p7657_p6), 40  }
 0x286   : > { %s8942_s16 = smov (!%p7657_p6), 56  }
 0x287   : > { %1369 = vadd.xlane.f32.xlu1 %v1354_v7  ;;  %1367 = vadd.xlane.f32.xlu0 %v1353_v23 }
 0x288   : > { %1589 = vmatpush1.bf16.msra.mxu0 %v8565_v47 }
 0x289   : > { %1590 = vmatprep.subr.bf16.mxu0 %v8566_v30 }
 0x28c   : > { %1591 = vmatpush1.bf16.msra.mxu0 %v8568_v48  ;;  %v8582_v48 = vld [vmem:[%s9077_s2 + $0x68] ss:$12 sps:$4 sm:$0xff]  }
 0x28d   : > { %1592 = vmatprep.subr.bf16.mxu0 %v8569_v50 }
 0x290   : > { %1593 = vmatpush1.bf16.msra.mxu0 %v8571_v2  ;;  %v8583_v2 = vld [vmem:[%s9077_s2 + $0x80] ss:$12 sps:$4 sm:$0xff]  }
 0x291   : > { %1594 = vmatprep.subr.bf16.mxu0 %v8572_v49 }
 0x294   : > { %1595 = vmatpush1.bf16.msra.mxu0 %v8574_v52 }
 0x295   : > { %1596 = vmatprep.subr.bf16.mxu0 %v8575_v53  ;;  %v8584_v53 = vld [vmem:[%s9077_s2 + $0x98] ss:$12 sps:$4 sm:$0xff]  }
 0x298   : > { %1597 = vmatpush1.bf16.msra.mxu0 %v8577_v55 }
 0x299   : > { %7931 = vmatprep.subr.bf16.mxu0 %v8578_v56 }
 0x308   : > { %v1356_v4 = vpop.xlane.xlu0 %1355  ;;  %v1360_v29 = vpop.xlane.xlu1 %1359 }
 0x309   : > { %v1372_v57 = vmul.f32 0.0078125, %v1356_v4  ;;  %v1374_v58 = vmul.f32 0.0078125, %v1360_v29 }
 0x30b   : > { %v1380_v24 = vadd.f32 1e-06, %v1372_v57  ;;  %v1382_v61 = vadd.f32 1e-06, %v1374_v58 }
 0x30c   : > { %v1358_v60 = vpop.xlane.xlu0 %1357  ;;  %v1362_v11 = vpop.xlane.xlu1 %1361 }
 0x30d   : > { %8658 = vrsqrt.f32 %v1380_v24  ;;  %v1373_v46 = vmul.f32 0.0078125, %v1358_v60  ;;  %v1375_v62 = vmul.f32 0.0078125, %v1362_v11 }
 0x30e   : > { %8660 = vrsqrt.f32 %v1382_v61 }
 0x30f   : > { %v1381_v6 = vadd.f32 1e-06, %v1373_v46  ;;  %v1383_v10 = vadd.f32 1e-06, %v1375_v62 }
 0x310   : > { %v1366_v0 = vpop.xlane.xlu1 %1365  ;;  %v1364_v34 = vpop.xlane.xlu0 %1363 }
 0x311   : > { %8662 = vrsqrt.f32 %v1381_v6  ;;  %v1377_v8 = vmul.f32 0.0078125, %v1366_v0  ;;  %v1376_v63 = vmul.f32 0.0078125, %v1364_v34 }
 0x312   : > { %8664 = vrsqrt.f32 %v1383_v10 }
 0x313   : > { %v1385_v5 = vadd.f32 1e-06, %v1377_v8  ;;  %v1384_v20 = vadd.f32 1e-06, %v1376_v63 }
 0x314   : > { %v1370_v35 = vpop.xlane.xlu1 %1369  ;;  %v1368_v9 = vpop.xlane.xlu0 %1367 }
 0x315   : > { %8666 = vrsqrt.f32 %v1385_v5  ;;  %v1379_v12 = vmul.f32 0.0078125, %v1370_v35  ;;  %v1378_v13 = vmul.f32 0.0078125, %v1368_v9 }
 0x316   : > { %8668 = vrsqrt.f32 %v1384_v20 }
 0x317   : > { %v8659_v31 = vpop.eup %8658  ;;  %v1387_v21 = vadd.f32 1e-06, %v1379_v12  ;;  %v1386_v25 = vadd.f32 1e-06, %v1378_v13 }
 0x318   : > { %v8661_v18 = vpop.eup %8660  ;;  %v1396_v41 = vmul.f32 %v8659_v31, %v9366_v22  ;;  %v8579_v22 = vld [vmem:[%s9077_s2 + $0x20] ss:$12 sps:$4 sm:$0xff]  }
 0x319   : > { %v1398_v32 = vmul.f32 %v8661_v18, %v9370_v51  ;;  %8670 = vrsqrt.f32 %v1387_v21 }
 0x31a   : > { %v1410_v27 = vmul.f32 %v7471_v39, %v1396_v41  ;;  %8672 = vrsqrt.f32 %v1386_v25 }
 0x31b   : > { %v8663_v42 = vpop.eup %8662  ;;  %v1412_v40 = vmul.f32 %v7471_v39, %v1398_v32 }
 0x31c   : > { %v8665_v19 = vpop.eup %8664  ;;  %v1397_v14 = vmul.f32 %v8663_v42, %v9368_v15  ;;  %v8580_v15 = vld [vmem:[%s9077_s2 + $0x38] ss:$12 sps:$4 sm:$0xff]  }
 0x31d   : > { %v1399_v28 = vmul.f32 %v8665_v19, %v9376_v17 }
 0x31e   : > { %v1411_v59 = vmul.f32 %v7471_v39, %v1397_v14 }
 0x31f   : > { %v8667_v36 = vpop.eup %8666  ;;  %v1413_v3 = vmul.f32 %v7471_v39, %v1399_v28 }
 0x320   : > { %v1418_v33 = vpack.c.bf16 %v1411_v59, %v1410_v27  ;;  %v8669_v7 = vpop.eup %8668  ;;  %v1401_v17 = vmul.f32 %v8667_v36, %v9378_v16 }
 0x321   : > { %v1419_v23 = vpack.c.bf16 %v1413_v3, %v1412_v40  ;;  %v1400_v51 = vmul.f32 %v8669_v7, %v9380_v26 }
 0x322   : > { %1615 = vmatmul.mubr.bf16.vlgmr.msra.gmra.mrb[0].mxu0 %v1418_v33  ;;  %v1415_v47 = vmul.f32 %v7471_v39, %v1401_v17 }
 0x323   : > { %7932 = vmatpush3.bf16.msra.mxu0 %v8578_v56  ;;  %1624 = vmatprep.mubr.bf16.mxu0 %v10754_v54  ;;  %v8671_v44 = vpop.eup %8670  ;;  %v1414_v45 = vmul.f32 %v7471_v39, %v1400_v51  ;;  %v8585_v56 = vld [vmem:[%s9077_s2 + $0xb0] ss:$12 sps:$4 sm:$0xff]   ;;  %s8930_s2 = smov 96  }
 0x324   : > { %7933 = vmatprep.subr.bf16.mxu0 %v8579_v22  ;;  %v8673_v30 = vpop.eup %8672  ;;  %v1403_v16 = vmul.f32 %v8671_v44, %v9390_v37  ;;  %v10756_v37 = vmov 0.0  }
 0x325   : > { %v1420_v50 = vpack.c.bf16 %v1415_v47, %v1414_v45  ;;  %v1402_v26 = vmul.f32 %v8673_v30, %v9392_v38  ;;  %7955 = vmatprep.subr.bf16.mxu1 %v10756_v37  ;;  %7957 = vmatprep.mubr.msk.bf16.mxu1 %vm8927_vm0, %v10756_v37 }
 0x326   : > { %v1417_v52 = vmul.f32 %v7471_v39, %v1403_v16  ;;  %v1739_v16 = vlaneseq }
 0x327   : > { %7934 = vmatpush3.bf16.msra.mxu0 %v8579_v22  ;;  %v1416_v49 = vmul.f32 %v7471_v39, %v1402_v26 }
 0x328   : > { %7935 = vmatprep.subr.bf16.mxu0 %v8580_v15 }
 0x329   : > { %v1421_v55 = vpack.c.bf16 %v1417_v52, %v1416_v49  ;;  %v9555_v49 = vshrl.u32 %v1739_v16, 7 }
 0x32a   : > { %1625 = vmatmul.mubr.bf16.gmra.mrb[4].mxu0 %v1419_v23 }
 0x32b   : > { %7936 = vmatpush3.bf16.msra.mxu0 %v8580_v15  ;;  %1634 = vmatprep.mubr.bf16.mxu0 %v10754_v54  ;;  %10778 = vst [vmem:[#allocation12_spill] sm:$0xff] %v9555_v49 }
 0x32c   : > { %7937 = vmatprep.subr.bf16.mxu0 %v8581_v43 }
 0x32f   : > { %7938 = vmatpush3.bf16.msra.mxu0 %v8581_v43 }
 0x330   : > { %7939 = vmatprep.subr.bf16.mxu0 %v8582_v48 }
 0x332   : > { %1635 = vmatmul.mubr.bf16.gmra.mrb[8].mxu0 %v1420_v50 }
 0x333   : > { %7940 = vmatpush3.bf16.msra.mxu0 %v8582_v48  ;;  %1644 = vmatprep.mubr.bf16.mxu0 %v10754_v54 }
 0x334   : > { %7941 = vmatprep.subr.bf16.mxu0 %v8583_v2 }
 0x337   : > { %7942 = vmatpush3.bf16.msra.mxu0 %v8583_v2 }
 0x338   : > { %7943 = vmatprep.subr.bf16.mxu0 %v8584_v53 }
 0x33a   : > { %1645 = vmatmul.mubr.bf16.gmra.mrb[12].mxu0 %v1421_v55 }
 0x33b   : > { %7944 = vmatpush3.bf16.msra.mxu0 %v8584_v53  ;;  %7947 = vmatprep.mubr.bf16.mxu0 %v1418_v33  ;;  %v8929_v53 = vmov -1e+09  }
 0x33c   : > { %7945 = vmatprep.subr.bf16.mxu0 %v8585_v56 }
 0x33f   : > { %7946 = vmatpush3.bf16.msra.mxu0 %v8585_v56 }
 0x340   : > { %7967 = vmatprep.subr.bf16.mxu0 %v10756_v37 }
 0x342   : > { %7948 = vmatmul.mubr.bf16.vlgmr.msra.gmra.mrb[16].mxu0 %v1419_v23 }
 0x343   : > { %7951 = vmatprep.mubr.bf16.mxu0 %v1420_v50  ;;  %v8928_v50 = vmov 1966171168  }
 0x344   : > { %v1737_v26 = vunpack.c.l.s4 %v8928_v50 }
 0x346   : > { %v1738_v2 = vunpack.c.0.s8 %v1737_v26 }
 0x348   : > { %v9559_v52 = vsub.s32 %v1738_v2, %v9555_v49 }
 0x34a   : > { %7952 = vmatmul.mubr.bf16.gmra.mrb[20].mxu0 %v1421_v55  ;;  %10779 = vst [vmem:[#allocation13_spill] sm:$0xff] %v9559_v52  ;;  %v1733_v55 = vsel %vm1732_vm11, 0.0, %v8929_v53 }
 0x34b   : > { %7969 = vmatprep.mubr.msk.bf16.mxu0 %vm8927_vm0, %v10756_v37  ;;  %v1742_v56 = vrot.slane %v1733_v55, %v9559_v52 }
 0x3f5   : > { %v1616_v38 = vpop.f32.mrb[0].mxu0 }
 0x3f6   : > { %v1618_v4 = vpop.f32.mrb[1].mxu0  ;;  %v9452_v46 = vpack.c.bf16 %v1616_v38, %v1616_v38  ;;  %v1758_v38 = vrot.slane %v1742_v56, %v9559_v52 }
 0x3f7   : > { %v9445_v29 = vpack.c.bf16 %v1618_v4, %v1618_v4  ;;  %v1620_v57 = vpop.f32.mrb[2].mxu0  ;;  %v9564_v4 = vsub.s32 0, %v9555_v49 }
 0x3f8   : > { %v1622_v58 = vpop.f32.mrb[3].mxu0  ;;  %v9468_v20 = vpack.c.bf16 %v1620_v57, %v1620_v57 }
 0x3f9   : > { %v1905_v24 = vsel %vm1900_vm4, %v9445_v29, 0  ;;  %v9450_v60 = vpack.c.bf16 %v1622_v58, %v1622_v58  ;;  %10780 = vst [vmem:[#allocation14_spill] sm:$0xff] %v9564_v4  ;;  %v9567_v57 = vrot.slane %v1758_v38, %v9564_v4  ;;  %v1750_v58 = vcombine.high %v1742_v56, %v1742_v56 }
 0x3fa   : > { %7956 = vmatpush3.bf16.xpose.msra.mxu1 %v1905_v24 }
 0x3fb   : > { %7961 = vmatprep.subr.bf16.mxu1 %v10756_v37  ;;  %v1951_v0 = vsel %vm1900_vm4, %v9450_v60, 0 }
 0x3fd   : > { %v1626_v61 = vpop.f32.mrb[4].mxu0 }
 0x3fe   : > { %v1628_v11 = vpop.f32.mrb[5].mxu0  ;;  %v9470_v35 = vpack.c.bf16 %v1626_v61, %v1626_v61 }
 0x3ff   : > { %v9454_v62 = vpack.c.bf16 %v1628_v11, %v1628_v11  ;;  %v1630_v6 = vpop.f32.mrb[6].mxu0 }
 0x400   : > { %v1632_v10 = vpop.f32.mrb[7].mxu0  ;;  %v9490_v19 = vpack.c.bf16 %v1630_v6, %v1630_v6  ;;  %v1772_v6 = vrot.slane %v1750_v58, %v9559_v52 }
 0x401   : > { %7958 = vmatmul.mubr.msk.bf16.vlgmr.msra.gmra.mrb[0].mxu1 %vm1900_vm4, %v9452_v46  ;;  %v1997_v34 = vsel %vm1900_vm4, %v9454_v62, 0  ;;  %v9466_v8 = vpack.c.bf16 %v1632_v10, %v1632_v10  ;;  %v1780_v10 = vcombine.high %v1758_v38, %v1758_v38 }
 0x402   : > { %7962 = vmatpush3.bf16.xpose.msra.mxu1 %v1951_v0  ;;  %7968 = vmatpush3.bf16.xpose.msra.mxu0 %v1997_v34  ;;  %v1735_v0 = vcombine.high %v1733_v55, %v1733_v55 }
 0x403   : > { %7963 = vmatprep.mubr.msk.bf16.mxu1 %vm8927_vm0, %v10756_v37  ;;  %7973 = vmatprep.subr.bf16.mxu1 %v10756_v37  ;;  %v2043_v13 = vsel %vm1900_vm4, %v9466_v8, 0 }
 0x404   : > { %7979 = vmatprep.subr.bf16.mxu0 %v10756_v37 }
 0x405   : > { %v1636_v63 = vpop.f32.mrb[8].mxu0 }
 0x406   : > { %v1638_v5 = vpop.f32.mrb[9].mxu0  ;;  %v9492_v14 = vpack.c.bf16 %v1636_v63, %v1636_v63 }
 0x407   : > { %v9472_v9 = vpack.c.bf16 %v1638_v5, %v1638_v5  ;;  %v1640_v31 = vpop.f32.mrb[10].mxu0 }
 0x408   : > { %v1642_v12 = vpop.f32.mrb[11].mxu0  ;;  %v9516_v40 = vpack.c.bf16 %v1640_v31, %v1640_v31  ;;  %v9576_v31 = vrot.slane %v1772_v6, %v9564_v4 }
 0x409   : > { %7964 = vmatmul.mubr.msk.bf16.vlgmr.msra.gmra.mrb[4].mxu1 %vm1900_vm4, %v9468_v20  ;;  %7970 = vmatmul.mubr.msk.bf16.vlgmr.msra.gmra.mrb[24].mxu0 %vm1900_vm4, %v9470_v35  ;;  %v2089_v18 = vsel %vm1900_vm4, %v9472_v9, 0  ;;  %v9488_v41 = vpack.c.bf16 %v1642_v12, %v1642_v12  ;;  %v9579_v12 = vrot.slane %v1780_v10, %v9564_v4 }
 0x40a   : > { %7974 = vmatpush3.bf16.xpose.msra.mxu1 %v2043_v13  ;;  %7980 = vmatpush3.bf16.xpose.msra.mxu0 %v2089_v18  ;;  %v1749_v13 = vrot.slane %v1735_v0, %v9559_v52 }
 0x40b   : > { %7975 = vmatprep.mubr.msk.bf16.mxu1 %vm8927_vm0, %v10756_v37  ;;  %7981 = vmatprep.mubr.msk.bf16.mxu0 %vm8927_vm0, %v10756_v37  ;;  %v2135_v59 = vsel %vm1900_vm4, %v9488_v41, 0 }
 0x40c   : > { %7985 = vmatprep.subr.bf16.mxu1 %v10756_v37  ;;  %7991 = vmatprep.subr.bf16.mxu0 %v10756_v37  ;;  %v1751_v53 = vcombine.high %v1749_v13, %v1749_v13 }
 0x40d   : > { %v1646_v42 = vpop.f32.mrb[12].mxu0 }
 0x40e   : > { %v1648_v39 = vpop.f32.mrb[13].mxu0  ;;  %v9512_v33 = vpack.c.bf16 %v1646_v42, %v1646_v42 }
 0x40f   : > { %v9494_v21 = vpack.c.bf16 %v1648_v39, %v1648_v39  ;;  %v1650_v25 = vpop.f32.mrb[14].mxu0 }
 0x410   : > { %v1652_v27 = vpop.f32.mrb[15].mxu0  ;;  %v9536_v17 = vpack.c.bf16 %v1650_v25, %v1650_v25 }
 0x411   : > { %7976 = vmatmul.mubr.msk.bf16.vlgmr.msra.gmra.mrb[8].mxu1 %vm1900_vm4, %v9490_v19  ;;  %7982 = vmatmul.mubr.msk.bf16.vlgmr.msra.gmra.mrb[28].mxu0 %vm1900_vm4, %v9492_v14  ;;  %v2181_v32 = vsel %vm1900_vm4, %v9494_v21, 0  ;;  %v9504_v28 = vpack.c.bf16 %v1652_v27, %v1652_v27 }
 0x412   : > { %7986 = vmatpush3.bf16.xpose.msra.mxu1 %v2135_v59  ;;  %7992 = vmatpush3.bf16.xpose.msra.mxu0 %v2181_v32  ;;  %v1782_v32 = vcombine.high %v1772_v6, %v1772_v6  ;;  %v1779_v6 = vrot.slane %v1751_v53, %v9559_v52 }
 0x413   : > { %7987 = vmatprep.mubr.msk.bf16.mxu1 %vm8927_vm0, %v10756_v37  ;;  %7993 = vmatprep.mubr.msk.bf16.mxu0 %vm8927_vm0, %v10756_v37  ;;  %v2227_v15 = vsel %vm1900_vm4, %v9504_v28, 0 }
 0x414   : > { %7997 = vmatprep.subr.bf16.mxu1 %v10756_v37  ;;  %8003 = vmatprep.subr.bf16.mxu0 %v10756_v37  ;;  %v9594_v16 = vrot.slane %v1782_v32, %v9564_v4 }
 0x415   : > { %v9514_v22 = vpop.f32.mrb[16].mxu0 }
 0x416   : > { %v1689_v36 = vpop.f32.mrb[17].mxu0 }
 0x417   : > { %v9518_v3 = vpack.c.bf16 %v1689_v36, %v1689_v36  ;;  %v9520_v7 = vpop.f32.mrb[18].mxu0  ;;  %v1765_v36 = vrot.slane %v1749_v13, %v9559_v52  ;;  %v9605_v13 = vrot.slane %v1779_v6, %v9564_v4 }
 0x418   : > { %v1692_v23 = vpop.f32.mrb[19].mxu0 }
 0x419   : > { %7988 = vmatmul.mubr.msk.bf16.vlgmr.msra.gmra.mrb[12].mxu1 %vm1900_vm4, %v9516_v40  ;;  %7994 = vmatmul.mubr.msk.bf16.vlgmr.msra.gmra.mrb[32].mxu0 %vm1900_vm4, %v9512_v33  ;;  %v2371_v51 = vsel %vm2369_vm5, %v9518_v3, 0  ;;  %v9538_v43 = vpack.c.bf16 %v1692_v23, %v1692_v23  ;;  %v9597_v2 = vrot.slane %v1765_v36, %v9564_v4  ;;  %v1781_v10 = vcombine.high %v1765_v36, %v1765_v36 }
 0x41a   : > { %7998 = vmatpush3.bf16.xpose.msra.mxu1 %v2227_v15  ;;  %8004 = vmatpush3.bf16.msra.mxu0 %v2371_v51 }
 0x41b   : > { %7999 = vmatprep.mubr.msk.bf16.mxu1 %vm8927_vm0, %v10756_v37  ;;  %8009 = vmatprep.subr.bf16.mxu1 %v10756_v37  ;;  %v2417_v48 = vsel %vm2369_vm5, %v9538_v43, 0 }
 0x41c   : > { %8005 = vmatprep.mubr.msk.bf16.mxu0 %vm8927_vm0, %v10756_v37  ;;  %8015 = vmatprep.subr.bf16.mxu0 %v10756_v37 }
 0x41d   : > { %v9540_v44 = vpop.f32.mrb[20].mxu0 }
 0x41e   : > { %v9542_v45 = vpop.f32.mrb[21].mxu0 }
 0x41f   : > { %v9544_v47 = vpop.f32.mrb[22].mxu0 }
 0x420   : > { %v9546_v30 = vpop.f32.mrb[23].mxu0 }
 0x421   : > { %8000 = vmatmul.mubr.msk.bf16.vlgmr.msra.gmra.mrb[16].mxu1 %vm1900_vm4, %v9536_v17 }
 0x422   : > { %8010 = vmatpush3.bf16.msra.mxu1 %v2417_v48  ;;  %8011 = vmatprep.mubr.msk.bf16.mxu1 %vm8927_vm0, %v10756_v37 }
 0x423   : > { %8021 = vmatprep.subr.bf16.mxu1 %v10756_v37 }
 0x4d4   : > { %v1941_v24 = vpop.f32.mrb[0].mxu1 }
 0x4d5   : > { %v9570_v61 = vadd.f32 %v1941_v24, %v9567_v57  ;;  %v7959_v11 = vpop.f32.mrb[1].mxu1 }
 0x4d6   : > { %v1944_v34 = vpop.f32.mrb[2].mxu1 }
 0x4d7   : > { %v7960_v63 = vpop.f32.mrb[3].mxu1  ;;  %v2270_v5 = vsel %vm2269_vm6, %v9570_v61, -inf }
 0x4d8   : > { %2271 = vmax.xlane.f32.xlu0 %v2270_v5 }
 0x4dc   : > { %v1987_v18 = vpop.f32.mrb[4].mxu1  ;;  %v2033_v42 = vpop.f32.mrb[24].mxu0 }
 0x4dd   : > { %v9583_v39 = vadd.f32 %v1987_v18, %v9576_v31  ;;  %v9586_v25 = vadd.f32 %v2033_v42, %v9579_v12  ;;  %v7965_v27 = vpop.f32.mrb[5].mxu1  ;;  %v7971_v59 = vpop.f32.mrb[25].mxu0 }
 0x4de   : > { %v1990_v15 = vpop.f32.mrb[6].mxu1  ;;  %v2036_v23 = vpop.f32.mrb[26].mxu0  ;;  %v9608_v27 = vrot.slane %v1781_v10, %v9564_v4 }
 0x4df   : > { %v7966_v51 = vpop.f32.mrb[7].mxu1  ;;  %v7972_v48 = vpop.f32.mrb[27].mxu0  ;;  %v2273_v50 = vsel %vm2269_vm6, %v9583_v39, -inf  ;;  %v2276_v26 = vsel %vm2269_vm6, %v9586_v25, -inf }
 0x4e0   : > { %2274 = vmax.xlane.f32.xlu1 %v2273_v50  ;;  %2277 = vmax.xlane.f32.xlu0 %v2276_v26  ;;  %v1783_v51 = vcombine.high %v1779_v6, %v1779_v6 }
 0x4e4   : > { %v2079_v55 = vpop.f32.mrb[8].mxu1  ;;  %v2125_v56 = vpop.f32.mrb[28].mxu0 }
 0x4e5   : > { %v2080_v38 = vadd.f32 %v2079_v55, %v9594_v16  ;;  %v2126_v58 = vadd.f32 %v2125_v56, %v9597_v2  ;;  %v7977_v24 = vpop.f32.mrb[9].mxu1  ;;  %v7983_v11 = vpop.f32.mrb[29].mxu0 }
 0x4e6   : > { %v2082_v0 = vpop.f32.mrb[10].mxu1  ;;  %v2128_v34 = vpop.f32.mrb[30].mxu0  ;;  %v9615_v11 = vrot.slane %v1783_v51, %v9564_v4 }
 0x4e7   : > { %v7978_v63 = vpop.f32.mrb[11].mxu1  ;;  %v7984_v5 = vpop.f32.mrb[31].mxu0  ;;  %v2279_v18 = vsel %vm2269_vm6, %v2080_v38, -inf  ;;  %v2282_v42 = vsel %vm2269_vm6, %v2126_v58, -inf }
 0x4e8   : > { %2280 = vmax.xlane.f32.xlu1 %v2279_v18  ;;  %2283 = vmax.xlane.f32.xlu0 %v2282_v42 }
 0x4ec   : > { %v2171_v59 = vpop.f32.mrb[12].mxu1  ;;  %v2217_v32 = vpop.f32.mrb[32].mxu0 }
 0x4ed   : > { %v2172_v36 = vadd.f32 %v2171_v59, %v9605_v13  ;;  %v2218_v15 = vadd.f32 %v2217_v32, %v9608_v27  ;;  %v7989_v23 = vpop.f32.mrb[13].mxu1  ;;  %v7995_v48 = vpop.f32.mrb[33].mxu0 }
 0x4ee   : > { %v2174_v50 = vpop.f32.mrb[14].mxu1  ;;  %v2220_v26 = vpop.f32.mrb[34].mxu0 }
 0x4ef   : > { %v7990_v53 = vpop.f32.mrb[15].mxu1  ;;  %v2285_v55 = vsel %vm2269_vm6, %v2172_v36, -inf  ;;  %v2288_v56 = vsel %vm2269_vm6, %v2218_v15, -inf  ;;  %v7996_v24 = vpop.f32.mrb[35].mxu0 }
 0x4f0   : > { %2286 = vmax.xlane.f32.xlu1 %v2285_v55  ;;  %2289 = vmax.xlane.f32.xlu0 %v2288_v56 }
 0x4f4   : > { %v2263_v10 = vpop.f32.mrb[16].mxu1 }
 0x4f5   : > { %v9618_v0 = vadd.f32 %v2263_v10, %v9615_v11  ;;  %v8001_v34 = vpop.f32.mrb[17].mxu1 }
 0x4f6   : > { %v2266_v6 = vpop.f32.mrb[18].mxu1 }
 0x4f7   : > { %v2291_v63 = vsel %vm2269_vm6, %v9618_v0, -inf  ;;  %v8002_v5 = vpop.f32.mrb[19].mxu1 }
 0x4f8   : > { %2292 = vmax.xlane.f32.xlu1 %v2291_v63 }
 0x565   : > { %v2272_v18 = vpop.xlane.xlu0 %2271 }
 0x566   : > { %v2294_v42 = vsub.f32 %v9570_v61, %v2272_v18 }
 0x568   : > { %v2302_v59 = vmul.f32 1.442695, %v2294_v42 }
 0x56a   : > { %8674 = vpow2.f32 %v2302_v59 }
 0x56d   : > { %v2275_v32 = vpop.xlane.xlu1 %2274  ;;  %v2278_v23 = vpop.xlane.xlu0 %2277 }
 0x56e   : > { %v2295_v51 = vsub.f32 %v9583_v39, %v2275_v32  ;;  %v2296_v48 = vsub.f32 %v9586_v25, %v2278_v23 }
 0x570   : > { %v2304_v50 = vmul.f32 1.442695, %v2295_v51  ;;  %v2306_v26 = vmul.f32 1.442695, %v2296_v48 }
 0x572   : > { %8676 = vpow2.f32 %v2304_v50 }
 0x573   : > { %8678 = vpow2.f32 %v2306_v26 }
 0x574   : > { %v9625_v53 = vpop.eup %8674 }
 0x575   : > { %v2281_v55 = vpop.xlane.xlu1 %2280  ;;  %v2284_v56 = vpop.xlane.xlu0 %2283  ;;  %v2318_v24 = vsel %vm2269_vm6, %v9625_v53, 0.0 }
 0x576   : > { %v2297_v61 = vsub.f32 %v2080_v38, %v2281_v55  ;;  %v2298_v10 = vsub.f32 %v2126_v58, %v2284_v56  ;;  %2319 = vadd.xlane.f32.xlu0 %v2318_v24 }
 0x578   : > { %v2308_v34 = vmul.f32 1.442695, %v2297_v61  ;;  %v2310_v6 = vmul.f32 1.442695, %v2298_v10 }
 0x57a   : > { %8680 = vpow2.f32 %v2308_v34 }
 0x57b   : > { %8682 = vpow2.f32 %v2310_v6 }
 0x57c   : > { %v9629_v39 = vpop.eup %8676 }
 0x57d   : > { %v9631_v25 = vpop.eup %8678  ;;  %v2287_v63 = vpop.xlane.xlu1 %2286  ;;  %v2321_v18 = vsel %vm2269_vm6, %v9629_v39, 0.0 }
 0x57e   : > { %v2290_v5 = vpop.xlane.xlu0 %2289  ;;  %v2299_v42 = vsub.f32 %v2172_v36, %v2287_v63  ;;  %2322 = vadd.xlane.f32.xlu1 %v2321_v18  ;;  %v2324_v38 = vsel %vm2269_vm6, %v9631_v25, 0.0  ;;  %v9692_v18 = vpack.c.bf16 %v9514_v22, %v9514_v22 }
 0x57f   : > { %v2300_v59 = vsub.f32 %v2218_v15, %v2290_v5  ;;  %2325 = vadd.xlane.f32.xlu0 %v2324_v38 }
 0x580   : > { %v2312_v58 = vmul.f32 1.442695, %v2299_v42 }
 0x581   : > { %v2314_v32 = vmul.f32 1.442695, %v2300_v59 }
 0x582   : > { %8684 = vpow2.f32 %v2312_v58  ;;  %v2463_v58 = vsel %vm2369_vm5, %v9692_v18, 0 }
 0x583   : > { %8686 = vpow2.f32 %v2314_v32 }
 0x584   : > { %v9637_v23 = vpop.eup %8680 }
 0x585   : > { %v9639_v51 = vpop.eup %8682  ;;  %v2327_v48 = vsel %vm2269_vm6, %v9637_v23, 0.0  ;;  %v2293_v56 = vpop.xlane.xlu1 %2292 }
 0x586   : > { %2328 = vadd.xlane.f32.xlu1 %v2327_v48  ;;  %v2330_v36 = vsel %vm2269_vm6, %v9639_v51, 0.0  ;;  %v2301_v24 = vsub.f32 %v9618_v0, %v2293_v56 }
 0x587   : > { %2331 = vadd.xlane.f32.xlu0 %v2330_v36 }
 0x588   : > { %v2316_v61 = vmul.f32 1.442695, %v2301_v24 }
 0x58a   : > { %8688 = vpow2.f32 %v2316_v61 }
 0x58c   : > { %v9645_v15 = vpop.eup %8684 }
 0x58d   : > { %v9647_v50 = vpop.eup %8686  ;;  %v2333_v26 = vsel %vm2269_vm6, %v9645_v15, 0.0 }
 0x58e   : > { %2334 = vadd.xlane.f32.xlu1 %v2333_v26  ;;  %v2336_v55 = vsel %vm2269_vm6, %v9647_v50, 0.0  ;;  %v9708_v26 = vpack.c.bf16 %v9542_v45, %v9542_v45 }
 0x58f   : > { %2337 = vadd.xlane.f32.xlu0 %v2336_v55 }
 0x594   : > { %v9672_v10 = vpop.eup %8688 }
 0x595   : > { %v2339_v34 = vsel %vm2269_vm6, %v9672_v10, 0.0 }
 0x59f   : > { %2791 = vrot.lane.b32.xlu1 %v9450_v60, %s8930_s2 }
 0x5a3   : > { %2739 = vrot.lane.b32.xlu1 %v9452_v46, %s8930_s2 }
 0x5a5   : > { %2741 = vrot.lane.b32.xlu0 %v9445_v29, %s8930_s2 }
 0x5a9   : > { %2841 = vrot.lane.b32.xlu0 %v9454_v62, %s8930_s2 }
 0x5ad   : > { %2839 = vrot.lane.b32.xlu0 %v9470_v35, %s8930_s2 }
 0x5b1   : > { %2941 = vrot.lane.b32.xlu0 %v9472_v9, %s8930_s2 }
 0x5b5   : > { %2939 = vrot.lane.b32.xlu0 %v9492_v14, %s8930_s2 }
 0x5b9   : > { %3041 = vrot.lane.b32.xlu0 %v9494_v21, %s8930_s2 }
 0x5bd   : > { %3039 = vrot.lane.b32.xlu0 %v9512_v33, %s8930_s2 }
 0x5c7   : > { %2340 = vadd.xlane.f32.xlu1 %v2339_v34 }
 0x5d8   : > { %2789 = vrot.lane.b32.xlu1 %v9468_v20, %s8930_s2 }
 0x5dc   : > { %2891 = vrot.lane.b32.xlu1 %v9466_v8, %s8930_s2 }
 0x5e0   : > { %2889 = vrot.lane.b32.xlu1 %v9490_v19, %s8930_s2 }
 0x5e4   : > { %2991 = vrot.lane.b32.xlu1 %v9488_v41, %s8930_s2 }
 0x5e8   : > { %2989 = vrot.lane.b32.xlu1 %v9516_v40, %s8930_s2 }
 0x5ec   : > { %3091 = vrot.lane.b32.xlu1 %v9504_v28, %s8930_s2 }
 0x5f0   : > { %3089 = vrot.lane.b32.xlu1 %v9536_v17, %s8930_s2 }
 0x603   : > { %v2320_v0 = vpop.xlane.xlu0 %2319 }
 0x604   : > { %8690 = vrcp.f32 %v2320_v0  ;;  %v9724_v0 = vpack.c.bf16 %v9546_v30, %v9546_v30 }
 0x60b   : > { %v2323_v6 = vpop.xlane.xlu1 %2322 }
 0x60c   : > { %8692 = vrcp.f32 %v2323_v6  ;;  %v2326_v63 = vpop.xlane.xlu0 %2325 }
 0x60d   : > { %8694 = vrcp.f32 %v2326_v63  ;;  %v9730_v63 = vpack.c.bf16 %v9540_v44, %v9540_v44 }
 0x60e   : > { %v8691_v5 = vpop.eup %8690 }
 0x60f   : > { %v2350_v42 = vmul.f32 %v8691_v5, %v9625_v53  ;;  %v9703_v53 = vpack.c.bf16 %v9520_v7, %v9520_v7  ;;  %v2555_v7 = vsel %vm2369_vm5, %v9708_v26, 0  ;;  %v2647_v30 = vsel %vm2369_vm5, %v9730_v63, 0 }
 0x611   : > { %v2358_v59 = vpack.c.bf16 %v2350_v42, %v2350_v42  ;;  %v2509_v34 = vsel %vm2369_vm5, %v9703_v53, 0 }
 0x613   : > { %v2329_v38 = vpop.xlane.xlu1 %2328  ;;  %8006 = vmatmul.mubr.msk.bf16.vlgmr.msra.gmra.mrb[36].mxu0 %vm2269_vm6, %v2358_v59 }
 0x614   : > { %8696 = vrcp.f32 %v2329_v38  ;;  %8016 = vmatpush3.bf16.msra.mxu0 %v2463_v58  ;;  %v2332_v32 = vpop.xlane.xlu0 %2331  ;;  %8017 = vmatprep.mubr.msk.bf16.mxu0 %vm8927_vm0, %v10756_v37  ;;  %v2601_v38 = vsel %vm2369_vm5, %v9724_v0, 0 }
 0x615   : > { %8698 = vrcp.f32 %v2332_v32  ;;  %8027 = vmatprep.subr.bf16.mxu0 %v10756_v37 }
 0x616   : > { %v8693_v22 = vpop.eup %8692 }
 0x617   : > { %v8695_v48 = vpop.eup %8694  ;;  %v2351_v36 = vmul.f32 %v8693_v22, %v9629_v39 }
 0x618   : > { %v2352_v55 = vmul.f32 %v8695_v48, %v9631_v25 }
 0x619   : > { %v2359_v56 = vpack.c.bf16 %v2351_v36, %v2351_v36 }
 0x61a   : > { %v2360_v24 = vpack.c.bf16 %v2352_v55, %v2352_v55 }
 0x61b   : > { %v2335_v61 = vpop.xlane.xlu1 %2334  ;;  %8012 = vmatmul.mubr.msk.bf16.vlgmr.msra.gmra.mrb[20].mxu1 %vm2269_vm6, %v2359_v56 }
 0x61c   : > { %8700 = vrcp.f32 %v2335_v61  ;;  %8018 = vmatmul.mubr.msk.bf16.vlgmr.msra.gmra.mrb[40].mxu0 %vm2269_vm6, %v2360_v24  ;;  %8022 = vmatpush3.bf16.msra.mxu1 %v2509_v34  ;;  %v2338_v39 = vpop.xlane.xlu0 %2337 }
 0x61d   : > { %8028 = vmatpush3.bf16.msra.mxu0 %v2555_v7  ;;  %8702 = vrcp.f32 %v2338_v39  ;;  %8023 = vmatprep.mubr.msk.bf16.mxu1 %vm8927_vm0, %v10756_v37 }
 0x61e   : > { %v8697_v45 = vpop.eup %8696  ;;  %8029 = vmatprep.mubr.msk.bf16.mxu0 %vm8927_vm0, %v10756_v37  ;;  %8033 = vmatprep.subr.bf16.mxu1 %v10756_v37 }
 0x61f   : > { %v8699_v25 = vpop.eup %8698  ;;  %8039 = vmatprep.subr.bf16.mxu0 %v10756_v37  ;;  %v2353_v6 = vmul.f32 %v8697_v45, %v9637_v23 }
 0x620   : > { %v2354_v5 = vmul.f32 %v8699_v25, %v9639_v51  ;;  %v2742_v58 = vpop.permute.xlu0 %2741  ;;  %v9746_v51 = vpack.c.bf16 %v9544_v47, %v9544_v47 }
 0x621   : > { %v2361_v42 = vpack.c.bf16 %v2353_v6, %v2353_v6  ;;  %v2747_v47 = vsel %vm1900_vm4, %v2742_v58, 0 }
 0x622   : > { %v2362_v59 = vpack.c.bf16 %v2354_v5, %v2354_v5  ;;  %v2693_v56 = vsel %vm2369_vm5, %v9746_v51, 0 }
 0x623   : > { %8024 = vmatmul.mubr.msk.bf16.vlgmr.msra.gmra.mrb[24].mxu1 %vm2269_vm6, %v2361_v42 }
 0x624   : > { %8030 = vmatmul.mubr.msk.bf16.vlgmr.msra.gmra.mrb[44].mxu0 %vm2269_vm6, %v2362_v59  ;;  %8034 = vmatpush3.bf16.msra.mxu1 %v2601_v38  ;;  %v2842_v36 = vpop.permute.xlu0 %2841 }
 0x625   : > { %8040 = vmatpush3.bf16.msra.mxu0 %v2647_v30  ;;  %8035 = vmatprep.mubr.msk.bf16.mxu1 %vm8927_vm0, %v10756_v37  ;;  %v2847_v61 = vsel %vm1900_vm4, %v2842_v36, 0 }
 0x626   : > { %v8701_v44 = vpop.eup %8700  ;;  %8041 = vmatprep.mubr.msk.bf16.mxu0 %vm8927_vm0, %v10756_v37  ;;  %8045 = vmatprep.subr.bf16.mxu1 %v10756_v37 }
 0x627   : > { %v8703_v23 = vpop.eup %8702  ;;  %v2355_v32 = vmul.f32 %v8701_v44, %v9645_v15  ;;  %8051 = vmatprep.subr.bf16.mxu0 %v10756_v37  ;;  %v2792_v15 = vpop.permute.xlu1 %2791 }
 0x628   : > { %v2356_v22 = vmul.f32 %v8703_v23, %v9647_v50  ;;  %v2840_v50 = vpop.permute.xlu0 %2839  ;;  %v2797_v44 = vsel %vm1900_vm4, %v2792_v15, 0 }
 0x629   : > { %v2363_v48 = vpack.c.bf16 %v2355_v32, %v2355_v32 }
 0x62a   : > { %v2364_v55 = vpack.c.bf16 %v2356_v22, %v2356_v22 }
 0x62b   : > { %8036 = vmatmul.mubr.msk.bf16.vlgmr.msra.gmra.mrb[28].mxu1 %vm2269_vm6, %v2363_v48  ;;  %v2740_v24 = vpop.permute.xlu1 %2739 }
 0x62c   : > { %8042 = vmatmul.mubr.msk.bf16.vlgmr.msra.gmra.mrb[48].mxu0 %vm2269_vm6, %v2364_v55  ;;  %8046 = vmatpush3.bf16.msra.mxu1 %v2693_v56  ;;  %v2942_v34 = vpop.permute.xlu0 %2941 }
 0x62d   : > { %8053 = vmatprep.mubr.msk.bf16.mxu0 %vm8927_vm0, %v10756_v37  ;;  %8047 = vmatprep.mubr.msk.bf16.mxu1 %vm8927_vm0, %v10756_v37  ;;  %v2947_v39 = vsel %vm1900_vm4, %v2942_v34, 0 }
 0x62e   : > { %8052 = vmatpush3.bf16.xpose.msra.mxu0 %v2747_v47  ;;  %8057 = vmatprep.subr.bf16.mxu1 %v10756_v37 }
 0x62f   : > { %8063 = vmatprep.subr.bf16.mxu0 %v10756_v37 }
 0x630   : > { %v2940_v7 = vpop.permute.xlu0 %2939 }
 0x634   : > { %v3042_v45 = vpop.permute.xlu0 %3041 }
 0x635   : > { %8054 = vmatmul.mubr.msk.bf16.vlgmr.msra.gmra.mrb[52].mxu0 %vm1900_vm4, %v2740_v24  ;;  %v3047_v25 = vsel %vm1900_vm4, %v3042_v45, 0 }
 0x636   : > { %8064 = vmatpush3.bf16.xpose.msra.mxu0 %v2847_v61  ;;  %8065 = vmatprep.mubr.msk.bf16.mxu0 %vm8927_vm0, %v10756_v37 }
 0x637   : > { %8075 = vmatprep.subr.bf16.mxu0 %v10756_v37 }
 0x638   : > { %v3040_v6 = vpop.permute.xlu0 %3039 }
 0x63d   : > { %8066 = vmatmul.mubr.msk.bf16.vlgmr.msra.gmra.mrb[56].mxu0 %vm1900_vm4, %v2840_v50 }
 0x63e   : > { %8076 = vmatpush3.bf16.xpose.msra.mxu0 %v2947_v39  ;;  %8077 = vmatprep.mubr.msk.bf16.mxu0 %vm8927_vm0, %v10756_v37 }
 0x63f   : > { %8087 = vmatprep.subr.bf16.mxu0 %v10756_v37 }
 0x645   : > { %8078 = vmatmul.mubr.msk.bf16.vlgmr.msra.gmra.mrb[60].mxu0 %vm1900_vm4, %v2940_v7 }
 0x646   : > { %8088 = vmatpush3.bf16.xpose.msra.mxu0 %v3047_v25  ;;  %8089 = vmatprep.mubr.msk.bf16.mxu0 %vm8927_vm0, %v10756_v37 }
 0x647   : > { %8099 = vmatprep.subr.bf16.mxu0 %v10756_v37 }
 0x64d   : > { %8090 = vmatmul.mubr.msk.bf16.vlgmr.msra.gmra.mrb[64].mxu0 %vm1900_vm4, %v3040_v6 }
 0x64e   : > { %8101 = vmatprep.mubr.msk.bf16.mxu0 %vm8927_vm0, %v10756_v37 }
 0x654   : > { %v2341_v5 = vpop.xlane.xlu1 %2340 }
 0x655   : > { %8704 = vrcp.f32 %v2341_v5 }
 0x658   : > { %v2790_v42 = vpop.permute.xlu1 %2789 }
 0x65c   : > { %v2892_v58 = vpop.permute.xlu1 %2891 }
 0x65d   : > { %v2897_v32 = vsel %vm1900_vm4, %v2892_v58, 0 }
 0x65f   : > { %v8705_v59 = vpop.eup %8704 }
 0x660   : > { %v2357_v38 = vmul.f32 %v8705_v59, %v9672_v10  ;;  %v2890_v23 = vpop.permute.xlu1 %2889 }
 0x662   : > { %v2365_v30 = vpack.c.bf16 %v2357_v38, %v2357_v38 }
 0x664   : > { %8048 = vmatmul.mubr.msk.bf16.vlgmr.msra.gmra.mrb[32].mxu1 %vm2269_vm6, %v2365_v30  ;;  %v2992_v22 = vpop.permute.xlu1 %2991 }
 0x665   : > { %8058 = vmatpush3.bf16.xpose.msra.mxu1 %v2797_v44  ;;  %8059 = vmatprep.mubr.msk.bf16.mxu1 %vm8927_vm0, %v10756_v37  ;;  %v2997_v48 = vsel %vm1900_vm4, %v2992_v22, 0 }
 0x666   : > { %8069 = vmatprep.subr.bf16.mxu1 %v10756_v37 }
 0x668   : > { %v2990_v10 = vpop.permute.xlu1 %2989 }
 0x66c   : > { %8060 = vmatmul.mubr.msk.bf16.vlgmr.msra.gmra.mrb[36].mxu1 %vm1900_vm4, %v2790_v42  ;;  %v3092_v36 = vpop.permute.xlu1 %3091 }
 0x66d   : > { %8070 = vmatpush3.bf16.xpose.msra.mxu1 %v2897_v32  ;;  %8071 = vmatprep.mubr.msk.bf16.mxu1 %vm8927_vm0, %v10756_v37  ;;  %v3097_v55 = vsel %vm1900_vm4, %v3092_v36, 0 }
 0x66e   : > { %8081 = vmatprep.subr.bf16.mxu1 %v10756_v37 }
 0x670   : > { %v3090_v56 = vpop.permute.xlu1 %3089 }
 0x674   : > { %8072 = vmatmul.mubr.msk.bf16.vlgmr.msra.gmra.mrb[40].mxu1 %vm1900_vm4, %v2890_v23 }
 0x675   : > { %8082 = vmatpush3.bf16.xpose.msra.mxu1 %v2997_v48  ;;  %8083 = vmatprep.mubr.msk.bf16.mxu1 %vm8927_vm0, %v10756_v37 }
 0x676   : > { %8093 = vmatprep.subr.bf16.mxu1 %v10756_v37 }
 0x67c   : > { %8084 = vmatmul.mubr.msk.bf16.vlgmr.msra.gmra.mrb[44].mxu1 %vm1900_vm4, %v2990_v10 }
 0x67d   : > { %8094 = vmatpush3.bf16.xpose.msra.mxu1 %v3097_v55  ;;  %8095 = vmatprep.mubr.msk.bf16.mxu1 %vm8927_vm0, %v10756_v37 }
 0x67e   : > { %8105 = vmatprep.subr.bf16.mxu1 %v10756_v37 }
 0x684   : > { %8096 = vmatmul.mubr.msk.bf16.vlgmr.msra.gmra.mrb[48].mxu1 %vm1900_vm4, %v3090_v56 }
 0x685   : > { %8107 = vmatprep.mubr.msk.bf16.mxu1 %vm8927_vm0, %v10756_v37 }
 0x6e6   : > { %v9804_v47 = vpop.f32.mrb[36].mxu0 }
 0x6e7   : > { %v8007_v15 = vpop.f32.mrb[37].mxu0 }
 0x6e8   : > { %v2410_v50 = vpop.f32.mrb[38].mxu0 }
 0x6e9   : > { %v8008_v24 = vpop.f32.mrb[39].mxu0 }
 0x6ee   : > { %v9806_v61 = vpop.f32.mrb[20].mxu1 }
 0x6ef   : > { %v9810_v7 = vpop.f32.mrb[40].mxu0  ;;  %v8013_v39 = vpop.f32.mrb[21].mxu1 }
 0x6f0   : > { %v8019_v45 = vpop.f32.mrb[41].mxu0  ;;  %v2456_v25 = vpop.f32.mrb[22].mxu1 }
 0x6f1   : > { %v2502_v6 = vpop.f32.mrb[42].mxu0  ;;  %v8014_v5 = vpop.f32.mrb[23].mxu1 }
 0x6f2   : > { %v8020_v42 = vpop.f32.mrb[43].mxu0 }
 0x6f6   : > { %v9812_v59 = vpop.f32.mrb[24].mxu1 }
 0x6f7   : > { %v9816_v58 = vpop.f32.mrb[44].mxu0  ;;  %v8025_v30 = vpop.f32.mrb[25].mxu1 }
 0x6f8   : > { %v8031_v44 = vpop.f32.mrb[45].mxu0  ;;  %v2548_v23 = vpop.f32.mrb[26].mxu1 }
 0x6f9   : > { %v2594_v32 = vpop.f32.mrb[46].mxu0  ;;  %v8026_v22 = vpop.f32.mrb[27].mxu1 }
 0x6fa   : > { %v8032_v10 = vpop.f32.mrb[47].mxu0 }
 0x6fe   : > { %v9818_v48 = vpop.f32.mrb[28].mxu1 }
 0x6ff   : > { %v9822_v55 = vpop.f32.mrb[48].mxu0  ;;  %v8037_v56 = vpop.f32.mrb[29].mxu1 }
 0x700   : > { %v8043_v15 = vpop.f32.mrb[49].mxu0  ;;  %v2640_v50 = vpop.f32.mrb[30].mxu1 }
 0x701   : > { %v2686_v24 = vpop.f32.mrb[50].mxu0  ;;  %v8038_v39 = vpop.f32.mrb[31].mxu1 }
 0x702   : > { %v8044_v45 = vpop.f32.mrb[51].mxu0 }
 0x708   : > { %v2783_v25 = vpop.f32.mrb[52].mxu0 }
 0x709   : > { %v9825_v6 = vadd.f32 %v2783_v25, %v9567_v57  ;;  %v8055_v5 = vpop.f32.mrb[53].mxu0 }
 0x70a   : > { %v2786_v42 = vpop.f32.mrb[54].mxu0 }
 0x70b   : > { %v8056_v30 = vpop.f32.mrb[55].mxu0  ;;  %v3139_v44 = vsel %vm2269_vm6, %v9825_v6, -inf }
 0x70c   : > { %3140 = vmax.xlane.f32.xlu0 %v3139_v44 }
 0x710   : > { %v2883_v23 = vpop.f32.mrb[56].mxu0 }
 0x711   : > { %v9830_v32 = vadd.f32 %v2883_v23, %v9579_v12  ;;  %v8067_v22 = vpop.f32.mrb[57].mxu0 }
 0x712   : > { %v2886_v10 = vpop.f32.mrb[58].mxu0 }
 0x713   : > { %v8068_v56 = vpop.f32.mrb[59].mxu0  ;;  %v3145_v15 = vsel %vm2269_vm6, %v9830_v32, -inf }
 0x714   : > { %3146 = vmax.xlane.f32.xlu0 %v3145_v15 }
 0x718   : > { %v2983_v50 = vpop.f32.mrb[60].mxu0 }
 0x719   : > { %v8079_v24 = vpop.f32.mrb[61].mxu0  ;;  %v2984_v23 = vadd.f32 %v2983_v50, %v9597_v2 }
 0x71a   : > { %v2986_v39 = vpop.f32.mrb[62].mxu0 }
 0x71b   : > { %v8080_v45 = vpop.f32.mrb[63].mxu0 }
 0x720   : > { %v3083_v25 = vpop.f32.mrb[64].mxu0 }
 0x721   : > { %v8091_v5 = vpop.f32.mrb[65].mxu0 }
 0x722   : > { %v3086_v42 = vpop.f32.mrb[66].mxu0 }
 0x723   : > { %v8092_v30 = vpop.f32.mrb[67].mxu0 }
 0x737   : > { %v9834_v44 = vpop.f32.mrb[32].mxu1 }
 0x738   : > { %v8049_v22 = vpop.f32.mrb[33].mxu1 }
 0x739   : > { %v2732_v10 = vpop.f32.mrb[34].mxu1 }
 0x73a   : > { %v8050_v56 = vpop.f32.mrb[35].mxu1 }
 0x73f   : > { %v2833_v54 = vpop.f32.mrb[36].mxu1 }
 0x740   : > { %v2834_v36 = vadd.f32 %v2833_v54, %v9576_v31  ;;  %v8061_v15 = vpop.f32.mrb[37].mxu1  ;;  %v3084_v54 = vadd.f32 %v3083_v25, %v9608_v27 }
 0x741   : > { %v2836_v38 = vpop.f32.mrb[38].mxu1 }
 0x742   : > { %v8062_v24 = vpop.f32.mrb[39].mxu1  ;;  %v3142_v39 = vsel %vm2269_vm6, %v2834_v36, -inf  ;;  %v3151_v38 = vsel %vm2269_vm6, %v2984_v23, -inf }
 0x743   : > { %3143 = vmax.xlane.f32.xlu1 %v3142_v39 }
 0x747   : > { %v2933_v45 = vpop.f32.mrb[40].mxu1 }
 0x748   : > { %v9841_v5 = vadd.f32 %v2933_v45, %v9594_v16  ;;  %v8073_v42 = vpop.f32.mrb[41].mxu1 }
 0x749   : > { %v2936_v30 = vpop.f32.mrb[42].mxu1  ;;  %v3157_v42 = vsel %vm2269_vm6, %v3084_v54, -inf }
 0x74a   : > { %v8074_v22 = vpop.f32.mrb[43].mxu1  ;;  %v3148_v10 = vsel %vm2269_vm6, %v9841_v5, -inf }
 0x74b   : > { %3149 = vmax.xlane.f32.xlu0 %v3148_v10 }
 0x74f   : > { %v3033_v56 = vpop.f32.mrb[44].mxu1  ;;  %3152 = vmax.xlane.f32.xlu0 %v3151_v38 }
 0x750   : > { %v9849_v15 = vadd.f32 %v3033_v56, %v9605_v13  ;;  %v8085_v24 = vpop.f32.mrb[45].mxu1 }
 0x751   : > { %v3036_v39 = vpop.f32.mrb[46].mxu1 }
 0x752   : > { %v8086_v45 = vpop.f32.mrb[47].mxu1  ;;  %v3154_v50 = vsel %vm2269_vm6, %v9849_v15, -inf }
 0x753   : > { %3155 = vmax.xlane.f32.xlu1 %v3154_v50  ;;  %3158 = vmax.xlane.f32.xlu0 %v3157_v42 }
 0x757   : > { %v3133_v30 = vpop.f32.mrb[48].mxu1 }
 0x758   : > { %v8097_v22 = vpop.f32.mrb[49].mxu1  ;;  %v9861_v38 = vadd.f32 %v3133_v30, %v9615_v11 }
 0x759   : > { %v3136_v25 = vpop.f32.mrb[50].mxu1 }
 0x75a   : > { %v8098_v10 = vpop.f32.mrb[51].mxu1  ;;  %v3160_v56 = vsel %vm2269_vm6, %v9861_v38, -inf }
 0x764   : > { %3283 = vrot.lane.b32.xlu1 %v9538_v43, %s8930_s2 }
 0x768   : > { %3331 = vrot.lane.b32.xlu1 %v9692_v18, %s8930_s2 }
 0x769   : > { %3235 = vrot.lane.b32.xlu0 %v9518_v3, %s8930_s2 }
 0x78c   : > { %3161 = vmax.xlane.f32.xlu1 %v3160_v56 }
 0x799   : > { %v3141_v24 = vpop.xlane.xlu0 %3140 }
 0x79a   : > { %v3163_v39 = vsub.f32 %v9825_v6, %v3141_v24 }
 0x79c   : > { %v3171_v45 = vmul.f32 1.442695, %v3163_v39 }
 0x79d   : > { %3379 = vrot.lane.b32.xlu1 %v9703_v53, %s8930_s2 }
 0x79e   : > { %8706 = vpow2.f32 %v3171_v45 }
 0x7a1   : > { %v3147_v50 = vpop.xlane.xlu0 %3146 }
 0x7a2   : > { %v3165_v42 = vsub.f32 %v9830_v32, %v3147_v50 }
 0x7a4   : > { %v3175_v22 = vmul.f32 1.442695, %v3165_v42 }
 0x7a6   : > { %8708 = vpow2.f32 %v3175_v22 }
 0x7a8   : > { %v9869_v25 = vpop.eup %8706 }
 0x7a9   : > { %v3187_v30 = vsel %vm2269_vm6, %v9869_v25, 0.0 }
 0x7aa   : > { %3188 = vadd.xlane.f32.xlu0 %v3187_v30 }
 0x7b0   : > { %v9873_v10 = vpop.eup %8708 }
 0x7b1   : > { %v3193_v6 = vsel %vm2269_vm6, %v9873_v10, 0.0 }
 0x7b2   : > { %3194 = vadd.xlane.f32.xlu0 %v3193_v6 }
 0x7c8   : > { %3427 = vrot.lane.b32.xlu0 %v9708_v26, %s8930_s2 }
 0x7d0   : > { %v3144_v56 = vpop.xlane.xlu1 %3143 }
 0x7d1   : > { %v3164_v24 = vsub.f32 %v2834_v36, %v3144_v56 }
 0x7d3   : > { %v3173_v32 = vmul.f32 1.442695, %v3164_v24 }
 0x7d5   : > { %8710 = vpow2.f32 %v3173_v32 }
 0x7d8   : > { %v3150_v39 = vpop.xlane.xlu0 %3149 }
 0x7dc   : > { %v3153_v45 = vpop.xlane.xlu0 %3152 }
 0x7dd   : > { %v3167_v50 = vsub.f32 %v2984_v23, %v3153_v45  ;;  %v10781_v23 = vmov 0.0  }
 0x7df   : > { %v9879_v42 = vpop.eup %8710  ;;  %v3179_v22 = vmul.f32 1.442695, %v3167_v50 }
 0x7e0   : > { %v3156_v30 = vpop.xlane.xlu1 %3155  ;;  %v3159_v34 = vpop.xlane.xlu0 %3158  ;;  %v3190_v37 = vsel %vm2269_vm6, %v9879_v42, 0.0 }
 0x7e1   : > { %8712 = vpow2.f32 %v3179_v22  ;;  %v3169_v6 = vsub.f32 %v3084_v54, %v3159_v34  ;;  %3191 = vadd.xlane.f32.xlu1 %v3190_v37  ;;  %v3168_v54 = vsub.f32 %v9849_v15, %v3156_v30 }
 0x7e3   : > { %v3183_v1 = vmul.f32 1.442695, %v3169_v6  ;;  %v3181_v32 = vmul.f32 1.442695, %v3168_v54 }
 0x7e4   : > { %v3284_v49 = vpop.permute.xlu1 %3283  ;;  %v3236_v4 = vpop.permute.xlu0 %3235 }
 0x7e5   : > { %v3289_v36 = vsel %vm2369_vm5, %v3284_v49, 0  ;;  %v3241_v56 = vsel %vm2369_vm5, %v3236_v4, 0  ;;  %8714 = vpow2.f32 %v3183_v1  ;;  %v3166_v1 = vsub.f32 %v9841_v5, %v3150_v39 }
 0x7e6   : > { %8100 = vmatpush3.bf16.msra.mxu0 %v3241_v56  ;;  %8106 = vmatpush3.bf16.msra.mxu1 %v3289_v36 }
 0x7e7   : > { %8111 = vmatprep.subr.bf16.mxu0 %v10781_v23  ;;  %8117 = vmatprep.subr.bf16.mxu1 %v10781_v23  ;;  %v3177_v4 = vmul.f32 1.442695, %v3166_v1 }
 0x7e8   : > { %v3332_v5 = vpop.permute.xlu1 %3331 }
 0x7e9   : > { %8716 = vpow2.f32 %v3177_v4  ;;  %v3337_v54 = vsel %vm2369_vm5, %v3332_v5, 0 }
 0x7ea   : > { %8718 = vpow2.f32 %v3181_v32 }
 0x7eb   : > { %v9887_v24 = vpop.eup %8712 }
 0x7ec   : > { %v3199_v34 = vsel %vm2269_vm6, %v9887_v24, 0.0 }
 0x7ed   : > { %3200 = vadd.xlane.f32.xlu0 %v3199_v34 }
 0x7ef   : > { %v9891_v37 = vpop.eup %8714 }
 0x7f0   : > { %v3205_v49 = vsel %vm2269_vm6, %v9891_v37, 0.0 }
 0x7f1   : > { %3206 = vadd.xlane.f32.xlu0 %v3205_v49 }
 0x7f2   : > { %3475 = vrot.lane.b32.xlu1 %v9724_v0, %s8930_s2 }
 0x7f3   : > { %v9905_v45 = vpop.eup %8716 }
 0x7f4   : > { %v3196_v15 = vsel %vm2269_vm6, %v9905_v45, 0.0  ;;  %v9911_v39 = vpop.eup %8718 }
 0x7f5   : > { %v3202_v22 = vsel %vm2269_vm6, %v9911_v39, 0.0 }
 0x807   : > { %3523 = vrot.lane.b32.xlu0 %v9730_v63, %s8930_s2 }
 0x80b   : > { %3803 = vrot.lane.b32.xlu0 %v9445_v29, %s8931_s20 }
 0x80f   : > { %3853 = vrot.lane.b32.xlu0 %v9450_v60, %s8931_s20 }
 0x813   : > { %3903 = vrot.lane.b32.xlu0 %v9454_v62, %s8931_s20 }
 0x816   : > { %3197 = vadd.xlane.f32.xlu1 %v3196_v15 }
 0x817   : > { %3953 = vrot.lane.b32.xlu0 %v9466_v8, %s8931_s20 }
 0x819   : > { %v3162_v50 = vpop.xlane.xlu1 %3161 }
 0x81a   : > { %v3170_v30 = vsub.f32 %v9861_v38, %v3162_v50  ;;  %3203 = vadd.xlane.f32.xlu1 %v3202_v22 }
 0x81b   : > { %4003 = vrot.lane.b32.xlu0 %v9472_v9, %s8931_s20 }
 0x81c   : > { %v3185_v6 = vmul.f32 1.442695, %v3170_v30 }
 0x81e   : > { %8720 = vpow2.f32 %v3185_v6 }
 0x81f   : > { %4001 = vrot.lane.b32.xlu0 %v9492_v14, %s8931_s20 }
 0x823   : > { %4103 = vrot.lane.b32.xlu0 %v9494_v21, %s8931_s20 }
 0x827   : > { %4101 = vrot.lane.b32.xlu0 %v9512_v33, %s8931_s20 }
 0x828   : > { %v9924_v36 = vpop.eup %8720 }
 0x829   : > { %v3208_v38 = vsel %vm2269_vm6, %v9924_v36, 0.0 }
 0x82a   : > { %3209 = vadd.xlane.f32.xlu1 %v3208_v38 }
 0x837   : > { %v3189_v56 = vpop.xlane.xlu0 %3188 }
 0x838   : > { %8722 = vrcp.f32 %v3189_v56 }
 0x83b   : > { %3571 = vrot.lane.b32.xlu1 %v9746_v51, %s8930_s2 }
 0x83f   : > { %v3195_v34 = vpop.xlane.xlu0 %3194  ;;  %3801 = vrot.lane.b32.xlu1 %v9452_v46, %s8931_s20 }
 0x840   : > { %8724 = vrcp.f32 %v3195_v34 }
 0x842   : > { %v8723_v49 = vpop.eup %8722 }
 0x843   : > { %3851 = vrot.lane.b32.xlu1 %v9468_v20, %s8931_s20  ;;  %v3219_v1 = vmul.f32 %v8723_v49, %v9869_v25  ;;  %v3428_v15 = vpop.permute.xlu0 %3427 }
 0x844   : > { %v3433_v5 = vsel %vm2369_vm5, %v3428_v15, 0 }
 0x845   : > { %v3227_v4 = vpack.c.bf16 %v3219_v1, %v3219_v1 }
 0x847   : > { %8102 = vmatmul.mubr.msk.bf16.vlgmr.msra.gmra.mrb[68].mxu0 %vm2269_vm6, %v3227_v4  ;;  %3901 = vrot.lane.b32.xlu1 %v9470_v35, %s8931_s20 }
 0x848   : > { %8112 = vmatpush3.bf16.msra.mxu0 %v3337_v54  ;;  %8113 = vmatprep.mubr.msk.bf16.mxu0 %vm8927_vm0, %v10781_v23 }
 0x849   : > { %8123 = vmatprep.subr.bf16.mxu0 %v10781_v23 }
 0x84a   : > { %v8725_v32 = vpop.eup %8724 }
 0x84b   : > { %3951 = vrot.lane.b32.xlu1 %v9490_v19, %s8931_s20  ;;  %v3221_v25 = vmul.f32 %v8725_v32, %v9873_v10  ;;  %v3380_v10 = vpop.permute.xlu1 %3379 }
 0x84c   : > { %v3385_v34 = vsel %vm2369_vm5, %v3380_v10, 0 }
 0x84d   : > { %v3229_v50 = vpack.c.bf16 %v3221_v25, %v3221_v25  ;;  %v8586_v25 = vld [vmem:[%s9082_s0] sm:$0xff]  }
 0x84f   : > { %8114 = vmatmul.mubr.msk.bf16.vlgmr.msra.gmra.mrb[72].mxu0 %vm2269_vm6, %v3229_v50  ;;  %4053 = vrot.lane.b32.xlu1 %v9488_v41, %s8931_s20 }
 0x850   : > { %8124 = vmatpush3.bf16.msra.mxu0 %v3433_v5  ;;  %8125 = vmatprep.mubr.msk.bf16.mxu0 %vm8927_vm0, %v10781_v23 }
 0x851   : > { %8135 = vmatprep.subr.bf16.mxu0 %v10781_v23 }
 0x853   : > { %4051 = vrot.lane.b32.xlu1 %v9516_v40, %s8931_s20 }
 0x857   : > { %4153 = vrot.lane.b32.xlu1 %v9504_v28, %s8931_s20 }
 0x85b   : > { %4151 = vrot.lane.b32.xlu1 %v9536_v17, %s8931_s20 }
 0x86e   : > { %v3192_v22 = vpop.xlane.xlu1 %3191 }
 0x86f   : > { %8726 = vrcp.f32 %v3192_v22 }
 0x879   : > { %v8727_v30 = vpop.eup %8726 }
 0x87a   : > { %v3220_v6 = vmul.f32 %v8727_v30, %v9879_v42  ;;  %v3201_v38 = vpop.xlane.xlu0 %3200  ;;  %v8587_v30 = vld [vmem:[%s9082_s0 + $0x8] sm:$0xff]  }
 0x87b   : > { %8728 = vrcp.f32 %v3201_v38 }
 0x87c   : > { %v3228_v56 = vpack.c.bf16 %v3220_v6, %v3220_v6  ;;  %v10782_v6 = vpack.c.bf16 %v9806_v61, %v9804_v47  ;;  %v3476_v47 = vpop.permute.xlu1 %3475 }
 0x87e   : > { %8108 = vmatmul.mubr.msk.bf16.vlgmr.msra.gmra.mrb[52].mxu1 %vm2269_vm6, %v3228_v56  ;;  %v3207_v49 = vpop.xlane.xlu0 %3206 }
 0x87f   : > { %8118 = vmatpush3.bf16.msra.mxu1 %v3385_v34  ;;  %8119 = vmatprep.mubr.msk.bf16.mxu1 %vm8927_vm0, %v10781_v23  ;;  %8730 = vrcp.f32 %v3207_v49  ;;  %v10784_v34 = vpack.c.bf16 %v9818_v48, %v9816_v58 }
 0x880   : > { %8129 = vmatprep.subr.bf16.mxu1 %v10781_v23 }
 0x882   : > { %v3524_v1 = vpop.permute.xlu0 %3523 }
 0x883   : > { %v3529_v50 = vsel %vm2369_vm5, %v3524_v1, 0  ;;  %v10785_v1 = vpack.c.bf16 %v9834_v44, %v9822_v55 }
 0x885   : > { %v8729_v4 = vpop.eup %8728 }
 0x886   : > { %v3223_v42 = vmul.f32 %v8729_v4, %v9887_v24  ;;  %v9967_v54 = vpop.permute.xlu0 %3803 }
 0x888   : > { %v3231_v32 = vpack.c.bf16 %v3223_v42, %v3223_v42 }
 0x889   : > { %v8731_v15 = vpop.eup %8730 }
 0x88a   : > { %8126 = vmatmul.mubr.msk.bf16.vlgmr.msra.gmra.mrb[76].mxu0 %vm2269_vm6, %v3231_v32  ;;  %v9972_v5 = vpop.permute.xlu0 %3853  ;;  %v3225_v10 = vmul.f32 %v8731_v15, %v9891_v37  ;;  %v10783_v37 = vpack.c.bf16 %v9812_v59, %v9810_v7 }
 0x88b   : > { %8136 = vmatpush3.bf16.msra.mxu0 %v3529_v50  ;;  %8137 = vmatprep.mubr.msk.bf16.mxu0 %vm8927_vm0, %v10781_v23 }
 0x88c   : > { %8159 = vmatprep.subr.bf16.mxu0 %v8586_v25  ;;  %v3233_v24 = vpack.c.bf16 %v3225_v10, %v3225_v10 }
 0x88e   : > { %v9977_v22 = vpop.permute.xlu0 %3903 }
 0x892   : > { %8138 = vmatmul.mubr.msk.bf16.vlgmr.msra.gmra.mrb[80].mxu0 %vm2269_vm6, %v3233_v24  ;;  %v9985_v38 = vpop.permute.xlu0 %3953 }
 0x893   : > { %8160 = vmatpush3.bf16.msra.mxu0 %v8586_v25  ;;  %8163 = vmatprep.mubr.msk.bf16.mxu0 %vm1900_vm4, %v10782_v6  ;;  %v3481_v25 = vsel %vm2369_vm5, %v3476_v47, 0 }
 0x894   : > { %8161 = vmatprep.subr.bf16.mxu0 %v8587_v30 }
 0x896   : > { %v4004_v56 = vpop.permute.xlu0 %4003 }
 0x897   : > { %8162 = vmatpush3.bf16.msra.mxu0 %v8587_v30  ;;  %v4009_v61 = vsel %vm1900_vm4, %v4004_v56, 0  ;;  %v8589_v56 = vld [vmem:[%s9082_s0 + $0x18] sm:$0xff]  }
 0x898   : > { %8195 = vmatprep.subr.bf16.mxu0 %v10781_v23 }
 0x89a   : > { %8164 = vmatmul.mubr.msk.bf16.vlgmr.msra.gmra.mrb[84].mxu0 %vm1900_vm4, %v10783_v37  ;;  %v4002_v49 = vpop.permute.xlu0 %4001 }
 0x89b   : > { %8167 = vmatprep.mubr.msk.bf16.mxu0 %vm1900_vm4, %v10784_v34 }
 0x89e   : > { %v4104_v59 = vpop.permute.xlu0 %4103 }
 0x89f   : > { %v4109_v48 = vsel %vm1900_vm4, %v4104_v59, 0 }
 0x8a0   : > { %8196 = vmatpush3.bf16.xpose.msra.mxu0 %v4009_v61 }
 0x8a1   : > { %8207 = vmatprep.subr.bf16.mxu0 %v10781_v23 }
 0x8a2   : > { %8168 = vmatmul.mubr.msk.bf16.gmra.mrb[88].mxu0 %vm1900_vm4, %v10785_v1  ;;  %v4102_v4 = vpop.permute.xlu0 %4101 }
 0x8a3   : > { %v3198_v7 = vpop.xlane.xlu1 %3197  ;;  %8197 = vmatprep.mubr.msk.bf16.mxu0 %vm8927_vm0, %v10781_v23 }
 0x8a4   : > { %8732 = vrcp.f32 %v3198_v7 }
 0x8a7   : > { %v3204_v58 = vpop.xlane.xlu1 %3203 }
 0x8a8   : > { %8734 = vrcp.f32 %v3204_v58 }
 0x8aa   : > { %8198 = vmatmul.mubr.msk.bf16.vlgmr.msra.gmra.mrb[92].mxu0 %vm1900_vm4, %v4002_v49 }
 0x8ab   : > { %8208 = vmatpush3.bf16.xpose.msra.mxu0 %v4109_v48  ;;  %8209 = vmatprep.mubr.msk.bf16.mxu0 %vm8927_vm0, %v10781_v23 }
 0x8ac   : > { %8219 = vmatprep.subr.bf16.mxu0 %v10781_v23 }
 0x8ae   : > { %v8733_v55 = vpop.eup %8732 }
 0x8af   : > { %v3222_v44 = vmul.f32 %v8733_v55, %v9905_v45 }
 0x8b1   : > { %v3230_v42 = vpack.c.bf16 %v3222_v44, %v3222_v44 }
 0x8b2   : > { %v8735_v32 = vpop.eup %8734  ;;  %8210 = vmatmul.mubr.msk.bf16.vlgmr.msra.gmra.mrb[96].mxu0 %vm1900_vm4, %v4102_v4 }
 0x8b3   : > { %8120 = vmatmul.mubr.msk.bf16.vlgmr.msra.gmra.mrb[56].mxu1 %vm2269_vm6, %v3230_v42  ;;  %8221 = vmatprep.mubr.msk.bf16.mxu0 %vm8927_vm0, %v10781_v23  ;;  %v3224_v15 = vmul.f32 %v8735_v32, %v9911_v39  ;;  %v8588_v39 = vld [vmem:[%s9082_s0 + $0x10] sm:$0xff]  }
 0x8b4   : > { %8130 = vmatpush3.bf16.msra.mxu1 %v3481_v25  ;;  %8131 = vmatprep.mubr.msk.bf16.mxu1 %vm8927_vm0, %v10781_v23 }
 0x8b5   : > { %8141 = vmatprep.subr.bf16.mxu1 %v10781_v23  ;;  %v3232_v50 = vpack.c.bf16 %v3224_v15, %v3224_v15 }
 0x8b7   : > { %v3210_v45 = vpop.xlane.xlu1 %3209 }
 0x8b8   : > { %8736 = vrcp.f32 %v3210_v45 }
 0x8bb   : > { %8132 = vmatmul.mubr.msk.bf16.vlgmr.msra.gmra.mrb[60].mxu1 %vm2269_vm6, %v3232_v50  ;;  %v3572_v10 = vpop.permute.xlu1 %3571 }
 0x8bc   : > { %v3577_v24 = vsel %vm2369_vm5, %v3572_v10, 0  ;;  %8143 = vmatprep.mubr.msk.bf16.mxu1 %vm8927_vm0, %v10781_v23 }
 0x8bd   : > { %8142 = vmatpush3.bf16.msra.mxu1 %v3577_v24 }
 0x8be   : > { %8147 = vmatprep.subr.bf16.mxu1 %v8588_v39 }
 0x8c2   : > { %v8737_v30 = vpop.eup %8736 }
 0x8c3   : > { %v3226_v6 = vmul.f32 %v8737_v30, %v9924_v36 }
 0x8c5   : > { %v3234_v37 = vpack.c.bf16 %v3226_v6, %v3226_v6 }
 0x8c7   : > { %8144 = vmatmul.mubr.msk.bf16.vlgmr.msra.gmra.mrb[64].mxu1 %vm2269_vm6, %v3234_v37 }
 0x8c8   : > { %8148 = vmatpush3.bf16.msra.mxu1 %v8588_v39 }
 0x8c9   : > { %8149 = vmatprep.subr.bf16.mxu1 %v8589_v56 }
 0x8cc   : > { %8150 = vmatpush3.bf16.msra.mxu1 %v8589_v56 }
 0x8cd   : > { %8171 = vmatprep.subr.bf16.mxu1 %v10781_v23 }
 0x91a   : > { %v3277_v34 = vpop.f32.mrb[68].mxu0 }
 0x91b   : > { %v8103_v47 = vpop.f32.mrb[69].mxu0 }
 0x91c   : > { %v3280_v61 = vpop.f32.mrb[70].mxu0 }
 0x91d   : > { %v8104_v49 = vpop.f32.mrb[71].mxu0 }
 0x922   : > { %v3373_v1 = vpop.f32.mrb[72].mxu0 }
 0x923   : > { %v8115_v7 = vpop.f32.mrb[73].mxu0 }
 0x924   : > { %v3376_v59 = vpop.f32.mrb[74].mxu0 }
 0x925   : > { %v8116_v58 = vpop.f32.mrb[75].mxu0 }
 0x951   : > { %v3325_v36 = vpop.f32.mrb[52].mxu1 }
 0x952   : > { %v3619_v48 = vpack.c.bf16 %v3325_v36, %v3277_v34  ;;  %v8109_v55 = vpop.f32.mrb[53].mxu1  ;;  %v3809_v36 = vsel %vm1900_vm4, %v9967_v54, 0  ;;  %v3802_v54 = vpop.permute.xlu1 %3801 }
 0x953   : > { %v3328_v44 = vpop.f32.mrb[54].mxu1 }
 0x954   : > { %v8110_v4 = vpop.f32.mrb[55].mxu1  ;;  %8151 = vmatprep.mubr.msk.bf16.mxu1 %vm1900_vm4, %v3619_v48 }
 0x95d   : > { %v3469_v42 = vpop.f32.mrb[76].mxu0 }
 0x95e   : > { %v8127_v32 = vpop.f32.mrb[77].mxu0 }
 0x95f   : > { %v3472_v25 = vpop.f32.mrb[78].mxu0 }
 0x960   : > { %v8128_v15 = vpop.f32.mrb[79].mxu0 }
 0x965   : > { %v3565_v45 = vpop.f32.mrb[80].mxu0 }
 0x966   : > { %v8139_v50 = vpop.f32.mrb[81].mxu0 }
 0x967   : > { %v3568_v10 = vpop.f32.mrb[82].mxu0 }
 0x968   : > { %v8140_v24 = vpop.f32.mrb[83].mxu0 }
 0x97d   : > { %v10029_v30 = vpop.f32.mrb[92].mxu0 }
 0x97e   : > { %v8199_v6 = vpop.f32.mrb[93].mxu0 }
 0x97f   : > { %v4048_v37 = vpop.f32.mrb[94].mxu0  ;;  %v3852_v6 = vpop.permute.xlu1 %3851 }
 0x980   : > { %v8200_v39 = vpop.f32.mrb[95].mxu0  ;;  %v3909_v37 = vsel %vm1900_vm4, %v9977_v22, 0 }
 0x981   : > { %v3959_v39 = vsel %vm1900_vm4, %v9985_v38, 0 }
 0x985   : > { %v10031_v56 = vpop.f32.mrb[96].mxu0 }
 0x986   : > { %v3421_v34 = vpop.f32.mrb[56].mxu1  ;;  %v8211_v47 = vpop.f32.mrb[97].mxu0 }
 0x987   : > { %v3620_v61 = vpack.c.bf16 %v3421_v34, %v3373_v1  ;;  %v8121_v49 = vpop.f32.mrb[57].mxu1  ;;  %v4148_v7 = vpop.f32.mrb[98].mxu0 }
 0x988   : > { %v3424_v59 = vpop.f32.mrb[58].mxu1  ;;  %v8212_v58 = vpop.f32.mrb[99].mxu0 }
 0x989   : > { %v8122_v48 = vpop.f32.mrb[59].mxu1  ;;  %8152 = vmatmul.mubr.msk.bf16.vlgmr.msra.gmra.mrb[68].mxu1 %vm1900_vm4, %v3620_v61 }
 0x98a   : > { %8172 = vmatpush3.bf16.xpose.msra.mxu1 %v3809_v36 }
 0x98b   : > { %8177 = vmatprep.subr.bf16.mxu1 %v10781_v23 }
 0x98e   : > { %v3517_v55 = vpop.f32.mrb[60].mxu1 }
 0x98f   : > { %v3621_v44 = vpack.c.bf16 %v3517_v55, %v3469_v42  ;;  %v8133_v4 = vpop.f32.mrb[61].mxu1  ;;  %v3859_v42 = vsel %vm1900_vm4, %v9972_v5, 0 }
 0x990   : > { %v3520_v32 = vpop.f32.mrb[62].mxu1 }
 0x991   : > { %v8134_v25 = vpop.f32.mrb[63].mxu1  ;;  %8155 = vmatprep.mubr.msk.bf16.mxu1 %vm1900_vm4, %v3621_v44 }
 0x99a   : > { %v3613_v1 = vpop.f32.mrb[64].mxu1 }
 0x99b   : > { %v3622_v15 = vpack.c.bf16 %v3613_v1, %v3565_v45  ;;  %v8145_v50 = vpop.f32.mrb[65].mxu1  ;;  %v3902_v45 = vpop.permute.xlu1 %3901 }
 0x99c   : > { %v3616_v10 = vpop.f32.mrb[66].mxu1 }
 0x99d   : > { %v8146_v24 = vpop.f32.mrb[67].mxu1  ;;  %8156 = vmatmul.mubr.msk.bf16.gmra.mrb[72].mxu1 %vm1900_vm4, %v3622_v15 }
 0x99e   : > { %8173 = vmatprep.mubr.msk.bf16.mxu1 %vm8927_vm0, %v10781_v23 }
 0x99f   : > { %v3952_v5 = vpop.permute.xlu1 %3951 }
 0x9a3   : > { %v4054_v34 = vpop.permute.xlu1 %4053 }
 0x9a4   : > { %v4059_v47 = vsel %vm1900_vm4, %v4054_v34, 0 }
 0x9a5   : > { %8174 = vmatmul.mubr.msk.bf16.vlgmr.msra.gmra.mrb[76].mxu1 %vm1900_vm4, %v3802_v54 }
 0x9a6   : > { %8178 = vmatpush3.bf16.xpose.msra.mxu1 %v3859_v42  ;;  %8179 = vmatprep.mubr.msk.bf16.mxu1 %vm8927_vm0, %v10781_v23 }
 0x9a7   : > { %8183 = vmatprep.subr.bf16.mxu1 %v10781_v23  ;;  %v4052_v22 = vpop.permute.xlu1 %4051 }
 0x9ab   : > { %v4154_v38 = vpop.permute.xlu1 %4153 }
 0x9ac   : > { %v4159_v61 = vsel %vm1900_vm4, %v4154_v38, 0 }
 0x9ad   : > { %8180 = vmatmul.mubr.msk.bf16.vlgmr.msra.gmra.mrb[80].mxu1 %vm1900_vm4, %v3852_v6 }
 0x9ae   : > { %8184 = vmatpush3.bf16.xpose.msra.mxu1 %v3909_v37  ;;  %8185 = vmatprep.mubr.msk.bf16.mxu1 %vm8927_vm0, %v10781_v23 }
 0x9af   : > { %8189 = vmatprep.subr.bf16.mxu1 %v10781_v23  ;;  %v4152_v49 = vpop.permute.xlu1 %4151 }
 0x9b5   : > { %8186 = vmatmul.mubr.msk.bf16.vlgmr.msra.gmra.mrb[84].mxu1 %vm1900_vm4, %v3902_v45 }
 0x9b6   : > { %8190 = vmatpush3.bf16.xpose.msra.mxu1 %v3959_v39  ;;  %8191 = vmatprep.mubr.msk.bf16.mxu1 %vm8927_vm0, %v10781_v23 }
 0x9b7   : > { %8201 = vmatprep.subr.bf16.mxu1 %v10781_v23 }
 0x9bd   : > { %8192 = vmatmul.mubr.msk.bf16.vlgmr.msra.gmra.mrb[88].mxu1 %vm1900_vm4, %v3952_v5 }
 0x9be   : > { %8202 = vmatpush3.bf16.xpose.msra.mxu1 %v4059_v47  ;;  %8203 = vmatprep.mubr.msk.bf16.mxu1 %vm8927_vm0, %v10781_v23 }
 0x9bf   : > { %8213 = vmatprep.subr.bf16.mxu1 %v10781_v23 }
 0x9c5   : > { %8204 = vmatmul.mubr.msk.bf16.vlgmr.msra.gmra.mrb[92].mxu1 %vm1900_vm4, %v4052_v22 }
 0x9c6   : > { %8214 = vmatpush3.bf16.xpose.msra.mxu1 %v4159_v61  ;;  %8215 = vmatprep.mubr.msk.bf16.mxu1 %vm8927_vm0, %v10781_v23 }
 0x9c7   : > { %8225 = vmatprep.subr.bf16.mxu1 %v10781_v23 }
 0x9cd   : > { %8216 = vmatmul.mubr.msk.bf16.vlgmr.msra.gmra.mrb[96].mxu1 %vm1900_vm4, %v4152_v49 }
 0x9ce   : > { %8227 = vmatprep.mubr.msk.bf16.mxu1 %vm8927_vm0, %v10781_v23 }
 0xa5c   : > { %v10072_v7 = vpop.f32.mrb[68].mxu1 }
 0xa5d   : > { %v10074_v59 = vpop.f32.mrb[69].mxu1 }
 0xa5e   : > { %v10076_v58 = vpop.f32.mrb[70].mxu1 }
 0xa5f   : > { %v10078_v36 = vpop.f32.mrb[71].mxu1 }
 0xa70   : > { %v10080_v48 = vpop.f32.mrb[72].mxu1 }
 0xa71   : > { %v10082_v55 = vpop.f32.mrb[73].mxu1 }
 0xa72   : > { %v10084_v44 = vpop.f32.mrb[74].mxu1 }
 0xa73   : > { %v10086_v4 = vpop.f32.mrb[75].mxu1 }
 0xa78   : > { %v3845_v32 = vpop.f32.mrb[76].mxu1 }
 0xa79   : > { %v10089_v25 = vadd.f32 %v3845_v32, %v9567_v57  ;;  %v8175_v1 = vpop.f32.mrb[77].mxu1 }
 0xa7a   : > { %v3848_v15 = vpop.f32.mrb[78].mxu1 }
 0xa7b   : > { %v8176_v50 = vpop.f32.mrb[79].mxu1  ;;  %v4201_v10 = vsel %vm2269_vm6, %v10089_v25, -inf  ;;  %v4046_v15 = vadd.f32 %v10029_v30, %v9597_v2 }
 0xa7c   : > { %4202 = vmax.xlane.f32.xlu0 %v4201_v10 }
 0xa80   : > { %v3895_v24 = vpop.f32.mrb[80].mxu1 }
 0xa81   : > { %v3896_v54 = vadd.f32 %v3895_v24, %v9576_v31  ;;  %v8181_v6 = vpop.f32.mrb[81].mxu1  ;;  %v4146_v24 = vadd.f32 %v10031_v56, %v9608_v27 }
 0xa82   : > { %v3898_v42 = vpop.f32.mrb[82].mxu1  ;;  %v4213_v6 = vsel %vm2269_vm6, %v4046_v15, -inf }
 0xa83   : > { %v8182_v45 = vpop.f32.mrb[83].mxu1  ;;  %v4204_v37 = vsel %vm2269_vm6, %v3896_v54, -inf  ;;  %v4219_v30 = vsel %vm2269_vm6, %v4146_v24, -inf }
 0xa84   : > { %4205 = vmax.xlane.f32.xlu1 %v4204_v37 }
 0xa88   : > { %v3945_v5 = vpop.f32.mrb[84].mxu1 }
 0xa89   : > { %v3946_v39 = vadd.f32 %v3945_v5, %v9579_v12  ;;  %v8187_v34 = vpop.f32.mrb[85].mxu1 }
 0xa8a   : > { %v3948_v22 = vpop.f32.mrb[86].mxu1 }
 0xa8b   : > { %v8188_v47 = vpop.f32.mrb[87].mxu1  ;;  %v4207_v38 = vsel %vm2269_vm6, %v3946_v39, -inf }
 0xa8c   : > { %4208 = vmax.xlane.f32.xlu0 %v4207_v38 }
 0xa90   : > { %v3995_v61 = vpop.f32.mrb[88].mxu1 }
 0xa91   : > { %v10098_v49 = vadd.f32 %v3995_v61, %v9594_v16  ;;  %v8193_v32 = vpop.f32.mrb[89].mxu1 }
 0xa92   : > { %v3998_v1 = vpop.f32.mrb[90].mxu1 }
 0xa93   : > { %v8194_v50 = vpop.f32.mrb[91].mxu1  ;;  %v4210_v10 = vsel %vm2269_vm6, %v10098_v49, -inf }
 0xa94   : > { %4211 = vmax.xlane.f32.xlu0 %v4210_v10 }
 0xa98   : > { %v4095_v42 = vpop.f32.mrb[92].mxu1  ;;  %4214 = vmax.xlane.f32.xlu0 %v4213_v6 }
 0xa99   : > { %v4096_v45 = vadd.f32 %v4095_v42, %v9605_v13  ;;  %v8205_v37 = vpop.f32.mrb[93].mxu1 }
 0xa9a   : > { %v4098_v5 = vpop.f32.mrb[94].mxu1 }
 0xa9b   : > { %v8206_v34 = vpop.f32.mrb[95].mxu1  ;;  %v4216_v22 = vsel %vm2269_vm6, %v4096_v45, -inf }
 0xa9c   : > { %4217 = vmax.xlane.f32.xlu1 %v4216_v22  ;;  %4220 = vmax.xlane.f32.xlu0 %v4219_v30 }
 0xaa0   : > { %v4195_v47 = vpop.f32.mrb[96].mxu1 }
 0xaa1   : > { %v4196_v38 = vadd.f32 %v4195_v47, %v9615_v11  ;;  %v8217_v61 = vpop.f32.mrb[97].mxu1 }
 0xaa2   : > { %v4198_v56 = vpop.f32.mrb[98].mxu1 }
 0xaa3   : > { %v8218_v32 = vpop.f32.mrb[99].mxu1  ;;  %v4222_v1 = vsel %vm2269_vm6, %v4196_v38, -inf }
 0xaa4   : > { %4223 = vmax.xlane.f32.xlu1 %v4222_v1 }
 0xb09   : > { %v4203_v42 = vpop.xlane.xlu0 %4202 }
 0xb0a   : > { %v4225_v56 = vsub.f32 %v10089_v25, %v4203_v42 }
 0xb11   : > { %v4206_v50 = vpop.xlane.xlu1 %4205 }
 0xb12   : > { %v4226_v10 = vsub.f32 %v3896_v54, %v4206_v50  ;;  %v4233_v50 = vmul.f32 1.442695, %v4225_v56 }
 0xb14   : > { %v4235_v6 = vmul.f32 1.442695, %v4226_v10 }
 0xb16   : > { %8738 = vpow2.f32 %v4235_v6 }
 0xb19   : > { %v4209_v37 = vpop.xlane.xlu0 %4208 }
 0xb1a   : > { %v4227_v10 = vsub.f32 %v3946_v39, %v4209_v37 }
 0xb1c   : > { %v4237_v6 = vmul.f32 1.442695, %v4227_v10 }
 0xb20   : > { %v10112_v5 = vpop.eup %8738 }
 0xb21   : > { %v4212_v34 = vpop.xlane.xlu0 %4211  ;;  %v4252_v22 = vsel %vm2269_vm6, %v10112_v5, 0.0 }
 0xb22   : > { %4253 = vadd.xlane.f32.xlu1 %v4252_v22 }
 0xb25   : > { %v4215_v30 = vpop.xlane.xlu0 %4214 }
 0xb26   : > { %v4229_v47 = vsub.f32 %v4046_v15, %v4215_v30  ;;  %v4228_v30 = vsub.f32 %v10098_v49, %v4212_v34 }
 0xb28   : > { %v4241_v61 = vmul.f32 1.442695, %v4229_v47 }
 0xb29   : > { %v4221_v32 = vpop.xlane.xlu0 %4220  ;;  %v4218_v47 = vpop.xlane.xlu1 %4217 }
 0xb2a   : > { %8740 = vpow2.f32 %v4241_v61  ;;  %v4231_v1 = vsub.f32 %v4146_v24, %v4221_v32  ;;  %v4239_v61 = vmul.f32 1.442695, %v4228_v30  ;;  %v4230_v56 = vsub.f32 %v4096_v45, %v4218_v47 }
 0xb2c   : > { %v4245_v54 = vmul.f32 1.442695, %v4231_v1  ;;  %v4243_v1 = vmul.f32 1.442695, %v4230_v56 }
 0xb2e   : > { %8742 = vpow2.f32 %v4245_v54 }
 0xb2f   : > { %8744 = vpow2.f32 %v4233_v50 }
 0xb30   : > { %8746 = vpow2.f32 %v4237_v6 }
 0xb31   : > { %v4224_v32 = vpop.xlane.xlu1 %4223  ;;  %8748 = vpow2.f32 %v4239_v61 }
 0xb32   : > { %v4232_v54 = vsub.f32 %v4196_v38, %v4224_v32  ;;  %8750 = vpow2.f32 %v4243_v1 }
 0xb33   : > { %4345 = vrot.lane.b32.xlu1 %v9538_v43, %s8931_s20 }
 0xb34   : > { %v10119_v52 = vpop.eup %8740  ;;  %v4247_v50 = vmul.f32 1.442695, %v4232_v54 }
 0xb35   : > { %v4261_v15 = vsel %vm2269_vm6, %v10119_v52, 0.0 }
 0xb36   : > { %4262 = vadd.xlane.f32.xlu0 %v4261_v15  ;;  %8752 = vpow2.f32 %v4247_v50 }
 0xb37   : > { %4393 = vrot.lane.b32.xlu1 %v9692_v18, %s8931_s20 }
 0xb38   : > { %v10125_v25 = vpop.eup %8742 }
 0xb39   : > { %v4267_v39 = vsel %vm2269_vm6, %v10125_v25, 0.0  ;;  %v10129_v24 = vpop.eup %8744 }
 0xb3a   : > { %4268 = vadd.xlane.f32.xlu0 %v4267_v39  ;;  %v4249_v42 = vsel %vm2269_vm6, %v10129_v24, 0.0  ;;  %v10135_v37 = vpop.eup %8746 }
 0xb3b   : > { %4441 = vrot.lane.b32.xlu1 %v9703_v53, %s8931_s20  ;;  %v4255_v22 = vsel %vm2269_vm6, %v10135_v37, 0.0  ;;  %v10146_v10 = vpop.eup %8748 }
 0xb3c   : > { %v4258_v49 = vsel %vm2269_vm6, %v10146_v10, 0.0  ;;  %v10152_v45 = vpop.eup %8750 }
 0xb3d   : > { %v4264_v38 = vsel %vm2269_vm6, %v10152_v45, 0.0 }
 0xb3e   : > { %4250 = vadd.xlane.f32.xlu0 %v4249_v42 }
 0xb3f   : > { %4537 = vrot.lane.b32.xlu1 %v9724_v0, %s8931_s20 }
 0xb40   : > { %v10158_v34 = vpop.eup %8752 }
 0xb41   : > { %v4270_v6 = vsel %vm2269_vm6, %v10158_v34, 0.0 }
 0xb42   : > { %4256 = vadd.xlane.f32.xlu0 %v4255_v22 }
 0xb58   : > { %4297 = vrot.lane.b32.xlu0 %v9518_v3, %s8931_s20 }
 0xb5c   : > { %4489 = vrot.lane.b32.xlu0 %v9708_v26, %s8931_s20 }
 0xb60   : > { %4585 = vrot.lane.b32.xlu0 %v9730_v63, %s8931_s20 }
 0xb63   : > { %4259 = vadd.xlane.f32.xlu1 %v4258_v49 }
 0xb64   : > { %4784 = vrot.lane.b32.xlu0 %v9445_v29, %s8932_s29 }
 0xb67   : > { %4265 = vadd.xlane.f32.xlu1 %v4264_v38 }
 0xb68   : > { %4834 = vrot.lane.b32.xlu0 %v9450_v60, %s8932_s29 }
 0xb6b   : > { %4271 = vadd.xlane.f32.xlu1 %v4270_v6 }
 0xb6c   : > { %4884 = vrot.lane.b32.xlu0 %v9454_v62, %s8932_s29 }
 0xb70   : > { %4882 = vrot.lane.b32.xlu0 %v9470_v35, %s8932_s29 }
 0xb74   : > { %4984 = vrot.lane.b32.xlu0 %v9472_v9, %s8932_s29 }
 0xb78   : > { %4982 = vrot.lane.b32.xlu0 %v9492_v14, %s8932_s29 }
 0xb7c   : > { %4633 = vrot.lane.b32.xlu1 %v9746_v51, %s8931_s20  ;;  %5084 = vrot.lane.b32.xlu0 %v9494_v21, %s8932_s29 }
 0xb80   : > { %4782 = vrot.lane.b32.xlu1 %v9452_v46, %s8932_s29  ;;  %5082 = vrot.lane.b32.xlu0 %v9512_v33, %s8932_s29 }
 0xb84   : > { %4832 = vrot.lane.b32.xlu1 %v9468_v20, %s8932_s29 }
 0xb88   : > { %4934 = vrot.lane.b32.xlu1 %v9466_v8, %s8932_s29 }
 0xb8c   : > { %4932 = vrot.lane.b32.xlu1 %v9490_v19, %s8932_s29 }
 0xb90   : > { %5034 = vrot.lane.b32.xlu1 %v9488_v41, %s8932_s29 }
 0xb94   : > { %5032 = vrot.lane.b32.xlu1 %v9516_v40, %s8932_s29 }
 0xb98   : > { %5134 = vrot.lane.b32.xlu1 %v9504_v28, %s8932_s29 }
 0xb9c   : > { %5132 = vrot.lane.b32.xlu1 %v9536_v17, %s8932_s29 }
 0xbaf   : > { %v4254_v29 = vpop.xlane.xlu1 %4253 }
 0xbb0   : > { %8754 = vrcp.f32 %v4254_v29 }
 0xbb3   : > { %v4346_v60 = vpop.permute.xlu1 %4345 }
 0xbb4   : > { %v4351_v46 = vsel %vm2369_vm5, %v4346_v60, 0 }
 0xbb5   : > { %8226 = vmatpush3.bf16.msra.mxu1 %v4351_v46 }
 0xbb6   : > { %8237 = vmatprep.subr.bf16.mxu1 %v10781_v23 }
 0xbb7   : > { %v4394_v62 = vpop.permute.xlu1 %4393 }
 0xbb8   : > { %v4399_v42 = vsel %vm2369_vm5, %v4394_v62, 0 }
 0xbba   : > { %v8755_v8 = vpop.eup %8754 }
 0xbbb   : > { %v4282_v20 = vmul.f32 %v8755_v8, %v10112_v5  ;;  %v4442_v35 = vpop.permute.xlu1 %4441 }
 0xbbc   : > { %v4447_v41 = vsel %vm2369_vm5, %v4442_v35, 0 }
 0xbbd   : > { %v4290_v9 = vpack.c.bf16 %v4282_v20, %v4282_v20 }
 0xbbf   : > { %8228 = vmatmul.mubr.msk.bf16.vlgmr.msra.gmra.mrb[100].mxu1 %vm2269_vm6, %v4290_v9  ;;  %v4538_v54 = vpop.permute.xlu1 %4537 }
 0xbc0   : > { %8238 = vmatpush3.bf16.msra.mxu1 %v4447_v41  ;;  %8239 = vmatprep.mubr.msk.bf16.mxu1 %vm8927_vm0, %v10781_v23  ;;  %v4543_v20 = vsel %vm2369_vm5, %v4538_v54, 0 }
 0xbc1   : > { %8249 = vmatprep.subr.bf16.mxu1 %v10781_v23 }
 0xbc3   : > { %v4263_v19 = vpop.xlane.xlu0 %4262 }
 0xbc7   : > { %v4269_v14 = vpop.xlane.xlu0 %4268 }
 0xbcb   : > { %v4251_v21 = vpop.xlane.xlu0 %4250 }
 0xbcc   : > { %8756 = vrcp.f32 %v4251_v21 }
 0xbcf   : > { %v4257_v28 = vpop.xlane.xlu0 %4256 }
 0xbd0   : > { %8758 = vrcp.f32 %v4257_v28 }
 0xbd1   : > { %8760 = vrcp.f32 %v4263_v19 }
 0xbd2   : > { %8762 = vrcp.f32 %v4269_v14 }
 0xbd3   : > { %v4298_v33 = vpop.permute.xlu0 %4297 }
 0xbd4   : > { %v4303_v40 = vsel %vm2369_vm5, %v4298_v33, 0 }
 0xbd5   : > { %8220 = vmatpush3.bf16.msra.mxu0 %v4303_v40 }
 0xbd6   : > { %v8757_v17 = vpop.eup %8756  ;;  %8231 = vmatprep.subr.bf16.mxu0 %v10781_v23 }
 0xbd7   : > { %v4281_v5 = vmul.f32 %v8757_v17, %v10129_v24  ;;  %v4490_v30 = vpop.permute.xlu0 %4489 }
 0xbd8   : > { %v4495_v24 = vsel %vm2369_vm5, %v4490_v30, 0 }
 0xbd9   : > { %v4289_v15 = vpack.c.bf16 %v4281_v5, %v4281_v5 }
 0xbda   : > { %v8759_v39 = vpop.eup %8758 }
 0xbdb   : > { %8222 = vmatmul.mubr.msk.bf16.vlgmr.msra.gmra.mrb[100].mxu0 %vm2269_vm6, %v4289_v15  ;;  %v4283_v22 = vmul.f32 %v8759_v39, %v10135_v37  ;;  %v8761_v61 = vpop.eup %8760  ;;  %v4586_v32 = vpop.permute.xlu0 %4585 }
 0xbdc   : > { %8232 = vmatpush3.bf16.msra.mxu0 %v4399_v42  ;;  %8233 = vmatprep.mubr.msk.bf16.mxu0 %vm8927_vm0, %v10781_v23  ;;  %v4285_v56 = vmul.f32 %v8761_v61, %v10119_v52  ;;  %v8763_v1 = vpop.eup %8762  ;;  %v4591_v50 = vsel %vm2369_vm5, %v4586_v32, 0 }
 0xbdd   : > { %8243 = vmatprep.subr.bf16.mxu0 %v10781_v23  ;;  %v4291_v47 = vpack.c.bf16 %v4283_v22, %v4283_v22  ;;  %v4287_v49 = vmul.f32 %v8763_v1, %v10125_v25 }
 0xbde   : > { %v4293_v37 = vpack.c.bf16 %v4285_v56, %v4285_v56  ;;  %v8591_v56 = vld [vmem:[%s9082_s0 + $0x28] sm:$0xff]  }
 0xbdf   : > { %v4295_v6 = vpack.c.bf16 %v4287_v49, %v4287_v49  ;;  %v4785_v21 = vpop.permute.xlu0 %4784 }
 0xbe0   : > { %v4790_v33 = vsel %vm1900_vm4, %v4785_v21, 0 }
 0xbe3   : > { %8234 = vmatmul.mubr.msk.bf16.vlgmr.msra.gmra.mrb[104].mxu0 %vm2269_vm6, %v4291_v47  ;;  %v4835_v40 = vpop.permute.xlu0 %4834 }
 0xbe4   : > { %8244 = vmatpush3.bf16.msra.mxu0 %v4495_v24  ;;  %8245 = vmatprep.mubr.msk.bf16.mxu0 %vm8927_vm0, %v10781_v23  ;;  %v8590_v24 = vld [vmem:[%s9082_s0 + $0x20] sm:$0xff]  }
 0xbe5   : > { %8255 = vmatprep.subr.bf16.mxu0 %v10781_v23 }
 0xbeb   : > { %8246 = vmatmul.mubr.msk.bf16.vlgmr.msra.gmra.mrb[108].mxu0 %vm2269_vm6, %v4293_v37 }
 0xbec   : > { %8256 = vmatpush3.bf16.msra.mxu0 %v4591_v50  ;;  %8257 = vmatprep.mubr.msk.bf16.mxu0 %vm8927_vm0, %v10781_v23 }
 0xbed   : > { %8267 = vmatprep.subr.bf16.mxu0 %v8590_v24 }
 0xbf0   : > { %v4260_v38 = vpop.xlane.xlu1 %4259 }
 0xbf1   : > { %8764 = vrcp.f32 %v4260_v38 }
 0xbf3   : > { %8258 = vmatmul.mubr.msk.bf16.vlgmr.msra.gmra.mrb[112].mxu0 %vm2269_vm6, %v4295_v6 }
 0xbf4   : > { %v4266_v52 = vpop.xlane.xlu1 %4265  ;;  %8268 = vmatpush3.bf16.msra.mxu0 %v8590_v24 }
 0xbf5   : > { %8766 = vrcp.f32 %v4266_v52  ;;  %8269 = vmatprep.subr.bf16.mxu0 %v8591_v56 }
 0xbf8   : > { %v4272_v29 = vpop.xlane.xlu1 %4271  ;;  %8270 = vmatpush3.bf16.msra.mxu0 %v8591_v56 }
 0xbf9   : > { %8768 = vrcp.f32 %v4272_v29  ;;  %8291 = vmatprep.subr.bf16.mxu0 %v10781_v23 }
 0xbfb   : > { %v8765_v60 = vpop.eup %8764 }
 0xbfc   : > { %v4284_v46 = vmul.f32 %v8765_v60, %v10146_v10  ;;  %v4634_v35 = vpop.permute.xlu1 %4633 }
 0xbfd   : > { %v4639_v10 = vsel %vm2369_vm5, %v4634_v35, 0 }
 0xbfe   : > { %v4292_v62 = vpack.c.bf16 %v4284_v46, %v4284_v46 }
 0xbff   : > { %v8767_v8 = vpop.eup %8766 }
 0xc00   : > { %8240 = vmatmul.mubr.msk.bf16.vlgmr.msra.gmra.mrb[104].mxu1 %vm2269_vm6, %v4292_v62  ;;  %v4286_v25 = vmul.f32 %v8767_v8, %v10152_v45  ;;  %v4783_v14 = vpop.permute.xlu1 %4782 }
 0xc01   : > { %8250 = vmatpush3.bf16.msra.mxu1 %v4543_v20  ;;  %8251 = vmatprep.mubr.msk.bf16.mxu1 %vm8927_vm0, %v10781_v23 }
 0xc02   : > { %8261 = vmatprep.subr.bf16.mxu1 %v10781_v23  ;;  %v4294_v9 = vpack.c.bf16 %v4286_v25, %v4286_v25 }
 0xc03   : > { %v8769_v41 = vpop.eup %8768 }
 0xc04   : > { %v4288_v19 = vmul.f32 %v8769_v41, %v10158_v34  ;;  %v4833_v28 = vpop.permute.xlu1 %4832  ;;  %v4840_v34 = vsel %vm1900_vm4, %v4835_v40, 0 }
 0xc06   : > { %v4296_v45 = vpack.c.bf16 %v4288_v19, %v4288_v19 }
 0xc08   : > { %8252 = vmatmul.mubr.msk.bf16.vlgmr.msra.gmra.mrb[108].mxu1 %vm2269_vm6, %v4294_v9  ;;  %v4935_v17 = vpop.permute.xlu1 %4934 }
 0xc09   : > { %8262 = vmatpush3.bf16.msra.mxu1 %v4639_v10  ;;  %8263 = vmatprep.mubr.msk.bf16.mxu1 %vm8927_vm0, %v10781_v23  ;;  %v4940_v15 = vsel %vm1900_vm4, %v4935_v17, 0 }
 0xc0a   : > { %8279 = vmatprep.subr.bf16.mxu1 %v10781_v23 }
 0xc0c   : > { %v4933_v5 = vpop.permute.xlu1 %4932 }
 0xc10   : > { %8264 = vmatmul.mubr.msk.bf16.vlgmr.msra.gmra.mrb[112].mxu1 %vm2269_vm6, %v4296_v45  ;;  %v5035_v39 = vpop.permute.xlu1 %5034 }
 0xc11   : > { %8281 = vmatprep.mubr.msk.bf16.mxu1 %vm8927_vm0, %v10781_v23  ;;  %v5040_v22 = vsel %vm1900_vm4, %v5035_v39, 0 }
 0xc12   : > { %8280 = vmatpush3.bf16.xpose.msra.mxu1 %v4790_v33 }
 0xc13   : > { %8285 = vmatprep.subr.bf16.mxu1 %v10781_v23 }
 0xc14   : > { %v5033_v42 = vpop.permute.xlu1 %5032 }
 0xc18   : > { %v5135_v30 = vpop.permute.xlu1 %5134 }
 0xc19   : > { %8282 = vmatmul.mubr.msk.bf16.vlgmr.msra.gmra.mrb[116].mxu1 %vm1900_vm4, %v4783_v14  ;;  %v5140_v47 = vsel %vm1900_vm4, %v5135_v30, 0  ;;  %v4885_v14 = vpop.permute.xlu0 %4884 }
 0xc1a   : > { %8286 = vmatpush3.bf16.xpose.msra.mxu1 %v4840_v34  ;;  %8287 = vmatprep.mubr.msk.bf16.mxu1 %vm8927_vm0, %v10781_v23  ;;  %v4890_v40 = vsel %vm1900_vm4, %v4885_v14, 0 }
 0xc1b   : > { %8297 = vmatprep.subr.bf16.mxu1 %v10781_v23 }
 0xc1c   : > { %v5133_v61 = vpop.permute.xlu1 %5132 }
 0xc21   : > { %8288 = vmatmul.mubr.msk.bf16.vlgmr.msra.gmra.mrb[120].mxu1 %vm1900_vm4, %v4833_v28 }
 0xc22   : > { %8298 = vmatpush3.bf16.xpose.msra.mxu1 %v4940_v15  ;;  %8299 = vmatprep.mubr.msk.bf16.mxu1 %vm8927_vm0, %v10781_v23 }
 0xc23   : > { %8309 = vmatprep.subr.bf16.mxu1 %v10781_v23 }
 0xc29   : > { %8300 = vmatmul.mubr.msk.bf16.vlgmr.msra.gmra.mrb[124].mxu1 %vm1900_vm4, %v4933_v5 }
 0xc2a   : > { %8310 = vmatpush3.bf16.xpose.msra.mxu1 %v5040_v22  ;;  %8311 = vmatprep.mubr.msk.bf16.mxu1 %vm8927_vm0, %v10781_v23  ;;  %v4883_v22 = vpop.permute.xlu0 %4882 }
 0xc2b   : > { %8321 = vmatprep.subr.bf16.mxu1 %v10781_v23 }
 0xc31   : > { %8312 = vmatmul.mubr.msk.bf16.vlgmr.msra.gmra.mrb[128].mxu1 %vm1900_vm4, %v5033_v42 }
 0xc32   : > { %8322 = vmatpush3.bf16.xpose.msra.mxu1 %v5140_v47  ;;  %8323 = vmatprep.mubr.msk.bf16.mxu1 %vm8927_vm0, %v10781_v23 }
 0xc33   : > { %8333 = vmatprep.subr.bf16.mxu1 %v10781_v23 }
 0xc39   : > { %8324 = vmatmul.mubr.msk.bf16.vlgmr.msra.gmra.mrb[132].mxu1 %vm1900_vm4, %v5133_v61 }
 0xc3a   : > { %8335 = vmatprep.mubr.msk.bf16.mxu1 %vm8927_vm0, %v10781_v23 }
 0xc92   : > { %v4387_v32 = vpop.f32.mrb[100].mxu1 }
 0xc93   : > { %v8229_v37 = vpop.f32.mrb[101].mxu1 }
 0xc94   : > { %v4390_v1 = vpop.f32.mrb[102].mxu1 }
 0xc95   : > { %v8230_v54 = vpop.f32.mrb[103].mxu1 }
 0xcae   : > { %v4339_v50 = vpop.f32.mrb[100].mxu0 }
 0xcaf   : > { %v4681_v49 = vpack.c.bf16 %v4387_v32, %v4339_v50  ;;  %v8223_v38 = vpop.f32.mrb[101].mxu0  ;;  %v4985_v32 = vpop.permute.xlu0 %4984 }
 0xcb0   : > { %v4342_v6 = vpop.f32.mrb[102].mxu0 }
 0xcb1   : > { %v8224_v52 = vpop.f32.mrb[103].mxu0  ;;  %8271 = vmatprep.mubr.msk.bf16.mxu0 %vm1900_vm4, %v4681_v49  ;;  %v4990_v49 = vsel %vm1900_vm4, %v4985_v32, 0 }
 0xcb3   : > { %v4983_v1 = vpop.permute.xlu0 %4982 }
 0xcb6   : > { %v4435_v29 = vpop.f32.mrb[104].mxu0 }
 0xcb7   : > { %v8235_v60 = vpop.f32.mrb[105].mxu0 }
 0xcb8   : > { %v4438_v46 = vpop.f32.mrb[106].mxu0 }
 0xcb9   : > { %v8236_v62 = vpop.f32.mrb[107].mxu0 }
 0xcbe   : > { %v4531_v8 = vpop.f32.mrb[108].mxu0 }
 0xcbf   : > { %v8247_v20 = vpop.f32.mrb[109].mxu0 }
 0xcc0   : > { %v4534_v25 = vpop.f32.mrb[110].mxu0 }
 0xcc1   : > { %v8248_v35 = vpop.f32.mrb[111].mxu0 }
 0xcc6   : > { %v4627_v9 = vpop.f32.mrb[112].mxu0 }
 0xcc7   : > { %v8259_v41 = vpop.f32.mrb[113].mxu0 }
 0xcc8   : > { %v4630_v10 = vpop.f32.mrb[114].mxu0 }
 0xcc9   : > { %v8260_v19 = vpop.f32.mrb[115].mxu0 }
 0xcd3   : > { %v4483_v21 = vpop.f32.mrb[104].mxu1 }
 0xcd4   : > { %v4682_v45 = vpack.c.bf16 %v4483_v21, %v4435_v29  ;;  %v8241_v28 = vpop.f32.mrb[105].mxu1  ;;  %v5085_v29 = vpop.permute.xlu0 %5084 }
 0xcd5   : > { %v4486_v33 = vpop.f32.mrb[106].mxu1  ;;  %v5090_v62 = vsel %vm1900_vm4, %v5085_v29, 0 }
 0xcd6   : > { %v8242_v17 = vpop.f32.mrb[107].mxu1  ;;  %8272 = vmatmul.mubr.msk.bf16.vlgmr.msra.gmra.mrb[84].mxu0 %vm1900_vm4, %v4682_v45 }
 0xcd7   : > { %8292 = vmatpush3.bf16.xpose.msra.mxu0 %v4890_v40 }
 0xcd8   : > { %8303 = vmatprep.subr.bf16.mxu0 %v10781_v23 }
 0xcdb   : > { %v4579_v34 = vpop.f32.mrb[108].mxu1 }
 0xcdc   : > { %v4683_v5 = vpack.c.bf16 %v4579_v34, %v4531_v8  ;;  %v8253_v15 = vpop.f32.mrb[109].mxu1 }
 0xcdd   : > { %v4582_v39 = vpop.f32.mrb[110].mxu1 }
 0xcde   : > { %v8254_v42 = vpop.f32.mrb[111].mxu1  ;;  %8275 = vmatprep.mubr.msk.bf16.mxu0 %vm1900_vm4, %v4683_v5 }
 0xce3   : > { %v4675_v30 = vpop.f32.mrb[112].mxu1 }
 0xce4   : > { %v4684_v47 = vpack.c.bf16 %v4675_v30, %v4627_v9  ;;  %v8265_v61 = vpop.f32.mrb[113].mxu1  ;;  %v5083_v9 = vpop.permute.xlu0 %5082 }
 0xce5   : > { %v4678_v24 = vpop.f32.mrb[114].mxu1 }
 0xce6   : > { %v8266_v56 = vpop.f32.mrb[115].mxu1  ;;  %8276 = vmatmul.mubr.msk.bf16.gmra.mrb[88].mxu0 %vm1900_vm4, %v4684_v47 }
 0xce7   : > { %8293 = vmatprep.mubr.msk.bf16.mxu0 %vm8927_vm0, %v10781_v23 }
 0xcec   : > { %v4826_v37 = vpop.f32.mrb[116].mxu1 }
 0xced   : > { %v4827_v54 = vadd.f32 %v4826_v37, %v9567_v57  ;;  %v8283_v50 = vpop.f32.mrb[117].mxu1 }
 0xcee   : > { %v4829_v38 = vpop.f32.mrb[118].mxu1  ;;  %8294 = vmatmul.mubr.msk.bf16.vlgmr.msra.gmra.mrb[116].mxu0 %vm1900_vm4, %v4883_v22 }
 0xcef   : > { %v8284_v6 = vpop.f32.mrb[119].mxu1  ;;  %8304 = vmatpush3.bf16.xpose.msra.mxu0 %v4990_v49  ;;  %v5182_v52 = vsel %vm2269_vm6, %v4827_v54, -inf  ;;  %8305 = vmatprep.mubr.msk.bf16.mxu0 %vm8927_vm0, %v10781_v23 }
 0xcf0   : > { %5183 = vmax.xlane.f32.xlu0 %v5182_v52  ;;  %8315 = vmatprep.subr.bf16.mxu0 %v10781_v23 }
 0xcf4   : > { %v4876_v60 = vpop.f32.mrb[120].mxu1 }
 0xcf5   : > { %v4877_v57 = vadd.f32 %v4876_v60, %v9576_v31  ;;  %v8289_v46 = vpop.f32.mrb[121].mxu1 }
 0xcf6   : > { %v4879_v8 = vpop.f32.mrb[122].mxu1  ;;  %8306 = vmatmul.mubr.msk.bf16.vlgmr.msra.gmra.mrb[120].mxu0 %vm1900_vm4, %v4983_v1 }
 0xcf7   : > { %v8290_v20 = vpop.f32.mrb[123].mxu1  ;;  %8316 = vmatpush3.bf16.xpose.msra.mxu0 %v5090_v62  ;;  %v5185_v25 = vsel %vm2269_vm6, %v4877_v57, -inf  ;;  %8317 = vmatprep.mubr.msk.bf16.mxu0 %vm8927_vm0, %v10781_v23 }
 0xcf8   : > { %5186 = vmax.xlane.f32.xlu1 %v5185_v25  ;;  %8327 = vmatprep.subr.bf16.mxu0 %v10781_v23 }
 0xcfc   : > { %v4976_v35 = vpop.f32.mrb[124].mxu1 }
 0xcfd   : > { %v4977_v31 = vadd.f32 %v4976_v35, %v9594_v16  ;;  %v8301_v41 = vpop.f32.mrb[125].mxu1 }
 0xcfe   : > { %v4979_v10 = vpop.f32.mrb[126].mxu1  ;;  %8318 = vmatmul.mubr.msk.bf16.vlgmr.msra.gmra.mrb[124].mxu0 %vm1900_vm4, %v5083_v9 }
 0xcff   : > { %v8302_v19 = vpop.f32.mrb[127].mxu1  ;;  %v5191_v14 = vsel %vm2269_vm6, %v4977_v31, -inf  ;;  %8329 = vmatprep.mubr.msk.bf16.mxu0 %vm8927_vm0, %v10781_v23 }
 0xd00   : > { %5192 = vmax.xlane.f32.xlu0 %v5191_v14 }
 0xd04   : > { %v5076_v21 = vpop.f32.mrb[128].mxu1 }
 0xd05   : > { %v5077_v45 = vadd.f32 %v5076_v21, %v9605_v13  ;;  %v8313_v28 = vpop.f32.mrb[129].mxu1 }
 0xd06   : > { %v5079_v33 = vpop.f32.mrb[130].mxu1 }
 0xd07   : > { %v8314_v40 = vpop.f32.mrb[131].mxu1  ;;  %v5197_v17 = vsel %vm2269_vm6, %v5077_v45, -inf }
 0xd08   : > { %5198 = vmax.xlane.f32.xlu1 %v5197_v17 }
 0xd0c   : > { %v5176_v16 = vpop.f32.mrb[132].mxu1 }
 0xd0d   : > { %v5177_v34 = vadd.f32 %v5176_v16, %v9615_v11  ;;  %v8325_v5 = vpop.f32.mrb[133].mxu1 }
 0xd0e   : > { %v5179_v15 = vpop.f32.mrb[134].mxu1 }
 0xd0f   : > { %v8326_v39 = vpop.f32.mrb[135].mxu1  ;;  %v5203_v42 = vsel %vm2269_vm6, %v5177_v34, -inf }
 0xd10   : > { %5204 = vmax.xlane.f32.xlu1 %v5203_v42 }
 0xd7d   : > { %v5184_v22 = vpop.xlane.xlu0 %5183 }
 0xd7e   : > { %v5206_v30 = vsub.f32 %v4827_v54, %v5184_v22 }
 0xd80   : > { %v5214_v47 = vmul.f32 1.442695, %v5206_v30 }
 0xd82   : > { %8770 = vpow2.f32 %v5214_v47 }
 0xd85   : > { %v5187_v13 = vpop.xlane.xlu1 %5186 }
 0xd86   : > { %v5207_v61 = vsub.f32 %v4877_v57, %v5187_v13 }
 0xd88   : > { %v5216_v24 = vmul.f32 1.442695, %v5207_v61 }
 0xd8a   : > { %8772 = vpow2.f32 %v5216_v24 }
 0xd8c   : > { %v10298_v56 = vpop.eup %8770 }
 0xd8d   : > { %v5193_v32 = vpop.xlane.xlu0 %5192  ;;  %v5230_v11 = vsel %vm2269_vm6, %v10298_v56, 0.0 }
 0xd8e   : > { %v5209_v37 = vsub.f32 %v4977_v31, %v5193_v32  ;;  %5231 = vadd.xlane.f32.xlu0 %v5230_v11 }
 0xd90   : > { %v5220_v1 = vmul.f32 1.442695, %v5209_v37 }
 0xd92   : > { %8774 = vpow2.f32 %v5220_v1 }
 0xd94   : > { %v8773_v50 = vpop.eup %8772 }
 0xd95   : > { %v5199_v49 = vpop.xlane.xlu1 %5198  ;;  %v5233_v54 = vsel %vm2269_vm6, %v8773_v50, 0.0 }
 0xd96   : > { %v5211_v38 = vsub.f32 %v5077_v45, %v5199_v49  ;;  %5234 = vadd.xlane.f32.xlu1 %v5233_v54 }
 0xd98   : > { %v5224_v6 = vmul.f32 1.442695, %v5211_v38 }
 0xd9a   : > { %8776 = vpow2.f32 %v5224_v6 }
 0xd9c   : > { %v8775_v52 = vpop.eup %8774 }
 0xd9d   : > { %v5205_v29 = vpop.xlane.xlu1 %5204  ;;  %v5239_v60 = vsel %vm2269_vm6, %v8775_v52, 0.0 }
 0xd9e   : > { %v5213_v57 = vsub.f32 %v5177_v34, %v5205_v29  ;;  %5240 = vadd.xlane.f32.xlu1 %v5239_v60 }
 0xda0   : > { %v5228_v46 = vmul.f32 1.442695, %v5213_v57 }
 0xda2   : > { %8778 = vpow2.f32 %v5228_v46  ;;  %v10786_v46 = vmov 0  }
 0xda4   : > { %v10304_v62 = vpop.eup %8776 }
 0xda5   : > { %v5245_v8 = vsel %vm2269_vm6, %v10304_v62, 0.0 }
 0xda6   : > { %5246 = vadd.xlane.f32.xlu1 %v5245_v8 }
 0xdac   : > { %v10308_v20 = vpop.eup %8778 }
 0xdad   : > { %v5251_v25 = vsel %vm2269_vm6, %v10308_v20, 0.0 }
 0xdae   : > { %5252 = vadd.xlane.f32.xlu1 %v5251_v25 }
 0xdbf   : > { %5326 = vrot.lane.b32.xlu1 %v9538_v43, %s8932_s29 }
 0xdc1   : > { %v4926_v35 = vpop.f32.mrb[116].mxu0 }
 0xdc2   : > { %v10315_v9 = vadd.f32 %v4926_v35, %v9579_v12  ;;  %v8295_v31 = vpop.f32.mrb[117].mxu0 }
 0xdc3   : > { %5374 = vrot.lane.b32.xlu1 %v9692_v18, %s8932_s29  ;;  %v4929_v41 = vpop.f32.mrb[118].mxu0 }
 0xdc4   : > { %v8296_v10 = vpop.f32.mrb[119].mxu0  ;;  %v5188_v19 = vsel %vm2269_vm6, %v10315_v9, -inf }
 0xdc5   : > { %5189 = vmax.xlane.f32.xlu0 %v5188_v19 }
 0xdc7   : > { %5422 = vrot.lane.b32.xlu1 %v9703_v53, %s8932_s29 }
 0xdc9   : > { %v5026_v14 = vpop.f32.mrb[120].mxu0 }
 0xdca   : > { %v10324_v43 = vadd.f32 %v5026_v14, %v9597_v2  ;;  %v8307_v21 = vpop.f32.mrb[121].mxu0 }
 0xdcb   : > { %5518 = vrot.lane.b32.xlu1 %v9724_v0, %s8932_s29  ;;  %v5029_v12 = vpop.f32.mrb[122].mxu0 }
 0xdcc   : > { %v8308_v45 = vpop.f32.mrb[123].mxu0  ;;  %v5194_v18 = vsel %vm2269_vm6, %v10324_v43, -inf }
 0xdcd   : > { %5195 = vmax.xlane.f32.xlu0 %v5194_v18 }
 0xdcf   : > { %5614 = vrot.lane.b32.xlu1 %v9746_v51, %s8932_s29 }
 0xdd1   : > { %v5126_v28 = vpop.f32.mrb[124].mxu0 }
 0xdd2   : > { %v10333_v53 = vadd.f32 %v5126_v28, %v9608_v27  ;;  %v8319_v33 = vpop.f32.mrb[125].mxu0 }
 0xdd3   : > { %v5129_v2 = vpop.f32.mrb[126].mxu0 }
 0xdd4   : > { %v8320_v40 = vpop.f32.mrb[127].mxu0  ;;  %v5200_v17 = vsel %vm2269_vm6, %v10333_v53, -inf }
 0xdd5   : > { %5201 = vmax.xlane.f32.xlu0 %v5200_v17 }
 0xdeb   : > { %5278 = vrot.lane.b32.xlu0 %v9518_v3, %s8932_s29 }
 0xe1b   : > { %v5232_v37 = vpop.xlane.xlu0 %5231 }
 0xe23   : > { %v5235_v0 = vpop.xlane.xlu1 %5234 }
 0xe24   : > { %8780 = vrcp.f32 %v5235_v0 }
 0xe2b   : > { %v5241_v16 = vpop.xlane.xlu1 %5240 }
 0xe2c   : > { %8782 = vrcp.f32 %v5241_v16 }
 0xe2e   : > { %v8781_v51 = vpop.eup %8780 }
 0xe2f   : > { %v5263_v15 = vmul.f32 %v8781_v51, %v8773_v50 }
 0xe31   : > { %v5271_v42 = vpack.c.bf16 %v5263_v15, %v5263_v15 }
 0xe33   : > { %v5247_v34 = vpop.xlane.xlu1 %5246 }
 0xe34   : > { %8784 = vrcp.f32 %v5247_v34 }
 0xe36   : > { %v8783_v22 = vpop.eup %8782 }
 0xe37   : > { %v5265_v3 = vmul.f32 %v8783_v22, %v8775_v52 }
 0xe39   : > { %v5273_v61 = vpack.c.bf16 %v5265_v3, %v5265_v3 }
 0xe3b   : > { %v5253_v5 = vpop.xlane.xlu1 %5252 }
 0xe3c   : > { %8786 = vrcp.f32 %v5253_v5 }
 0xe3e   : > { %v8785_v24 = vpop.eup %8784 }
 0xe3f   : > { %v5327_v27 = vpop.permute.xlu1 %5326  ;;  %v5267_v1 = vmul.f32 %v8785_v24, %v10304_v62 }
 0xe40   : > { %v5332_v39 = vsel %vm2369_vm5, %v5327_v27, 0 }
 0xe41   : > { %8334 = vmatpush3.bf16.msra.mxu1 %v5332_v39  ;;  %v5275_v54 = vpack.c.bf16 %v5267_v1, %v5267_v1 }
 0xe42   : > { %8345 = vmatprep.subr.bf16.mxu1 %v10781_v23 }
 0xe43   : > { %v5375_v30 = vpop.permute.xlu1 %5374 }
 0xe44   : > { %8336 = vmatmul.mubr.msk.bf16.vlgmr.msra.gmra.mrb[136].mxu1 %vm2269_vm6, %v5271_v42  ;;  %v5380_v19 = vsel %vm2369_vm5, %v5375_v30, 0 }
 0xe45   : > { %8347 = vmatprep.mubr.msk.bf16.mxu1 %vm8927_vm0, %v10781_v23 }
 0xe46   : > { %v8787_v38 = vpop.eup %8786 }
 0xe47   : > { %v5423_v47 = vpop.permute.xlu1 %5422  ;;  %v5269_v60 = vmul.f32 %v8787_v38, %v10308_v20 }
 0xe48   : > { %v5428_v13 = vsel %vm2369_vm5, %v5423_v47, 0 }
 0xe49   : > { %8346 = vmatpush3.bf16.msra.mxu1 %v5428_v13  ;;  %v5277_v57 = vpack.c.bf16 %v5269_v60, %v5269_v60 }
 0xe4a   : > { %8357 = vmatprep.subr.bf16.mxu1 %v10781_v23 }
 0xe4b   : > { %v5519_v32 = vpop.permute.xlu1 %5518 }
 0xe4c   : > { %v5524_v11 = vsel %vm2369_vm5, %v5519_v32, 0  ;;  %8348 = vmatmul.mubr.msk.bf16.vlgmr.msra.gmra.mrb[140].mxu1 %vm2269_vm6, %v5273_v61 }
 0xe4d   : > { %8358 = vmatpush3.bf16.msra.mxu1 %v5524_v11  ;;  %8359 = vmatprep.mubr.msk.bf16.mxu1 %vm8927_vm0, %v10781_v23 }
 0xe4e   : > { %8369 = vmatprep.subr.bf16.mxu1 %v10781_v23 }
 0xe4f   : > { %v5615_v50 = vpop.permute.xlu1 %5614 }
 0xe50   : > { %v5620_v52 = vsel %vm2369_vm5, %v5615_v50, 0 }
 0xe52   : > { %v5190_v49 = vpop.xlane.xlu0 %5189 }
 0xe53   : > { %v5208_v6 = vsub.f32 %v10315_v9, %v5190_v49  ;;  %v8592_v49 = vld [vmem:[%s9082_s0 + $0x30] sm:$0xff]  }
 0xe54   : > { %8360 = vmatmul.mubr.msk.bf16.vlgmr.msra.gmra.mrb[144].mxu1 %vm2269_vm6, %v5275_v54 }
 0xe55   : > { %v5218_v29 = vmul.f32 1.442695, %v5208_v6  ;;  %8370 = vmatpush3.bf16.msra.mxu1 %v5620_v52  ;;  %8371 = vmatprep.mubr.msk.bf16.mxu1 %vm8927_vm0, %v10781_v23 }
 0xe57   : > { %8788 = vpow2.f32 %v5218_v29  ;;  %v8593_v29 = vld [vmem:[%s9082_s0 + $0x38] sm:$0xff]  }
 0xe58   : > { %8790 = vrcp.f32 %v5232_v37 }
 0xe5a   : > { %v5196_v62 = vpop.xlane.xlu0 %5195 }
 0xe5c   : > { %8372 = vmatmul.mubr.msk.bf16.vlgmr.msra.gmra.mrb[148].mxu1 %vm2269_vm6, %v5277_v57 }
 0xe5d   : > { %6070 = vmatprep.mubr.bf16.mxu1 %v10786_v46 }
 0xe61   : > { %v8789_v8 = vpop.eup %8788 }
 0xe62   : > { %v8791_v25 = vpop.eup %8790  ;;  %v5202_v35 = vpop.xlane.xlu0 %5201  ;;  %v5236_v9 = vsel %vm2269_vm6, %v8789_v8, 0.0 }
 0xe63   : > { %5237 = vadd.xlane.f32.xlu0 %v5236_v9  ;;  %v5262_v31 = vmul.f32 %v8791_v25, %v10298_v56  ;;  %v5210_v56 = vsub.f32 %v10324_v43, %v5196_v62  ;;  %v5212_v21 = vsub.f32 %v10333_v53, %v5202_v35 }
 0xe65   : > { %v5270_v20 = vpack.c.bf16 %v5262_v31, %v5262_v31  ;;  %v5222_v14 = vmul.f32 1.442695, %v5210_v56  ;;  %v5226_v12 = vmul.f32 1.442695, %v5212_v21 }
 0xe66   : > { %v5279_v41 = vpop.permute.xlu0 %5278 }
 0xe67   : > { %v5284_v10 = vsel %vm2369_vm5, %v5279_v41, 0  ;;  %8792 = vpow2.f32 %v5222_v14 }
 0xe68   : > { %8328 = vmatpush3.bf16.msra.mxu0 %v5284_v10  ;;  %8794 = vpow2.f32 %v5226_v12 }
 0xe69   : > { %8339 = vmatprep.subr.bf16.mxu0 %v10781_v23 }
 0xe6b   : > { %8330 = vmatmul.mubr.msk.bf16.vlgmr.msra.gmra.mrb[128].mxu0 %vm2269_vm6, %v5270_v20 }
 0xe6c   : > { %8340 = vmatpush3.bf16.msra.mxu0 %v5380_v19  ;;  %8341 = vmatprep.mubr.msk.bf16.mxu0 %vm8927_vm0, %v10781_v23 }
 0xe6d   : > { %8351 = vmatprep.subr.bf16.mxu0 %v10781_v23 }
 0xe71   : > { %v8793_v45 = vpop.eup %8792 }
 0xe72   : > { %v5242_v18 = vsel %vm2269_vm6, %v8793_v45, 0.0  ;;  %v8795_v28 = vpop.eup %8794 }
 0xe73   : > { %v5248_v33 = vsel %vm2269_vm6, %v8795_v28, 0.0 }
 0xe79   : > { %5470 = vrot.lane.b32.xlu0 %v9708_v26, %s8932_s29 }
 0xe98   : > { %5243 = vadd.xlane.f32.xlu0 %v5242_v18 }
 0xe9c   : > { %5249 = vadd.xlane.f32.xlu0 %v5248_v33  ;;  %v8594_v33 = vld [vmem:[%s9089_s14] ss:$16 sps:$4 sm:$0xff]  }
 0xeb2   : > { %5566 = vrot.lane.b32.xlu0 %v9730_v63, %s8932_s29 }
 0xef0   : > { %v5238_v26 = vpop.xlane.xlu0 %5237 }
 0xef1   : > { %8796 = vrcp.f32 %v5238_v26  ;;  %v8596_v26 = vld [vmem:[%s9089_s14 + $0x4] ss:$16 sps:$4 sm:$0xff]  }
 0xef2   : > { %6038 = vmatprep.subr.bf16.mxu1 %v8596_v26 }
 0xef3   : > { %6039 = vmatpush1.bf16.msra.mxu1 %v8594_v33  ;;  %v8838_v33 = vld [vmem:[#allocation2 + $0x20] sm:$0xff] }
 0xef4   : > { %v5471_v40 = vpop.permute.xlu0 %5470 }
 0xef5   : > { %v5476_v17 = vsel %vm2369_vm5, %v5471_v40, 0  ;;  %v8602_v40 = vld [vmem:[%s9089_s14 + $0x24] ss:$16 sps:$4 sm:$0xff]  }
 0xef6   : > { %6040 = vmatprep.subr.bf16.mxu1 %v8602_v40 }
 0xefb   : > { %v8797_v43 = vpop.eup %8796 }
 0xefc   : > { %v5264_v2 = vmul.f32 %v8797_v43, %v8789_v8  ;;  %v8597_v43 = vld [vmem:[%s9089_s14 + $0x8] ss:$16 sps:$4 sm:$0xff]  }
 0xefe   : > { %v5272_v53 = vpack.c.bf16 %v5264_v2, %v5264_v2  ;;  %v8599_v2 = vld [vmem:[%s9089_s14 + $0xc] ss:$16 sps:$4 sm:$0xff]  }
 0xf00   : > { %8342 = vmatmul.mubr.msk.bf16.vlgmr.msra.gmra.mrb[132].mxu0 %vm2269_vm6, %v5272_v53  ;;  %v8605_v53 = vld [vmem:[%s9089_s14 + $0x2c] ss:$16 sps:$4 sm:$0xff]  }
 0xf01   : > { %8352 = vmatpush3.bf16.msra.mxu0 %v5476_v17  ;;  %8353 = vmatprep.mubr.msk.bf16.mxu0 %vm8927_vm0, %v10781_v23  ;;  %v8600_v17 = vld [vmem:[%s9089_s14 + $0x20] ss:$16 sps:$4 sm:$0xff]  }
 0xf02   : > { %8363 = vmatprep.subr.bf16.mxu0 %v10781_v23  ;;  %6041 = vmatpush1.bf16.msra.mxu1 %v8600_v17 }
 0xf17   : > { %v5368_v0 = vpop.f32.mrb[136].mxu1 }
 0xf18   : > { %v8337_v16 = vpop.f32.mrb[137].mxu1 }
 0xf19   : > { %v5371_v34 = vpop.f32.mrb[138].mxu1  ;;  %v8608_v16 = vld [vmem:[%s9089_s14 + $0x44] ss:$16 sps:$4 sm:$0xff]  }
 0xf1a   : > { %v8338_v63 = vpop.f32.mrb[139].mxu1  ;;  %v8611_v34 = vld [vmem:[%s9089_s14 + $0x4c] ss:$16 sps:$4 sm:$0xff]   ;;  %6042 = vmatprep.subr.bf16.mxu1 %v8608_v16 }
 0xf1b   : > { %v8606_v63 = vld [vmem:[%s9089_s14 + $0x40] ss:$16 sps:$4 sm:$0xff]  }
 0xf1c   : > { %6043 = vmatpush1.bf16.msra.mxu1 %v8606_v63 }
 0xf1f   : > { %v5464_v51 = vpop.f32.mrb[140].mxu1 }
 0xf20   : > { %v8349_v5 = vpop.f32.mrb[141].mxu1 }
 0xf21   : > { %v5467_v15 = vpop.f32.mrb[142].mxu1 }
 0xf22   : > { %v8350_v27 = vpop.f32.mrb[143].mxu1 }
 0xf25   : > { %v5244_v39 = vpop.xlane.xlu0 %5243 }
 0xf26   : > { %8798 = vrcp.f32 %v5244_v39 }
 0xf27   : > { %v5560_v42 = vpop.f32.mrb[144].mxu1 }
 0xf28   : > { %v8361_v22 = vpop.f32.mrb[145].mxu1 }
 0xf29   : > { %v5563_v30 = vpop.f32.mrb[146].mxu1  ;;  %v5250_v3 = vpop.xlane.xlu0 %5249 }
 0xf2a   : > { %v8362_v47 = vpop.f32.mrb[147].mxu1  ;;  %8800 = vrcp.f32 %v5250_v3  ;;  %v8834_v3 = vld [vmem:[#allocation2] sm:$0xff] }
 0xf2d   : > { %v5567_v37 = vpop.permute.xlu0 %5566 }
 0xf2e   : > { %v5572_v38 = vsel %vm2369_vm5, %v5567_v37, 0  ;;  %vm7262_vm5 = vcmask (!%p7657_p6), 523264  }
 0xf2f   : > { %v5656_v13 = vpop.f32.mrb[148].mxu1 }
 0xf30   : > { %v8799_v61 = vpop.eup %8798  ;;  %v8373_v24 = vpop.f32.mrb[149].mxu1 }
 0xf31   : > { %v5266_v32 = vmul.f32 %v8799_v61, %v8793_v45  ;;  %v5659_v11 = vpop.f32.mrb[150].mxu1  ;;  %v8835_v61 = vld [vmem:[#allocation2 + $0x10] sm:$0xff] }
 0xf32   : > { %v8374_v1 = vpop.f32.mrb[151].mxu1  ;;  %v8837_v11 = vld [vmem:[#allocation2 + $0x18] sm:$0xff] }
 0xf33   : > { %v5274_v50 = vpack.c.bf16 %v5266_v32, %v5266_v32 }
 0xf34   : > { %v8801_v54 = vpop.eup %8800 }
 0xf35   : > { %8354 = vmatmul.mubr.msk.bf16.vlgmr.msra.gmra.mrb[136].mxu0 %vm2269_vm6, %v5274_v50  ;;  %v5268_v6 = vmul.f32 %v8801_v54, %v8795_v28  ;;  %v8614_v50 = vld [vmem:[%s9089_s14 + $0x64] ss:$16 sps:$4 sm:$0xff]   ;;  %v8612_v54 = vld [vmem:[%s9089_s14 + $0x60] ss:$16 sps:$4 sm:$0xff]  }
 0xf36   : > { %8364 = vmatpush3.bf16.msra.mxu0 %v5572_v38  ;;  %8365 = vmatprep.mubr.msk.bf16.mxu0 %vm8927_vm0, %v10781_v23  ;;  %v8615_v38 = vld [vmem:[%s9089_s14 + $0x68] ss:$16 sps:$4 sm:$0xff]   ;;  %vm7260_vm0 = vcmask (!%p7657_p6), 457728  }
 0xf37   : > { %8375 = vmatprep.subr.bf16.mxu0 %v8592_v49  ;;  %v5276_v52 = vpack.c.bf16 %v5268_v6, %v5268_v6  ;;  %6044 = vmatprep.subr.bf16.mxu1 %v8614_v50  ;;  %v8618_v6 = vld [vmem:[%s9089_s14 + $0x80] ss:$16 sps:$4 sm:$0xff]  }
 0xf38   : > { %6045 = vmatpush1.bf16.msra.mxu1 %v8612_v54 }
 0xf3d   : > { %8366 = vmatmul.mubr.msk.bf16.vlgmr.msra.gmra.mrb[140].mxu0 %vm2269_vm6, %v5276_v52  ;;  %v8620_v52 = vld [vmem:[%s9089_s14 + $0x84] ss:$16 sps:$4 sm:$0xff]  }
 0xf3e   : > { %v5320_v60 = vpop.f32.mrb[128].mxu0  ;;  %8376 = vmatpush3.bf16.msra.mxu0 %v8592_v49  ;;  %v8617_v49 = vld [vmem:[%s9089_s14 + $0x6c] ss:$16 sps:$4 sm:$0xff]   ;;  %6046 = vmatprep.subr.bf16.mxu1 %v8620_v52 }
 0xf3f   : > { %v5662_v57 = vpack.c.bf16 %v5368_v0, %v5320_v60  ;;  %v8331_v62 = vpop.f32.mrb[129].mxu0  ;;  %8377 = vmatprep.subr.bf16.mxu0 %v8593_v29  ;;  %v8603_v0 = vld [vmem:[%s9089_s14 + $0x28] ss:$16 sps:$4 sm:$0xff]   ;;  %v8623_v60 = vld [vmem:[%s9089_s14 + $0x8c] ss:$16 sps:$4 sm:$0xff]   ;;  %6047 = vmatpush1.bf16.msra.mxu1 %v8618_v6 }
 0xf40   : > { %v5323_v8 = vpop.f32.mrb[130].mxu0  ;;  %v8626_v62 = vld [vmem:[%s9089_s14 + $0xa4] ss:$16 sps:$4 sm:$0xff]  }
 0xf41   : > { %v8332_v25 = vpop.f32.mrb[131].mxu0  ;;  %8379 = vmatprep.mubr.msk.bf16.mxu0 %vm1900_vm4, %v5662_v57  ;;  %v8624_v57 = vld [vmem:[%s9089_s14 + $0xa0] ss:$16 sps:$4 sm:$0xff]   ;;  %v8627_v8 = vld [vmem:[%s9089_s14 + $0xa8] ss:$16 sps:$4 sm:$0xff]   ;;  %6048 = vmatprep.subr.bf16.mxu1 %v8626_v62 }
 0xf42   : > { %8378 = vmatpush3.bf16.msra.mxu0 %v8593_v29  ;;  %v8621_v29 = vld [vmem:[%s9089_s14 + $0x88] ss:$16 sps:$4 sm:$0xff]   ;;  %v8629_v25 = vld [vmem:[%s9089_s14 + $0xac] ss:$16 sps:$4 sm:$0xff]  }
 0xf43   : > { %6111 = vmatprep.subr.bf16.mxu0 %v8599_v2  ;;  %6049 = vmatpush1.bf16.msra.mxu1 %v8624_v57  ;;  %v8839_v2 = vld [vmem:[#allocation2 + $0x30] sm:$0xff] }
 0xfd3   : > { %v5416_v35 = vpop.f32.mrb[132].mxu0 }
 0xfd4   : > { %v5663_v9 = vpack.c.bf16 %v5464_v51, %v5416_v35  ;;  %v8343_v31 = vpop.f32.mrb[133].mxu0  ;;  %v8609_v51 = vld [vmem:[%s9089_s14 + $0x48] ss:$16 sps:$4 sm:$0xff]   ;;  %v8632_v35 = vld [vmem:[%s9089_s14 + $0xc4] ss:$16 sps:$4 sm:$0xff]  }
 0xfd5   : > { %v5419_v23 = vpop.f32.mrb[134].mxu0  ;;  %v8630_v31 = vld [vmem:[%s9089_s14 + $0xc0] ss:$16 sps:$4 sm:$0xff]   ;;  %6050 = vmatprep.subr.bf16.mxu1 %v8632_v35 }
 0xfd6   : > { %v8344_v41 = vpop.f32.mrb[135].mxu0  ;;  %8380 = vmatmul.mubr.msk.bf16.vlgmr.msra.gmra.mrb[84].mxu0 %vm1900_vm4, %v5663_v9  ;;  %v8635_v9 = vld [vmem:[%s9089_s14 + $0xcc] ss:$16 sps:$4 sm:$0xff]   ;;  %v8633_v23 = vld [vmem:[%s9089_s14 + $0xc8] ss:$16 sps:$4 sm:$0xff]   ;;  %6051 = vmatpush1.bf16.msra.mxu1 %v8630_v31 }
 0xfd7   : > { %6112 = vmatpush1.bf16.msra.mxu0 %v8597_v43  ;;  %v8638_v41 = vld [vmem:[%s9089_s14 + $0xe4] ss:$16 sps:$4 sm:$0xff]  }
 0xfd8   : > { %6113 = vmatprep.subr.bf16.mxu0 %v8605_v53  ;;  %6052 = vmatprep.subr.bf16.mxu1 %v8638_v41  ;;  %v8840_v53 = vld [vmem:[#allocation2 + $0x28] sm:$0xff] }
 0xfdb   : > { %6114 = vmatpush1.bf16.msra.mxu0 %v8603_v0  ;;  %v8841_v0 = vld [vmem:[#allocation2 + $0x38] sm:$0xff] }
 0xfdc   : > { %6115 = vmatprep.subr.bf16.mxu0 %v8611_v34 }
 0xfdf   : > { %6116 = vmatpush1.bf16.msra.mxu0 %v8609_v51 }
 0xfe0   : > { %6117 = vmatprep.subr.bf16.mxu0 %v8617_v49 }
 0xfe3   : > { %6118 = vmatpush1.bf16.msra.mxu0 %v8615_v38 }
 0xfe4   : > { %6119 = vmatprep.subr.bf16.mxu0 %v8623_v60 }
 0xfe7   : > { %6120 = vmatpush1.bf16.msra.mxu0 %v8621_v29 }
 0xfe8   : > { %6121 = vmatprep.subr.bf16.mxu0 %v8629_v25 }
 0xfeb   : > { %6122 = vmatpush1.bf16.msra.mxu0 %v8627_v8 }
 0xfec   : > { %6123 = vmatprep.subr.bf16.mxu0 %v8635_v9 }
 0xfef   : > { %6124 = vmatpush1.bf16.msra.mxu0 %v8633_v23 }
0x1008   : > { %v5512_v10 = vpop.f32.mrb[136].mxu0 }
0x1009   : > { %v5664_v20 = vpack.c.bf16 %v5560_v42, %v5512_v10  ;;  %v8355_v19 = vpop.f32.mrb[137].mxu0  ;;  %v8641_v10 = vld [vmem:[%s9089_s14 + $0xec] ss:$16 sps:$4 sm:$0xff]  }
0x100a   : > { %v5515_v56 = vpop.f32.mrb[138].mxu0  ;;  %v8639_v19 = vld [vmem:[%s9089_s14 + $0xe8] ss:$16 sps:$4 sm:$0xff]   ;;  %6125 = vmatprep.subr.bf16.mxu0 %v8641_v10 }
0x100b   : > { %v8356_v14 = vpop.f32.mrb[139].mxu0  ;;  %8383 = vmatprep.mubr.msk.bf16.mxu0 %vm1900_vm4, %v5664_v20  ;;  %v8636_v20 = vld [vmem:[%s9089_s14 + $0xe0] ss:$16 sps:$4 sm:$0xff]   ;;  %6126 = vmatpush1.bf16.msra.mxu0 %v8639_v19 }
0x100c   : > { %6053 = vmatpush1.bf16.msra.mxu1 %v8636_v20 }
0x1010   : > { %v5608_v21 = vpop.f32.mrb[140].mxu0 }
0x1011   : > { %v5665_v12 = vpack.c.bf16 %v5656_v13, %v5608_v21  ;;  %v8367_v45 = vpop.f32.mrb[141].mxu0 }
0x1012   : > { %v5611_v18 = vpop.f32.mrb[142].mxu0 }
0x1013   : > { %v8368_v28 = vpop.f32.mrb[143].mxu0  ;;  %8384 = vmatmul.mubr.msk.bf16.gmra.mrb[88].mxu0 %vm1900_vm4, %v5665_v12 }
0x1014   : > { %6143 = vmatprep.mubr.bf16.mxu0 %v10786_v46 }
0x10a9   : > { %v8381_v5 = vpop.f32.mrb[84].mxu0 }
0x10aa   : > { %v8413_v15 = vadd.f32 %v8381_v5, %v10072_v7  ;;  %v5724_v27 = vpop.f32.mrb[85].mxu0  ;;  %v8836_v7 = vld [vmem:[#allocation2 + $0x8] sm:$0xff] }
0x10ab   : > { %v8414_v39 = vadd.f32 %v5724_v27, %v10074_v59  ;;  %v8382_v42 = vpop.f32.mrb[86].mxu0 }
0x10ac   : > { %v8415_v22 = vadd.f32 %v8382_v42, %v10076_v58  ;;  %v5727_v30 = vpop.f32.mrb[87].mxu0  ;;  %v10412_v24 = vadd.f32 %v8835_v61, %v8413_v15 }
0x10ad   : > { %v10409_v47 = vadd.f32 %v8834_v3, %v8414_v39  ;;  %v8416_v13 = vadd.f32 %v5727_v30, %v10078_v36 }
0x10ae   : > { %v10420_v36 = vadd.f32 %v8837_v11, %v8415_v22  ;;  %v5774_v37 = vmul.f32 %v10412_v24, %v10412_v24 }
0x10af   : > { %v10414_v32 = vadd.f32 %v8836_v7, %v8416_v13  ;;  %v5772_v59 = vmul.f32 %v10409_v47, %v10409_v47 }
0x10b0   : > { %v5775_v1 = vmul.f32 %v10420_v36, %v10420_v36 }
0x10b1   : > { %5780 = vadd.xlane.f32.xlu0 %v5772_v59  ;;  %v5773_v58 = vmul.f32 %v10414_v32, %v10414_v32 }
0x10b3   : > { %5782 = vadd.xlane.f32.xlu1 %v5773_v58  ;;  %v7608_v58 = vld [vmem:[%s670_s28] ss:$0 sm:$0xff] }
0x10b5   : > { %5784 = vadd.xlane.f32.xlu0 %v5774_v37 }
0x10b9   : > { %5786 = vadd.xlane.f32.xlu0 %v5775_v1 }
0x10e6   : > { %v8385_v56 = vpop.f32.mrb[88].mxu0 }
0x10e7   : > { %v8417_v14 = vadd.f32 %v8385_v56, %v10080_v48  ;;  %v5740_v21 = vpop.f32.mrb[89].mxu0 }
0x10e8   : > { %v8418_v12 = vadd.f32 %v5740_v21, %v10082_v55  ;;  %v8386_v45 = vpop.f32.mrb[90].mxu0 }
0x10e9   : > { %v8419_v18 = vadd.f32 %v8386_v45, %v10084_v44  ;;  %v5743_v28 = vpop.f32.mrb[91].mxu0  ;;  %v10452_v40 = vadd.f32 %v8839_v2, %v8417_v14 }
0x10ea   : > { %v10449_v26 = vadd.f32 %v8838_v33, %v8418_v12  ;;  %v8420_v43 = vadd.f32 %v5743_v28, %v10086_v4 }
0x10eb   : > { %v10458_v55 = vadd.f32 %v8841_v0, %v8419_v18  ;;  %v5778_v4 = vmul.f32 %v10452_v40, %v10452_v40 }
0x10ec   : > { %v10454_v17 = vadd.f32 %v8840_v53, %v8420_v43  ;;  %v5776_v48 = vmul.f32 %v10449_v26, %v10449_v26 }
0x10ed   : > { %v5779_v16 = vmul.f32 %v10458_v55, %v10458_v55 }
0x10ee   : > { %5788 = vadd.xlane.f32.xlu0 %v5776_v48  ;;  %v5777_v44 = vmul.f32 %v10454_v17, %v10454_v17 }
0x10f0   : > { %5790 = vadd.xlane.f32.xlu1 %v5777_v44 }
0x10f2   : > { %5792 = vadd.xlane.f32.xlu0 %v5778_v4  ;;  %v8642_v4 = vld [vmem:[%s9094_s27 + $0x40] sm:$0xff]  }
0x10f3   : > { %7869 = vmatprep.subr.bf16.mxu1 %v8642_v4 }
0x10f4   : > { %5794 = vadd.xlane.f32.xlu1 %v5779_v16  ;;  %v8643_v16 = vld [vmem:[%s9094_s27] sm:$0xff]  }
0x113e   : > { %v5781_v34 = vpop.xlane.xlu0 %5780 }
0x113f   : > { %v5796_v63 = vmul.f32 0.0078125, %v5781_v34  ;;  %v8644_v34 = vld [vmem:[%s9094_s27 + $0x48] sm:$0xff]  }
0x1140   : > { %v5783_v51 = vpop.xlane.xlu1 %5782 }
0x1141   : > { %v5804_v5 = vadd.f32 1e-06, %v5796_v63  ;;  %v5797_v15 = vmul.f32 0.0078125, %v5783_v51  ;;  %v8645_v63 = vld [vmem:[%s9094_s27 + $0x8] sm:$0xff]   ;;  %v8647_v51 = vld [vmem:[%s9094_s27 + $0x10] sm:$0xff]  }
0x1142   : > { %v5785_v27 = vpop.xlane.xlu0 %5784 }
0x1143   : > { %8802 = vrsqrt.f32 %v5804_v5  ;;  %v5805_v39 = vadd.f32 1e-06, %v5797_v15  ;;  %v5798_v42 = vmul.f32 0.0078125, %v5785_v27  ;;  %v8648_v5 = vld [vmem:[%s9094_s27 + $0x58] sm:$0xff]   ;;  %v8650_v27 = vld [vmem:[%s9094_s27 + $0x60] sm:$0xff]  }
0x1144   : > { %v8649_v15 = vld [vmem:[%s9094_s27 + $0x18] sm:$0xff]  }
0x1145   : > { %8804 = vrsqrt.f32 %v5805_v39  ;;  %v5806_v22 = vadd.f32 1e-06, %v5798_v42  ;;  %v8651_v39 = vld [vmem:[%s9094_s27 + $0x20] sm:$0xff]   ;;  %v8652_v42 = vld [vmem:[%s9094_s27 + $0x68] sm:$0xff]  }
0x1146   : > { %v5787_v30 = vpop.xlane.xlu0 %5786 }
0x1147   : > { %v5799_v3 = vmul.f32 0.0078125, %v5787_v30  ;;  %8806 = vrsqrt.f32 %v5806_v22  ;;  %v8653_v22 = vld [vmem:[%s9094_s27 + $0x28] sm:$0xff]   ;;  %v8654_v30 = vld [vmem:[%s9094_s27 + $0x70] sm:$0xff]  }
0x1149   : > { %v5807_v13 = vadd.f32 1e-06, %v5799_v3  ;;  %v8655_v3 = vld [vmem:[%s9094_s27 + $0x30] sm:$0xff]  }
0x114b   : > { %8808 = vrsqrt.f32 %v5807_v13  ;;  %v8656_v13 = vld [vmem:[%s9094_s27 + $0x78] sm:$0xff]  }
0x114d   : > { %v8803_v61 = vpop.eup %8802 }
0x114e   : > { %v5820_v7 = vmul.f32 %v8803_v61, %v10409_v47  ;;  %v8657_v61 = vld [vmem:[%s9094_s27 + $0x38] sm:$0xff]  }
0x114f   : > { %v8805_v59 = vpop.eup %8804 }
0x1150   : > { %v5821_v11 = vmul.f32 %v8805_v59, %v10414_v32  ;;  %v5834_v37 = vmul.f32 %v7608_v58, %v5820_v7 }
0x1151   : > { %v8807_v50 = vpop.eup %8806 }
0x1152   : > { %v5835_v1 = vmul.f32 %v7608_v58, %v5821_v11  ;;  %v5822_v38 = vmul.f32 %v8807_v50, %v10412_v24 }
0x1154   : > { %v5842_v49 = vpack.c.bf16 %v5835_v1, %v5834_v37  ;;  %v5836_v29 = vmul.f32 %v7608_v58, %v5822_v38 }
0x1155   : > { %v8809_v54 = vpop.eup %8808 }
0x1156   : > { %6071 = vmatmul.mubr.bf16.vlgmr.msra.gmra.mrb[152].mxu1 %v5842_v49  ;;  %6144 = vmatmul.mubr.bf16.vlgmr.msra.gmra.mrb[144].mxu0 %v5842_v49  ;;  %v5823_v6 = vmul.f32 %v8809_v54, %v10420_v36 }
0x1157   : > { %6080 = vmatprep.mubr.bf16.mxu1 %v10786_v46  ;;  %6153 = vmatprep.mubr.bf16.mxu0 %v10786_v46 }
0x1158   : > { %v5837_v52 = vmul.f32 %v7608_v58, %v5823_v6  ;;  %7870 = vmatpush3.bf16.msra.mxu1 %v8643_v16 }
0x1159   : > { %7871 = vmatprep.subr.bf16.mxu1 %v8644_v34 }
0x115a   : > { %v5843_v60 = vpack.c.bf16 %v5837_v52, %v5836_v29 }
0x115c   : > { %7872 = vmatpush3.bf16.msra.mxu1 %v8645_v63 }
0x115e   : > { %6081 = vmatmul.mubr.bf16.gmra.mrb[156].mxu1 %v5843_v60  ;;  %6154 = vmatmul.mubr.bf16.gmra.mrb[148].mxu0 %v5843_v60 }
0x115f   : > { %6090 = vmatprep.mubr.bf16.mxu1 %v10786_v46  ;;  %6163 = vmatprep.mubr.bf16.mxu0 %v10786_v46 }
0x117b   : > { %v5789_v57 = vpop.xlane.xlu0 %5788 }
0x117c   : > { %v5800_v62 = vmul.f32 0.0078125, %v5789_v57 }
0x117d   : > { %v5791_v8 = vpop.xlane.xlu1 %5790 }
0x117e   : > { %v5808_v25 = vadd.f32 1e-06, %v5800_v62  ;;  %v5801_v35 = vmul.f32 0.0078125, %v5791_v8 }
0x117f   : > { %v5793_v9 = vpop.xlane.xlu0 %5792 }
0x1180   : > { %8810 = vrsqrt.f32 %v5808_v25  ;;  %v5809_v31 = vadd.f32 1e-06, %v5801_v35  ;;  %v5802_v23 = vmul.f32 0.0078125, %v5793_v9 }
0x1181   : > { %v5795_v41 = vpop.xlane.xlu1 %5794 }
0x1182   : > { %8812 = vrsqrt.f32 %v5809_v31  ;;  %v5810_v10 = vadd.f32 1e-06, %v5802_v23  ;;  %v5803_v20 = vmul.f32 0.0078125, %v5795_v41 }
0x1184   : > { %v5811_v19 = vadd.f32 1e-06, %v5803_v20  ;;  %8814 = vrsqrt.f32 %v5810_v10 }
0x1186   : > { %8816 = vrsqrt.f32 %v5811_v19 }
0x118a   : > { %v8811_v56 = vpop.eup %8810 }
0x118b   : > { %v5824_v14 = vmul.f32 %v8811_v56, %v10449_v26 }
0x118c   : > { %v8813_v21 = vpop.eup %8812 }
0x118d   : > { %v5825_v12 = vmul.f32 %v8813_v21, %v10454_v17  ;;  %v5838_v18 = vmul.f32 %v7608_v58, %v5824_v14 }
0x118e   : > { %v8815_v45 = vpop.eup %8814 }
0x118f   : > { %v5839_v28 = vmul.f32 %v7608_v58, %v5825_v12  ;;  %v5826_v53 = vmul.f32 %v8815_v45, %v10452_v40 }
0x1190   : > { %v8817_v33 = vpop.eup %8816 }
0x1191   : > { %v5844_v43 = vpack.c.bf16 %v5839_v28, %v5838_v18  ;;  %v5827_v2 = vmul.f32 %v8817_v33, %v10458_v55  ;;  %v5840_v0 = vmul.f32 %v7608_v58, %v5826_v53 }
0x1193   : > { %6091 = vmatmul.mubr.bf16.gmra.mrb[160].mxu1 %v5844_v43  ;;  %6164 = vmatmul.mubr.bf16.gmra.mrb[152].mxu0 %v5844_v43  ;;  %v5841_v48 = vmul.f32 %v7608_v58, %v5827_v2 }
0x1194   : > { %6100 = vmatprep.mubr.bf16.mxu1 %v10786_v46  ;;  %6173 = vmatprep.mubr.bf16.mxu0 %v10786_v46  ;;  %v8646_v46 = vld [vmem:[%s9094_s27 + $0x50] sm:$0xff]  }
0x1195   : > { %v5845_v44 = vpack.c.bf16 %v5841_v48, %v5840_v0  ;;  %7873 = vmatprep.subr.bf16.mxu1 %v8646_v46 }
0x1196   : > { %7874 = vmatpush3.bf16.msra.mxu1 %v8647_v51 }
0x1197   : > { %7875 = vmatprep.subr.bf16.mxu1 %v8648_v5 }
0x119a   : > { %7876 = vmatpush3.bf16.msra.mxu1 %v8649_v15 }
0x119b   : > { %6101 = vmatmul.mubr.bf16.gmra.mrb[164].mxu1 %v5845_v44  ;;  %6174 = vmatmul.mubr.bf16.gmra.mrb[156].mxu0 %v5845_v44 }
0x119c   : > { %7877 = vmatprep.subr.bf16.mxu1 %v8650_v27 }
0x119e   : > { %7878 = vmatpush3.bf16.msra.mxu1 %v8651_v39 }
0x119f   : > { %7879 = vmatprep.subr.bf16.mxu1 %v8652_v42 }
0x11a2   : > { %7880 = vmatpush3.bf16.msra.mxu1 %v8653_v22 }
0x11a3   : > { %7881 = vmatprep.subr.bf16.mxu1 %v8654_v30 }
0x11a6   : > { %7882 = vmatpush3.bf16.msra.mxu1 %v8655_v3 }
0x11a7   : > { %7883 = vmatprep.subr.bf16.mxu1 %v8656_v13 }
0x11aa   : > { %7884 = vmatpush3.bf16.msra.mxu1 %v8657_v61 }
0x1229   : > { %v6072_v7 = vpop.f32.mrb[152].mxu1  ;;  %v6145_v59 = vpop.f32.mrb[144].mxu0 }
0x122a   : > { %v6074_v58 = vpop.f32.mrb[153].mxu1  ;;  %v6147_v11 = vpop.f32.mrb[145].mxu0 }
0x122b   : > { %v6076_v37 = vpop.f32.mrb[154].mxu1  ;;  %v6149_v1 = vpop.f32.mrb[146].mxu0 }
0x122c   : > { %v6184_v50 = vpack.c.bf16 %v6076_v37, %v6072_v7  ;;  %v6186_v49 = vpack.c.bf16 %v6149_v1, %v6145_v59  ;;  %v6078_v54 = vpop.f32.mrb[155].mxu1  ;;  %v6151_v38 = vpop.f32.mrb[147].mxu0 }
0x122d   : > { %v6185_v6 = vpack.c.bf16 %v6078_v54, %v6074_v58  ;;  %v6187_v52 = vpack.c.bf16 %v6151_v38, %v6147_v11 }
0x122e   : > { %v6200_v29 = vmul.bf16 %v6184_v50, %v6184_v50 }
0x122f   : > { %v6201_v60 = vmul.bf16 %v6185_v6, %v6185_v6 }
0x1230   : > { %v6208_v57 = vmul.bf16 %v6200_v29, %v6184_v50 }
0x1231   : > { %v6209_v62 = vmul.bf16 %v6201_v60, %v6185_v6  ;;  %v6082_v8 = vpop.f32.mrb[156].mxu1  ;;  %v6155_v25 = vpop.f32.mrb[148].mxu0 }
0x1232   : > { %v6216_v35 = vmul.bf16 1027030327, %v6208_v57  ;;  %v6084_v9 = vpop.f32.mrb[157].mxu1  ;;  %v6157_v31 = vpop.f32.mrb[149].mxu0 }
0x1233   : > { %v6217_v23 = vmul.bf16 1027030327, %v6209_v62  ;;  %v6086_v41 = vpop.f32.mrb[158].mxu1  ;;  %v6159_v10 = vpop.f32.mrb[150].mxu0 }
0x1234   : > { %v6224_v20 = vadd.bf16 %v6216_v35, %v6184_v50  ;;  %v6188_v19 = vpack.c.bf16 %v6086_v41, %v6082_v8  ;;  %v6190_v56 = vpack.c.bf16 %v6159_v10, %v6155_v25  ;;  %v6088_v14 = vpop.f32.mrb[159].mxu1  ;;  %v6161_v21 = vpop.f32.mrb[151].mxu0 }
0x1235   : > { %v6225_v12 = vadd.bf16 %v6217_v23, %v6185_v6  ;;  %v6189_v45 = vpack.c.bf16 %v6088_v14, %v6084_v9  ;;  %v6191_v18 = vpack.c.bf16 %v6161_v21, %v6157_v31 }
0x1236   : > { %v6232_v28 = vmul.bf16 1061961548, %v6224_v20  ;;  %v6202_v33 = vmul.bf16 %v6188_v19, %v6188_v19 }
0x1237   : > { %v6233_v43 = vmul.bf16 1061961548, %v6225_v12  ;;  %v6203_v2 = vmul.bf16 %v6189_v45, %v6189_v45 }
0x1238   : > { %8818 = vtanh.bf16 %v6232_v28  ;;  %v6210_v53 = vmul.bf16 %v6202_v33, %v6188_v19 }
0x1239   : > { %8820 = vtanh.bf16 %v6233_v43  ;;  %v6211_v48 = vmul.bf16 %v6203_v2, %v6189_v45 }
0x123a   : > { %v6218_v0 = vmul.bf16 1027030327, %v6210_v53 }
0x123b   : > { %v6219_v44 = vmul.bf16 1027030327, %v6211_v48 }
0x123c   : > { %v6226_v4 = vadd.bf16 %v6218_v0, %v6188_v19 }
0x123d   : > { %v6227_v16 = vadd.bf16 %v6219_v44, %v6189_v45 }
0x123e   : > { %v6234_v34 = vmul.bf16 1061961548, %v6226_v4 }
0x123f   : > { %v6235_v63 = vmul.bf16 1061961548, %v6227_v16 }
0x1240   : > { %8822 = vtanh.bf16 %v6234_v34 }
0x1241   : > { %8824 = vtanh.bf16 %v6235_v63 }
0x1243   : > { %v8819_v46 = vpop.eup %8818 }
0x1244   : > { %v8821_v51 = vpop.eup %8820  ;;  %v6248_v5 = vadd.bf16 1065369472, %v8819_v46 }
0x1245   : > { %v6249_v15 = vadd.bf16 1065369472, %v8821_v51 }
0x1246   : > { %v6256_v27 = vmul.bf16 1056980736, %v6248_v5 }
0x1247   : > { %v6257_v39 = vmul.bf16 1056980736, %v6249_v15 }
0x1248   : > { %v6264_v42 = vmul.bf16 %v6256_v27, %v6184_v50 }
0x1249   : > { %v6265_v22 = vmul.bf16 %v6257_v39, %v6185_v6 }
0x124a   : > { %v6272_v30 = vmul.bf16 %v6264_v42, %v6186_v49 }
0x124b   : > { %v8823_v3 = vpop.eup %8822  ;;  %v6273_v13 = vmul.bf16 %v6265_v22, %v6187_v52 }
0x124c   : > { %v8825_v61 = vpop.eup %8824  ;;  %v6250_v7 = vadd.bf16 1065369472, %v8823_v3 }
0x124d   : > { %v6251_v59 = vadd.bf16 1065369472, %v8825_v61  ;;  %6440 = vmatprep.mubr.bf16.mxu1 %v6273_v13 }
0x124e   : > { %v6258_v58 = vmul.bf16 1056980736, %v6250_v7  ;;  %6441 = vmatmul.mubr.bf16.vlgmr.msra.gmra.mrb[168].mxu1 %v6272_v30 }
0x124f   : > { %v6259_v11 = vmul.bf16 1056980736, %v6251_v59 }
0x1250   : > { %v6266_v37 = vmul.bf16 %v6258_v58, %v6188_v19 }
0x1251   : > { %v6267_v1 = vmul.bf16 %v6259_v11, %v6189_v45 }
0x1252   : > { %v6274_v54 = vmul.bf16 %v6266_v37, %v6190_v56 }
0x1253   : > { %v6275_v38 = vmul.bf16 %v6267_v1, %v6191_v18 }
0x1255   : > { %6448 = vmatprep.mubr.bf16.mxu1 %v6275_v38 }
0x1256   : > { %6449 = vmatmul.mubr.bf16.gmra.mrb[172].mxu1 %v6274_v54 }
0x1266   : > { %v6092_v29 = vpop.f32.mrb[160].mxu1  ;;  %v6165_v60 = vpop.f32.mrb[152].mxu0 }
0x1267   : > { %v6094_v50 = vpop.f32.mrb[161].mxu1  ;;  %v6167_v6 = vpop.f32.mrb[153].mxu0 }
0x1268   : > { %v6096_v49 = vpop.f32.mrb[162].mxu1  ;;  %v6169_v57 = vpop.f32.mrb[154].mxu0 }
0x1269   : > { %v6192_v52 = vpack.c.bf16 %v6096_v49, %v6092_v29  ;;  %v6194_v62 = vpack.c.bf16 %v6169_v57, %v6165_v60  ;;  %v6098_v8 = vpop.f32.mrb[163].mxu1  ;;  %v6171_v25 = vpop.f32.mrb[155].mxu0 }
0x126a   : > { %v6193_v35 = vpack.c.bf16 %v6098_v8, %v6094_v50  ;;  %v6195_v9 = vpack.c.bf16 %v6171_v25, %v6167_v6 }
0x126b   : > { %v6204_v31 = vmul.bf16 %v6192_v52, %v6192_v52 }
0x126c   : > { %v6205_v23 = vmul.bf16 %v6193_v35, %v6193_v35 }
0x126d   : > { %v6212_v41 = vmul.bf16 %v6204_v31, %v6192_v52 }
0x126e   : > { %v6213_v10 = vmul.bf16 %v6205_v23, %v6193_v35  ;;  %v6102_v20 = vpop.f32.mrb[164].mxu1  ;;  %v6175_v19 = vpop.f32.mrb[156].mxu0 }
0x126f   : > { %v6220_v56 = vmul.bf16 1027030327, %v6212_v41  ;;  %v6104_v14 = vpop.f32.mrb[165].mxu1  ;;  %v6177_v21 = vpop.f32.mrb[157].mxu0 }
0x1270   : > { %v6221_v12 = vmul.bf16 1027030327, %v6213_v10  ;;  %v6106_v45 = vpop.f32.mrb[166].mxu1  ;;  %v6179_v18 = vpop.f32.mrb[158].mxu0 }
0x1271   : > { %v6228_v28 = vadd.bf16 %v6220_v56, %v6192_v52  ;;  %v6196_v33 = vpack.c.bf16 %v6106_v45, %v6102_v20  ;;  %v6198_v43 = vpack.c.bf16 %v6179_v18, %v6175_v19  ;;  %v6108_v2 = vpop.f32.mrb[167].mxu1  ;;  %v6181_v53 = vpop.f32.mrb[159].mxu0 }
0x1272   : > { %v6229_v48 = vadd.bf16 %v6221_v12, %v6193_v35  ;;  %v6197_v0 = vpack.c.bf16 %v6108_v2, %v6104_v14  ;;  %v6199_v44 = vpack.c.bf16 %v6181_v53, %v6177_v21 }
0x1273   : > { %v6236_v4 = vmul.bf16 1061961548, %v6228_v28  ;;  %v6206_v16 = vmul.bf16 %v6196_v33, %v6196_v33 }
0x1274   : > { %v6237_v34 = vmul.bf16 1061961548, %v6229_v48  ;;  %v6207_v63 = vmul.bf16 %v6197_v0, %v6197_v0 }
0x1275   : > { %8826 = vtanh.bf16 %v6236_v4  ;;  %v6214_v46 = vmul.bf16 %v6206_v16, %v6196_v33 }
0x1276   : > { %8828 = vtanh.bf16 %v6237_v34  ;;  %v6215_v51 = vmul.bf16 %v6207_v63, %v6197_v0 }
0x1277   : > { %v6222_v5 = vmul.bf16 1027030327, %v6214_v46 }
0x1278   : > { %v6223_v15 = vmul.bf16 1027030327, %v6215_v51  ;;  %v8933_v51 = vmov (!%p7657_p6), 0  }
0x1279   : > { %v6230_v27 = vadd.bf16 %v6222_v5, %v6196_v33  ;;  %8843 = vset.pattern.permute.xlu1 (!%p7657_p6), %v8933_v51  ;;  %8842 = vset.pattern.permute.xlu0 (!%p7657_p6), %v8933_v51 }
0x127a   : > { %v6231_v39 = vadd.bf16 %v6223_v15, %v6197_v0 }
0x127b   : > { %v6238_v42 = vmul.bf16 1061961548, %v6230_v27 }
0x127c   : > { %v6239_v22 = vmul.bf16 1061961548, %v6231_v39 }
0x127d   : > { %8830 = vtanh.bf16 %v6238_v42  ;;  %v6840_v42 = vld [vmem:[#allocation4] sm:$0xff] (!%p7657_p6) }
0x127e   : > { %8832 = vtanh.bf16 %v6239_v22  ;;  %v10787_v22 = vld [vmem:[#allocation13_spill] sm:$0xff] (!%p7657_p6) }
0x1280   : > { %v8827_v30 = vpop.eup %8826 }
0x1281   : > { %v8829_v3 = vpop.eup %8828  ;;  %v6252_v13 = vadd.bf16 1065369472, %v8827_v30  ;;  %v6849_v30 = vrot.slane (!%p7657_p6), %v6840_v42, %v10787_v22 }
0x1282   : > { %v6253_v61 = vadd.bf16 1065369472, %v8829_v3  ;;  %v8847_v3 = vld [vmem:[%s10746_s13 + $0x8] sm:$0xff] (!%p7657_p6)  }
0x1283   : > { %v6260_v7 = vmul.bf16 1056980736, %v6252_v13  ;;  %v6857_v13 = vcombine.high (!%p7657_p6), %v6849_v30, %v6849_v30 }
0x1284   : > { %v6261_v59 = vmul.bf16 1056980736, %v6253_v61  ;;  %v8848_v61 = vld [vmem:[%s10746_s13 + $0x10] sm:$0xff] (!%p7657_p6)  }
0x1285   : > { %v6268_v58 = vmul.bf16 %v6260_v7, %v6192_v52  ;;  %v6963_v7 = vld [vmem:[#allocation3] sm:$0xff] (!%p7657_p6) }
0x1286   : > { %v6269_v11 = vmul.bf16 %v6261_v59, %v6193_v35  ;;  %v6879_v59 = vrot.slane (!%p7657_p6), %v6857_v13, %v10787_v22 }
0x1287   : > { %v6276_v37 = vmul.bf16 %v6268_v58, %v6194_v62  ;;  %v6865_v58 = vrot.slane (!%p7657_p6), %v6849_v30, %v10787_v22 }
0x1288   : > { %v8831_v1 = vpop.eup %8830  ;;  %v6277_v54 = vmul.bf16 %v6269_v11, %v6195_v9  ;;  %v10563_v11 = vrot.slane (!%p7657_p6), %v6963_v7, %v10787_v22 }
0x1289   : > { %v8833_v38 = vpop.eup %8832  ;;  %v6254_v29 = vadd.bf16 1065369472, %v8831_v1  ;;  %v10788_v1 = vld [vmem:[#allocation14_spill] sm:$0xff] (!%p7657_p6) }
0x128a   : > { %v6255_v60 = vadd.bf16 1065369472, %v8833_v38  ;;  %6456 = vmatprep.mubr.bf16.mxu1 %v6277_v54  ;;  %v6898_v54 = vrot.slane (!%p7657_p6), %v6879_v59, %v10788_v1  ;;  %v6887_v38 = vcombine.high (!%p7657_p6), %v6865_v58, %v6865_v58 }
0x128b   : > { %v6262_v50 = vmul.bf16 1056980736, %v6254_v29  ;;  %6457 = vmatmul.mubr.bf16.gmra.mrb[176].mxu1 %v6276_v37  ;;  %v8849_v37 = vld [vmem:[%s10746_s13 + $0x18] sm:$0xff] (!%p7657_p6)   ;;  %v6842_v29 = vcombine.high (!%p7657_p6), %v6840_v42, %v6840_v42 }
0x128c   : > { %v6263_v6 = vmul.bf16 1056980736, %v6255_v60  ;;  %v6980_v60 = vcombine.high (!%p7657_p6), %v10563_v11, %v10563_v11 }
0x128d   : > { %v6270_v49 = vmul.bf16 %v6262_v50, %v6196_v33  ;;  %v6965_v50 = vcombine.high (!%p7657_p6), %v6963_v7, %v6963_v7 }
0x128e   : > { %v6271_v57 = vmul.bf16 %v6263_v6, %v6197_v0  ;;  %v8850_v6 = vld [vmem:[%s10746_s13 + $0x20] sm:$0xff] (!%p7657_p6)  }
0x128f   : > { %v6278_v8 = vmul.bf16 %v6270_v49, %v6198_v43  ;;  %v6902_v49 = vrot.slane (!%p7657_p6), %v6887_v38, %v10788_v1 }
0x1290   : > { %v6279_v25 = vmul.bf16 %v6271_v57, %v6199_v44  ;;  %v6889_v57 = vcombine.high (!%p7657_p6), %v6879_v59, %v6879_v59 }
0x1292   : > { %6464 = vmatprep.mubr.bf16.mxu1 %v6279_v25  ;;  %v6894_v25 = vrot.slane (!%p7657_p6), %v6865_v58, %v10788_v1 }
0x1293   : > { %6465 = vmatmul.mubr.bf16.gmra.mrb[180].mxu1 %v6278_v8  ;;  %v6856_v8 = vrot.slane (!%p7657_p6), %v6842_v29, %v10787_v22 }
0x1321   : > { %v7885_v31 = vpop.f32.mrb[168].mxu1 }
0x1322   : > { %v7886_v23 = vpop.f32.mrb[169].mxu1 }
0x1323   : > { %v7887_v52 = vadd.f32 %v7886_v23, %v7885_v31  ;;  %v7888_v35 = vpop.f32.mrb[170].mxu1  ;;  %v7002_v31 = vrot.slane (!%p7657_p6), %v6980_v60, %v10787_v22  ;;  %v6979_v23 = vrot.slane (!%p7657_p6), %v6965_v50, %v10787_v22 }
0x1324   : > { %v7889_v62 = vpop.f32.mrb[171].mxu1 }
0x1325   : > { %v10502_v9 = vadd.f32 %v7887_v52, %v10409_v47  ;;  %v7890_v41 = vadd.f32 %v7889_v62, %v7888_v35  ;;  %v8851_v52 = vld [vmem:[%s10746_s13 + $0x28] sm:$0xff] (!%p7657_p6)   ;;  %v6906_v35 = vrot.slane (!%p7657_p6), %v6889_v57, %v10788_v1  ;;  %v6872_v62 = vrot.slane (!%p7657_p6), %v6856_v8, %v10787_v22 }
0x1326   : > { %v6995_v42 = vrot.slane (!%p7657_p6), %v6979_v23, %v10787_v22 }
0x1327   : > { %6481 = vst [vmem:[#allocation2] sm:$0xff] %v10502_v9  ;;  %v10506_v10 = vadd.f32 %v7890_v41, %v10414_v32  ;;  %v6494_v63 = vmul.f32 (!%p7657_p6), %v10502_v9, %v10502_v9  ;;  %v6858_v41 = vcombine.high (!%p7657_p6), %v6856_v8, %v6856_v8 }
0x1328   : > { %v7033_v13 = vrot.slane (!%p7657_p6), %v6995_v42, %v10788_v1 }
0x1329   : > { %6482 = vst [vmem:[#allocation2 + $0x8] sm:$0xff] %v10506_v10  ;;  %v7891_v20 = vpop.f32.mrb[172].mxu1  ;;  %6502 = vadd.xlane.f32.xlu0 (!%p7657_p6), %v6494_v63  ;;  %v6495_v46 = vmul.f32 (!%p7657_p6), %v10506_v10, %v10506_v10  ;;  %v6988_v63 = vrot.slane (!%p7657_p6), %v10563_v11, %v10787_v22 }
0x132a   : > { %v7892_v19 = vpop.f32.mrb[173].mxu1 }
0x132b   : > { %v7893_v56 = vadd.f32 %v7892_v19, %v7891_v20  ;;  %v7894_v14 = vpop.f32.mrb[174].mxu1  ;;  %v7021_v20 = vrot.slane (!%p7657_p6), %v7002_v31, %v10788_v1  ;;  %v7012_v19 = vcombine.high (!%p7657_p6), %v7002_v31, %v7002_v31  ;;  %v7017_v51 = vrot.slane (!%p7657_p6), %v6988_v63, %v10788_v1 }
0x132c   : > { %v7895_v21 = vpop.f32.mrb[175].mxu1 }
0x132d   : > { %v10510_v12 = vadd.f32 %v7893_v56, %v10412_v24  ;;  %v7896_v45 = vadd.f32 %v7895_v21, %v7894_v14  ;;  %6504 = vadd.xlane.f32.xlu0 (!%p7657_p6), %v6495_v46  ;;  %v6981_v56 = vcombine.high (!%p7657_p6), %v6979_v23, %v6979_v23  ;;  %v8852_v14 = vld [vmem:[%s10746_s13 + $0x30] sm:$0xff] (!%p7657_p6)   ;;  %v6910_v21 = vrot.slane (!%p7657_p6), %v6872_v62, %v10788_v1 }
0x132f   : > { %6483 = vst [vmem:[#allocation2 + $0x10] sm:$0xff] %v10510_v12  ;;  %v10514_v47 = vadd.f32 %v7896_v45, %v10420_v36  ;;  %v6496_v15 = vmul.f32 (!%p7657_p6), %v10510_v12, %v10510_v12  ;;  %v6886_v45 = vrot.slane (!%p7657_p6), %v6858_v41, %v10787_v22 }
0x1331   : > { %6484 = vst [vmem:[#allocation2 + $0x18] sm:$0xff] %v10514_v47  ;;  %v6497_v5 = vmul.f32 (!%p7657_p6), %v10514_v47, %v10514_v47  ;;  %6506 = vadd.xlane.f32.xlu0 (!%p7657_p6), %v6496_v15 }
0x135e   : > { %v7897_v32 = vpop.f32.mrb[176].mxu1 }
0x135f   : > { %v7898_v18 = vpop.f32.mrb[177].mxu1 }
0x1360   : > { %v7899_v28 = vadd.f32 %v7898_v18, %v7897_v32  ;;  %v7900_v33 = vpop.f32.mrb[178].mxu1  ;;  %v7029_v32 = vrot.slane (!%p7657_p6), %v7012_v19, %v10788_v1  ;;  %v7009_v18 = vrot.slane (!%p7657_p6), %v6981_v56, %v10787_v22 }
0x1361   : > { %v7901_v43 = vpop.f32.mrb[179].mxu1 }
0x1362   : > { %v10518_v2 = vadd.f32 %v7899_v28, %v10449_v26  ;;  %v7902_v53 = vadd.f32 %v7901_v43, %v7900_v33  ;;  %v8853_v28 = vld [vmem:[%s10746_s13 + $0x38] sm:$0xff] (!%p7657_p6)   ;;  %v6914_v33 = vrot.slane (!%p7657_p6), %v6886_v45, %v10788_v1  ;;  %v6888_v43 = vcombine.high (!%p7657_p6), %v6872_v62, %v6872_v62 }
0x1364   : > { %6485 = vst [vmem:[#allocation2 + $0x20] sm:$0xff] %v10518_v2  ;;  %v10522_v24 = vadd.f32 %v7902_v53, %v10454_v17  ;;  %v6498_v17 = vmul.f32 (!%p7657_p6), %v10518_v2, %v10518_v2  ;;  %v7037_v53 = vrot.slane (!%p7657_p6), %v7009_v18, %v10788_v1 }
0x1366   : > { %6486 = vst [vmem:[#allocation2 + $0x28] sm:$0xff] %v10522_v24  ;;  %v7903_v36 = vpop.f32.mrb[180].mxu1  ;;  %6510 = vadd.xlane.f32.xlu1 (!%p7657_p6), %v6498_v17 }
0x1367   : > { %v7904_v48 = vpop.f32.mrb[181].mxu1 }
0x1368   : > { %v7905_v0 = vadd.f32 %v7904_v48, %v7903_v36  ;;  %v7906_v44 = vpop.f32.mrb[182].mxu1  ;;  %6492 = sbr.rel (%p7657_p6) target bundleno = 5507 (0x1583), region = 88  ;;  %v7013_v36 = vcombine.high (!%p7657_p6), %v7009_v18, %v7009_v18  ;;  %v6918_v48 = vrot.slane (!%p7657_p6), %v6888_v43, %v10788_v1 }
0x1369   : > { %v7907_v4 = vpop.f32.mrb[183].mxu1 }
0x136a   : > { %v10526_v16 = vadd.f32 %v7905_v0, %v10452_v40  ;;  %v7908_v34 = vadd.f32 %v7907_v4, %v7906_v44  ;;  %v8846_v40 = vld [vmem:[%s10746_s13] sm:$0xff] (!%p7657_p6)   ;;  %v6890_v0 = vcombine.high (!%p7657_p6), %v6886_v45, %v6886_v45  ;;  %v7045_v44 = vrot.slane (!%p7657_p6), %v7013_v36, %v10788_v1 }
0x136b   : > { %8387 = vmatprep.subr.bf16.mxu0 (!%p7657_p6), %v8846_v40  ;;  %8437 = vmatprep.subr.bf16.mxu1 (!%p7657_p6), %v8846_v40  ;;  %v10789_v4 = vld [vmem:[#allocation12_spill] sm:$0xff] (!%p7657_p6) }
0x136c   : > { %6487 = vst [vmem:[#allocation2 + $0x30] sm:$0xff] %v10526_v16  ;;  %v10530_v26 = vadd.f32 %v7908_v34, %v10458_v55  ;;  %v6499_v55 = vmul.f32 (!%p7657_p6), %v10522_v24, %v10522_v24  ;;  %8388 = vmatpush3.bf16.msra.mxu0 (!%p7657_p6), %v8846_v40  ;;  %8445 = vmatpush3.bf16.msra.mxu1 (!%p7657_p6), %v8846_v40  ;;  %v6573_v34 = vsub.s32 (!%p7657_p6), 1, %v10789_v4  ;;  %v10790_v40 = vld [vmem:[#allocation11_spill] sm:$0xff] (!%p7657_p6)  ;;  %v6587_v46 = vsub.s32 (!%p7657_p6), 3, %v10789_v4 }
0x136d   : > { %v6500_v39 = vmul.f32 (!%p7657_p6), %v10526_v16, %v10526_v16  ;;  %8389 = vmatprep.subr.bf16.mxu0 (!%p7657_p6), %v8847_v3  ;;  %8438 = vmatprep.subr.bf16.mxu1 (!%p7657_p6), %v8847_v3  ;;  %v6922_v17 = vrot.slane (!%p7657_p6), %v6890_v0, %v10788_v1  ;;  %v6567_v22 = vrot.slane (!%p7657_p6), %v10790_v40, %v10788_v1  ;;  %v6580_v58 = vsub.s32 (!%p7657_p6), 2, %v10789_v4 }
0x136e   : > { %6488 = vst [vmem:[#allocation2 + $0x38] sm:$0xff] %v10530_v26  ;;  %6512 = vadd.xlane.f32.xlu1 (!%p7657_p6), %v6499_v55  ;;  %v6501_v27 = vmul.f32 (!%p7657_p6), %v10530_v26, %v10530_v26  ;;  %v6574_v55 = vrot.slane (!%p7657_p6), %v10790_v40, %v6573_v34  ;;  %v6588_v15 = vrot.slane (!%p7657_p6), %v10790_v40, %v6587_v46  ;;  %v6608_v38 = vsub.s32 (!%p7657_p6), 6, %v10789_v4 }
0x136f   : > { %6514 = vadd.xlane.f32.xlu0 %v6500_v39  ;;  %v6581_v11 = vrot.slane %v10790_v40, %v6580_v58 }
0x1370   : > { %8390 = vmatpush3.bf16.msra.mxu0 %v8847_v3  ;;  %8446 = vmatpush3.bf16.msra.mxu1 %v8847_v3  ;;  %v6615_v3 = vsub.s32 7, %v10789_v4  ;;  %v6609_v29 = vrot.slane %v10790_v40, %v6608_v38 }
0x1371   : > { %8391 = vmatprep.subr.bf16.mxu0 %v8848_v61  ;;  %8439 = vmatprep.subr.bf16.mxu1 %v8848_v61 }
0x1372   : > { %6508 = vadd.xlane.f32.xlu1 %v6497_v5  ;;  %v7010_v5 = vcombine.high %v6988_v63, %v6988_v63  ;;  %v6616_v7 = vrot.slane %v10790_v40, %v6615_v3 }
0x1374   : > { %8392 = vmatpush3.bf16.msra.mxu0 %v8848_v61  ;;  %8447 = vmatpush3.bf16.msra.mxu1 %v8848_v61  ;;  %v7025_v39 = vrot.slane %v7010_v5, %v10788_v1  ;;  %v7011_v61 = vcombine.high %v6995_v42, %v6995_v42 }
0x1375   : > { %8393 = vmatprep.subr.bf16.mxu0 %v8849_v37  ;;  %8440 = vmatprep.subr.bf16.mxu1 %v8849_v37 }
0x1376   : > { %6516 = vadd.xlane.f32.xlu1 %v6501_v27  ;;  %v6601_v27 = vsub.s32 5, %v10789_v4  ;;  %v7041_v59 = vrot.slane %v7011_v61, %v10788_v1 }
0x1378   : > { %8394 = vmatpush3.bf16.msra.mxu0 %v8849_v37  ;;  %8448 = vmatpush3.bf16.msra.mxu1 %v8849_v37  ;;  %v6602_v30 = vrot.slane %v10790_v40, %v6601_v27  ;;  %v6594_v37 = vsub.s32 4, %v10789_v4 }
0x1379   : > { %8395 = vmatprep.subr.bf16.mxu0 %v8850_v6  ;;  %8441 = vmatprep.subr.bf16.mxu1 %v8850_v6 }
0x137c   : > { %8396 = vmatpush3.bf16.msra.mxu0 %v8850_v6  ;;  %8449 = vmatpush3.bf16.msra.mxu1 %v8850_v6 }
0x137d   : > { %8397 = vmatprep.subr.bf16.mxu0 %v8851_v52  ;;  %8442 = vmatprep.subr.bf16.mxu1 %v8851_v52 }
0x1380   : > { %8398 = vmatpush3.bf16.msra.mxu0 %v8851_v52  ;;  %8450 = vmatpush3.bf16.msra.mxu1 %v8851_v52 }
0x1381   : > { %8399 = vmatprep.subr.bf16.mxu0 %v8852_v14  ;;  %8443 = vmatprep.subr.bf16.mxu1 %v8852_v14 }
0x1384   : > { %8400 = vmatpush3.bf16.msra.mxu0 %v8852_v14  ;;  %8451 = vmatpush3.bf16.msra.mxu1 %v8852_v14 }
0x1385   : > { %6924 = vperm.xlu0 %8842, %v6894_v25   ;;  %8401 = vmatprep.subr.bf16.mxu0 %v8853_v28 }
0x1386   : > { %8444 = vmatprep.subr.bf16.mxu1 %v8853_v28 }
0x1387   : > { %6928 = vperm.xlu1 %8843, %v6898_v54   ;;  %v6595_v54 = vrot.slane %v10790_v40, %v6594_v37 }
0x1388   : > { %8402 = vmatpush3.bf16.msra.mxu0 %v8853_v28  ;;  %8452 = vmatpush3.bf16.msra.mxu1 %v8853_v28 }
0x1389   : > { %7051 = vperm.xlu0 %8842, %v7021_v20  }
0x138b   : > { %6932 = vperm.xlu1 %8843, %v6902_v49  }
0x138d   : > { %7059 = vperm.xlu0 %8842, %v7029_v32  }
0x138f   : > { %6936 = vperm.xlu1 %8843, %v6906_v35  }
0x1391   : > { %7067 = vperm.xlu0 %8842, %v7037_v53  }
0x1393   : > { %6940 = vperm.xlu1 %8843, %v6910_v21  }
0x1395   : > { %7075 = vperm.xlu0 %8842, %v7045_v44   ;;  %v7658_v44 = vld [vmem:[%s10745_s12] ss:$0 sm:$0xff] }
0x1397   : > { %6944 = vperm.xlu1 %8843, %v6914_v33  }
0x1399   : > { %6576 = vbcast.lane.b32.xlu0 %v6574_v55, 256 }
0x139b   : > { %6948 = vperm.xlu1 %8843, %v6918_v48  }
0x139d   : > { %6590 = vbcast.lane.b32.xlu0 %v6588_v15, 256 }
0x139f   : > { %6952 = vperm.xlu1 %8843, %v6922_v17  }
0x13a1   : > { %6604 = vbcast.lane.b32.xlu0 %v6602_v30, 256 }
0x13a3   : > { %7047 = vperm.xlu1 %8843, %v7017_v51  }
0x13a5   : > { %6618 = vbcast.lane.b32.xlu0 %v6616_v7, 256 }
0x13a7   : > { %7055 = vperm.xlu1 %8843, %v7025_v39  }
0x13ab   : > { %7063 = vperm.xlu1 %8843, %v7033_v13  }
0x13af   : > { %7071 = vperm.xlu1 %8843, %v7041_v59  }
0x13b3   : > { %6569 = vbcast.lane.b32.xlu1 %v6567_v22, 256 }
0x13b6   : > { %v6503_v50 = vpop.xlane.xlu0 %6502 }
0x13b7   : > { %6583 = vbcast.lane.b32.xlu1 %v6581_v11, 256  ;;  %v6518_v1 = vmul.f32 0.0078125, %v6503_v50 }
0x13b9   : > { %v6526_v57 = vadd.f32 1e-06, %v6518_v1 }
0x13ba   : > { %v6505_v25 = vpop.xlane.xlu0 %6504 }
0x13bb   : > { %6597 = vbcast.lane.b32.xlu1 %v6595_v54, 256  ;;  %v6519_v23 = vmul.f32 0.0078125, %v6505_v25 }
0x13bd   : > { %v6527_v35 = vadd.f32 1e-06, %v6519_v23 }
0x13be   : > { %v6507_v41 = vpop.xlane.xlu0 %6506 }
0x13bf   : > { %6611 = vbcast.lane.b32.xlu1 %v6609_v29, 256  ;;  %v6520_v19 = vmul.f32 0.0078125, %v6507_v41 }
0x13c1   : > { %v6528_v14 = vadd.f32 1e-06, %v6520_v19 }
0x13f3   : > { %v6511_v60 = vpop.xlane.xlu1 %6510 }
0x13f4   : > { %v6522_v6 = vmul.f32 0.0078125, %v6511_v60 }
0x13f6   : > { %v6530_v49 = vadd.f32 1e-06, %v6522_v6 }
0x13f8   : > { %8854 = vrsqrt.f32 %v6530_v49 }
0x13f9   : > { %8856 = vrsqrt.f32 %v6526_v57 }
0x13fb   : > { %v6513_v8 = vpop.xlane.xlu1 %6512 }
0x13fc   : > { %v6523_v31 = vmul.f32 0.0078125, %v6513_v8  ;;  %v6515_v45 = vpop.xlane.xlu0 %6514 }
0x13fd   : > { %v6524_v18 = vmul.f32 0.0078125, %v6515_v45 }
0x13fe   : > { %v6531_v52 = vadd.f32 1e-06, %v6523_v31 }
0x13ff   : > { %v6509_v62 = vpop.xlane.xlu1 %6508  ;;  %v6532_v43 = vadd.f32 1e-06, %v6524_v18 }
0x1400   : > { %8858 = vrsqrt.f32 %v6531_v52  ;;  %v6521_v20 = vmul.f32 0.0078125, %v6509_v62 }
0x1401   : > { %8860 = vrsqrt.f32 %v6527_v35 }
0x1402   : > { %v6529_v56 = vadd.f32 1e-06, %v6521_v20  ;;  %v8855_v28 = vpop.eup %8854 }
0x1403   : > { %v6517_v21 = vpop.xlane.xlu1 %6516  ;;  %v8857_v53 = vpop.eup %8856  ;;  %v6546_v48 = vmul.f32 %v8855_v28, %v10518_v2 }
0x1404   : > { %8862 = vrsqrt.f32 %v6529_v56  ;;  %v6525_v32 = vmul.f32 0.0078125, %v6517_v21  ;;  %v6542_v34 = vmul.f32 %v8857_v53, %v10502_v9  ;;  %v10632_v40 = vpop.permute.xlu0 %6924 }
0x1405   : > { %8864 = vrsqrt.f32 %v6528_v14  ;;  %v10636_v51 = vmul.f32 %v7658_v44, %v6546_v48 }
0x1406   : > { %v6533_v33 = vadd.f32 1e-06, %v6525_v32  ;;  %v6556_v15 = vmul.f32 %v7658_v44, %v6542_v34 }
0x1407   : > { %v10623_v36 = vpop.permute.xlu1 %6928 }
0x1408   : > { %8866 = vrsqrt.f32 %v6533_v33  ;;  %v10641_v9 = vpop.permute.xlu0 %7051 }
0x1409   : > { %8868 = vrsqrt.f32 %v6532_v43 }
0x140a   : > { %v8859_v0 = vpop.eup %8858 }
0x140b   : > { %v8861_v17 = vpop.eup %8860  ;;  %v10630_v63 = vpop.permute.xlu1 %6932  ;;  %v6547_v55 = vmul.f32 %v8859_v0, %v10522_v24 }
0x140c   : > { %v6543_v46 = vmul.f32 %v8861_v17, %v10506_v10 }
0x140d   : > { %v6561_v5 = vmul.f32 %v7658_v44, %v6547_v55 }
0x140e   : > { %v8863_v2 = vpop.eup %8862  ;;  %v6557_v27 = vmul.f32 %v7658_v44, %v6543_v46 }
0x140f   : > { %v8865_v39 = vpop.eup %8864  ;;  %v6545_v42 = vmul.f32 %v8863_v2, %v10514_v47  ;;  %v10639_v30 = vpop.permute.xlu1 %6936  ;;  %v6702_v3 = vpack.c.bf16 %v6561_v5, %v10636_v51 }
0x1410   : > { %v6544_v13 = vmul.f32 %v8865_v39, %v10510_v12  ;;  %v6700_v24 = vpack.c.bf16 %v6557_v27, %v6556_v15  ;;  %v10648_v47 = vpop.permute.xlu0 %7059 }
0x1411   : > { %8407 = vmatprep.mubr.bf16.mxu1 %v6702_v3  ;;  %v6559_v10 = vmul.f32 %v7658_v44, %v6545_v42 }
0x1412   : > { %v8867_v61 = vpop.eup %8866  ;;  %8403 = vmatprep.mubr.bf16.mxu0 %v6700_v24  ;;  %v6558_v7 = vmul.f32 %v7658_v44, %v6544_v13 }
0x1413   : > { %v8869_v59 = vpop.eup %8868  ;;  %v6549_v22 = vmul.f32 %v8867_v61, %v10530_v26  ;;  %v10646_v58 = vpop.permute.xlu1 %6940 }
0x1414   : > { %v6548_v11 = vmul.f32 %v8869_v59, %v10526_v16  ;;  %v6701_v37 = vpack.c.bf16 %v6559_v10, %v6558_v7  ;;  %v10653_v29 = vpop.permute.xlu0 %7067 }
0x1415   : > { %v6563_v54 = vmul.f32 %v7658_v44, %v6549_v22 }
0x1416   : > { %8404 = vmatmul.mubr.bf16.vlgmr.msra.gmra.mrb[0].mxu0 %v6701_v37  ;;  %v6562_v38 = vmul.f32 %v7658_v44, %v6548_v11 }
0x1417   : > { %v10651_v12 = vpop.permute.xlu1 %6944 }
0x1418   : > { %v6703_v60 = vpack.c.bf16 %v6563_v54, %v6562_v38  ;;  %v10657_v6 = vpop.permute.xlu0 %7075 }
0x141a   : > { %8408 = vmatmul.mubr.bf16.vlgmr.msra.gmra.mrb[0].mxu1 %v6703_v60 }
0x141b   : > { %v10655_v50 = vpop.permute.xlu1 %6948 }
0x141c   : > { %v6577_v1 = vpop.permute.xlu0 %6576 }
0x141d   : > { %v6621_v8 = vmul.f32 %v6577_v1, %v6557_v27 }
0x141f   : > { %v10659_v26 = vpop.permute.xlu1 %6952  ;;  %v6634_v23 = vrot.slane %v6621_v8, 4 }
0x1420   : > { %v6591_v16 = vpop.permute.xlu0 %6590 }
0x1421   : > { %v6623_v52 = vmul.f32 %v6591_v16, %v6559_v10  ;;  %v6635_v41 = vadd.f32 %v6634_v23, %v6621_v8 }
0x1423   : > { %v10661_v49 = vpop.permute.xlu1 %7047  ;;  %v6646_v20 = vrot.slane %v6623_v52, 4  ;;  %v6636_v32 = vrot.slane %v6635_v41, 2 }
0x1424   : > { %v6605_v31 = vpop.permute.xlu0 %6604 }
0x1425   : > { %v6625_v19 = vmul.f32 %v6605_v31, %v6561_v5  ;;  %v6647_v18 = vadd.f32 %v6646_v20, %v6623_v52  ;;  %v6637_v34 = vadd.f32 %v6636_v32, %v6635_v41 }
0x1427   : > { %v10663_v57 = vpop.permute.xlu1 %7055  ;;  %v6658_v28 = vrot.slane %v6625_v19, 4  ;;  %v6648_v17 = vrot.slane %v6647_v18, 2  ;;  %v6638_v13 = vrot.slane %v6637_v34, 1 }
0x1428   : > { %v6619_v62 = vpop.permute.xlu0 %6618 }
0x1429   : > { %v6627_v21 = vmul.f32 %v6619_v62, %v6563_v54  ;;  %v6659_v55 = vadd.f32 %v6658_v28, %v6625_v19  ;;  %v6649_v24 = vadd.f32 %v6648_v17, %v6647_v18  ;;  %v6639_v16 = vadd.f32 %v6638_v13, %v6637_v34  ;;  %v7659_v17 = vld [vmem:[%s10792_s26] ss:$0 sm:$0xff] }
0x142b   : > { %v10665_v25 = vpop.permute.xlu1 %7063  ;;  %v6670_v48 = vrot.slane %v6627_v21, 4  ;;  %v6660_v10 = vrot.slane %v6659_v55, 2  ;;  %v6650_v8 = vrot.slane %v6649_v24, 1 }
0x142f   : > { %v10667_v35 = vpop.permute.xlu1 %7071 }
0x1433   : > { %v6570_v56 = vpop.permute.xlu1 %6569 }
0x1434   : > { %v6620_v14 = vmul.f32 %v6570_v56, %v6556_v15  ;;  %v6671_v15 = vadd.f32 %v6670_v48, %v6627_v21 }
0x1436   : > { %v6628_v45 = vrot.slane %v6620_v14, 4  ;;  %v6672_v11 = vrot.slane %v6671_v15, 2 }
0x1437   : > { %v6584_v33 = vpop.permute.xlu1 %6583 }
0x1438   : > { %v6629_v43 = vadd.f32 %v6628_v45, %v6620_v14  ;;  %v6622_v53 = vmul.f32 %v6584_v33, %v6558_v7  ;;  %v6673_v62 = vadd.f32 %v6672_v11, %v6671_v15 }
0x143a   : > { %v6630_v0 = vrot.slane %v6629_v43, 2  ;;  %v6640_v44 = vrot.slane %v6622_v53, 4  ;;  %v6674_v32 = vrot.slane %v6673_v62, 1 }
0x143b   : > { %v6598_v46 = vpop.permute.xlu1 %6597 }
0x143c   : > { %v6631_v2 = vadd.f32 %v6630_v0, %v6629_v43  ;;  %v6641_v27 = vadd.f32 %v6640_v44, %v6622_v53  ;;  %v6624_v5 = vmul.f32 %v6598_v46, %v10636_v51  ;;  %v6661_v51 = vadd.f32 %v6660_v10, %v6659_v55 }
0x143d   : > { %v6675_v48 = vadd.f32 %v6674_v32, %v6673_v62  ;;  %v8934_v55 = vmov 1983009808  }
0x143e   : > { %v6632_v39 = vrot.slane %v6631_v2, 1  ;;  %v6642_v42 = vrot.slane %v6641_v27, 2  ;;  %v6652_v3 = vrot.slane %v6624_v5, 4  ;;  %v6662_v14 = vrot.slane %v6661_v51, 1 }
0x143f   : > { %v6612_v61 = vpop.permute.xlu1 %6611  ;;  %v7089_v46 = vunpack.c.l.s4 %v8934_v55 }
0x1440   : > { %v6643_v7 = vadd.f32 %v6642_v42, %v6641_v27  ;;  %v6653_v59 = vadd.f32 %v6652_v3, %v6624_v5  ;;  %v6626_v22 = vmul.f32 %v6612_v61, %v6562_v38  ;;  %v6633_v37 = vadd.f32 %v6632_v39, %v6631_v2 }
0x1441   : > { %v6651_v38 = vadd.f32 %v6650_v8, %v6649_v24  ;;  %v6663_v43 = vadd.f32 %v6662_v14, %v6661_v51  ;;  %v7090_v39 = vunpack.c.0.s8 %v7089_v46 }
0x1442   : > { %v6644_v54 = vrot.slane %v6643_v7, 1  ;;  %v6654_v60 = vrot.slane %v6653_v59, 2  ;;  %v6664_v1 = vrot.slane %v6626_v22, 4  ;;  %v6685_v41 = vsel %vm6684_vm12, %v6639_v16, %v6633_v37 }
0x1444   : > { %v6645_v31 = vadd.f32 %v6644_v54, %v6643_v7  ;;  %v6655_v23 = vadd.f32 %v6654_v60, %v6653_v59  ;;  %v6665_v52 = vadd.f32 %v6664_v1, %v6626_v22  ;;  %v7093_v60 = vsub.s32 %v7090_v39, %v10789_v4 }
0x1446   : > { %v6687_v20 = vsel %vm6686_vm13, %v6645_v31, %v6685_v41  ;;  %v6656_v19 = vrot.slane %v6655_v23, 1  ;;  %v6666_v56 = vrot.slane %v6665_v52, 2 }
0x1447   : > { %v6689_v18 = vsel %vm6688_vm7, %v6651_v38, %v6687_v20 }
0x1448   : > { %v6657_v21 = vadd.f32 %v6656_v19, %v6655_v23  ;;  %v6667_v45 = vadd.f32 %v6666_v56, %v6665_v52  ;;  %v8935_v23 = vmov 1934713408  }
0x144a   : > { %v6691_v28 = vsel %vm6690_vm8, %v6657_v21, %v6689_v18  ;;  %v6668_v33 = vrot.slane %v6667_v45, 1 }
0x144b   : > { %v6693_v0 = vsel %vm6692_vm14, %v6663_v43, %v6691_v28 }
0x144c   : > { %v6669_v53 = vadd.f32 %v6668_v33, %v6667_v45 }
0x144e   : > { %v6695_v44 = vsel %vm6694_vm15, %v6669_v53, %v6693_v0 }
0x144f   : > { %v6697_v34 = vsel %vm6696_vm1, %v6675_v48, %v6695_v44 }
0x1450   : > { %6699 = vst [vmem:[%s10791_s21] sm:$0xff] %v6697_v34 }
0x14e9   : > { %v8405_v2 = vpop.f32.mrb[0].mxu0 }
0x14ea   : > { %v6818_v27 = vadd.f32 %v8405_v2, %v7659_v17  ;;  %v6809_v5 = vpop.f32.mrb[1].mxu0 }
0x14eb   : > { %v6810_v15 = vadd.f32 %v7659_v17, %v6809_v5  ;;  %v8406_v42 = vpop.f32.mrb[2].mxu0 }
0x14ec   : > { %v6957_v3 = vmul.f32 %v10630_v63, %v6818_v27  ;;  %v6821_v13 = vadd.f32 %v8406_v42, %v7659_v17  ;;  %v6812_v24 = vpop.f32.mrb[3].mxu0 }
0x14ed   : > { %v6955_v10 = vmul.f32 %v10632_v40, %v6810_v15  ;;  %v6813_v61 = vadd.f32 %v7659_v17, %v6812_v24  ;;  %v8409_v7 = vpop.f32.mrb[0].mxu1 }
0x14ee   : > { %v7080_v59 = vadd.f32 %v10663_v57, %v6957_v3  ;;  %v6958_v22 = vmul.f32 %v10639_v30, %v6821_v13  ;;  %v6834_v11 = vadd.f32 %v8409_v7, %v7659_v17  ;;  %v6825_v37 = vpop.f32.mrb[1].mxu1  ;;  %v7153_v57 = vunpack.c.l.s4 %v8935_v23 }
0x14ef   : > { %v7078_v54 = vadd.f32 %v10661_v49, %v6955_v10  ;;  %v6956_v1 = vmul.f32 %v10623_v36, %v6813_v61  ;;  %v6826_v16 = vadd.f32 %v7659_v17, %v6825_v37  ;;  %v8410_v63 = vpop.f32.mrb[2].mxu1 }
0x14f0   : > { %v7081_v8 = vadd.f32 %v10648_v47, %v6958_v22  ;;  %v6961_v40 = vmul.f32 %v10655_v50, %v6834_v11  ;;  %v6837_v51 = vadd.f32 %v8410_v63, %v7659_v17  ;;  %v6828_v31 = vpop.f32.mrb[3].mxu1  ;;  %v7154_v14 = vunpack.c.0.s8 %v7153_v57 }
0x14f1   : > { %v7086_v52 = vcombine.low %v7078_v54, %v7080_v59  ;;  %v7087_v30 = vcombine.high %v7078_v54, %v7080_v59  ;;  %v7079_v62 = vadd.f32 %v10641_v9, %v6956_v1  ;;  %v6959_v49 = vmul.f32 %v10646_v58, %v6826_v16 }
0x14f2   : > { %v7084_v41 = vadd.f32 %v10667_v35, %v6961_v40  ;;  %v6962_v36 = vmul.f32 %v10659_v26, %v6837_v51  ;;  %v6829_v20 = vadd.f32 %v7659_v17, %v6828_v31 }
0x14f3   : > { %v7102_v19 = vcombine.low %v7079_v62, %v7081_v8  ;;  %v7103_v56 = vcombine.high %v7079_v62, %v7081_v8  ;;  %v7082_v47 = vadd.f32 %v10665_v25, %v6959_v49  ;;  %v7094_v21 = vrot.slane %v7086_v52, %v7093_v60 }
0x14f4   : > { %v7085_v50 = vadd.f32 %v10657_v6, %v6962_v36  ;;  %v6960_v38 = vmul.f32 %v10651_v12, %v6829_v20  ;;  %v7101_v45 = vrot.slane %v7087_v30, %v7093_v60  ;;  %v7157_v25 = vsub.s32 %v7154_v14, %v10789_v4 }
0x14f5   : > { %v7110_v32 = vrot.slane %v7102_v19, %v7093_v60  ;;  %v7117_v9 = vrot.slane %v7103_v56, %v7093_v60  ;;  %v7118_v18 = vcombine.low %v7082_v47, %v7084_v41  ;;  %v7119_v58 = vcombine.high %v7082_v47, %v7084_v41 }
0x14f6   : > { %v7083_v35 = vadd.f32 %v10653_v29, %v6960_v38 }
0x14f7   : > { %v7151_v28 = vcombine.high %v7094_v21, %v7110_v32  ;;  %v7150_v26 = vcombine.low %v7094_v21, %v7110_v32  ;;  %v7166_v33 = vcombine.low %v7101_v45, %v7117_v9  ;;  %v7167_v43 = vcombine.high %v7101_v45, %v7117_v9 }
0x14f8   : > { %v7134_v53 = vcombine.low %v7083_v35, %v7085_v50  ;;  %v7135_v48 = vcombine.high %v7083_v35, %v7085_v50  ;;  %v7126_v6 = vrot.slane %v7118_v18, %v7093_v60  ;;  %v7133_v0 = vrot.slane %v7119_v58, %v7093_v60 }
0x14f9   : > { %v7165_v2 = vrot.slane %v7151_v28, %v7157_v25  ;;  %v7158_v27 = vrot.slane %v7150_v26, %v7157_v25  ;;  %v7174_v5 = vrot.slane %v7166_v33, %v7157_v25  ;;  %v7181_v3 = vrot.slane %v7167_v43, %v7157_v25 }
0x14fa   : > { %v7142_v12 = vrot.slane %v7134_v53, %v7093_v60  ;;  %v7149_v44 = vrot.slane %v7135_v48, %v7093_v60 }
0x14fc   : > { %v7183_v34 = vcombine.high %v7126_v6, %v7142_v12  ;;  %v7182_v17 = vcombine.low %v7126_v6, %v7142_v12  ;;  %v7198_v55 = vcombine.low %v7133_v0, %v7149_v44  ;;  %v7199_v46 = vcombine.high %v7133_v0, %v7149_v44 }
0x14fe   : > { %v7197_v29 = vrot.slane %v7183_v34, %v7157_v25  ;;  %v7190_v15 = vrot.slane %v7182_v17, %v7157_v25  ;;  %v7206_v39 = vrot.slane %v7198_v55, %v7157_v25  ;;  %v7213_v42 = vrot.slane %v7199_v46, %v7157_v25 }
0x1500   : > { %v7216_v13 = vcombine.low %v7165_v2, %v7197_v29  ;;  %v7215_v24 = vcombine.high %v7158_v27, %v7190_v15  ;;  %v7218_v10 = vcombine.low %v7174_v5, %v7206_v39  ;;  %v7217_v4 = vcombine.high %v7165_v2, %v7197_v29 }
0x1501   : > { %v7220_v61 = vcombine.low %v7181_v3, %v7213_v42  ;;  %v7219_v7 = vcombine.high %v7174_v5, %v7206_v39  ;;  %v7221_v59 = vcombine.high %v7181_v3, %v7213_v42  ;;  %v7214_v22 = vcombine.low %v7158_v27, %v7190_v15 }
0x1502   : > { %7227 = vrot.lane.b32.xlu0 %v7216_v13, %s8936_s24  ;;  %7223 = vrot.lane.b32.xlu1 %v7215_v24, %s8937_s19 }
0x1506   : > { %7235 = vrot.lane.b32.xlu0 %v7218_v10, %s8938_s22  ;;  %7231 = vrot.lane.b32.xlu1 %v7217_v4, %s8939_s25 }
0x150a   : > { %7243 = vrot.lane.b32.xlu0 %v7220_v61, %s8940_s23  ;;  %7239 = vrot.lane.b32.xlu1 %v7219_v7, %s8941_s18 }
0x150e   : > { %7247 = vrot.lane.b32.xlu1 %v7221_v59, %s8942_s16 }
0x1574   : > { %v7228_v11 = vpop.permute.xlu0 %7227  ;;  %v7224_v37 = vpop.permute.xlu1 %7223 }
0x1575   : > { %v7250_v54 = vsel %vm2269_vm6, %v7214_v22, %v7224_v37 }
0x1576   : > { %v7252_v60 = vsel %vm7251_vm2, %v7250_v54, %v7228_v11 }
0x1578   : > { %v7236_v1 = vpop.permute.xlu0 %7235  ;;  %v7232_v16 = vpop.permute.xlu1 %7231 }
0x1579   : > { %v7254_v63 = vsel %vm7253_vm3, %v7252_v60, %v7232_v16 }
0x157a   : > { %v7255_v8 = vsel %vm1900_vm4, %v7254_v63, %v7236_v1 }
0x157c   : > { %v7240_v40 = vpop.permute.xlu1 %7239  ;;  %v7244_v51 = vpop.permute.xlu0 %7243 }
0x157d   : > { %v7257_v31 = vsel %vm7256_vm9, %v7255_v8, %v7240_v40 }
0x157e   : > { %v7259_v57 = vsel %vm7258_vm10, %v7257_v31, %v7244_v51 }
0x1580   : > { %v7248_v23 = vpop.permute.xlu1 %7247 }
0x1581   : > { %v7261_v52 = vsel %vm7260_vm0, %v7259_v57, %v7248_v23 }
0x1582   : > { %7263 = vst.msk [vmem:[#allocation5] sm:$0xff] %vm7262_vm5, %v7261_v52 }
0x1583 PF: > { %s10793_s2 = sld [smem:[#allocation9_spill]]  ;;  %s8943_s14 = smov [#allocation5]  }
0x1584   : > { %s7277_s0 = sshll.u32 %s8943_s14, 4  ;;  %s7278_s0 = int_to_ptr.vmem [resolvable:$true] %s7277_s0 }
0x1585   : > { %s8870_s30 = scalar_lea.vmem %s7278_s0, 128  ;;  %p8877_p11 = scmp.lt.s32.totalorder %s7278_s0, %s7278_s0 }
0x1586   : > { %p8871_p8 = scmp.ne.s32.totalorder %s7278_s0, %s8870_s30  ;;  %p8878_p12 = scmp.lt.s32.totalorder %s8870_s30, %s8870_s30 }
0x1588   : > { %p8879_p13 = por %p8878_p12, %p8877_p11 }
0x1589   : > { %s10794_s20 = sadd.s32 4294967295, %s10793_s2  }
0x158a   : > { %p10698_p7 = scmp.eq.s32.totalorder %s10794_s20, 1 }
0x158c   : > { %p8872_p9 = pnand %p8871_p8, %p10698_p7 }
0x158e   : > { %p8873_p10 = pneg %p8872_p9 }
0x1590   : > { %p8880_p0 = pnand %p8879_p13, %p8873_p10 }
0x1592   : > { %8883 = shalt.err (!%p8880_p0)
}
0x1593   : > { %s10796_s27 = sld [smem:[#allocation18_spill]] }
0x1599   : > { %s8884_s17 = scalar_lea.hbm %s10796_s27, 128 }
0x159a   : > { %p8885_p1 = scmp.ne.s32.totalorder %s10796_s27, %s8884_s17  ;;  %p8890_p4 = scmp.lt.u32.totalorder %s8884_s17, %s10796_s27 }
0x159c   : > { %p8886_p2 = pnand %p8885_p1, %p10698_p7 }
0x159e   : > { %p8887_p3 = pneg %p8886_p2 }
0x15a0   : > { %p8892_p5 = pnand %p8890_p4, %p8887_p3 }
0x15a2   : > { %8895 = shalt.err (!%p8892_p5)
}
0x15a3   : > { %8457 = dma.vmem_to_hbm [thread:$0]  (%p10698_p7), %s7278_s0, 128, %s10796_s27, [#allocation6]  }
0x15a4   : > { %8909 = dma.done.wait (%p10698_p7), [#allocation6], 128  }
0x15a5   : > { %8911 = vsyncadd (%p10698_p7), [#allocation6], 4294967168 }
0x15a6 PF: > { %s10797_s18 = sld [smem:[#allocation9_spill]]  ;;  %s10798_s21 = sld [smem:[#allocation8_spill]] }
0x15a7   : > { %s10799_s22 = sld [smem:[#allocation10_spill]] }
0x15ac   : > { %s28_s23 = sadd.s32 1, %s10797_s18  }
0x15ad   : > { %p25_p6 = scmp.ge.s32.totalorder %s28_s23, 4  }
0x15af   :  { %27 = sbr.rel (!%p25_p6) target bundleno = 8 (0x8), region = 153 }
0x15b6   :  { %7300 = vsyncpa [#allocation6], 1 }
0x15b7   :  { %7302 = vsyncpa [#allocation6 + $0x1], 1 }

</bundles_post_ra>
